<compile_context>
chip_gen: v6e
topology: v6e:2x2x1
jax: 0.10.0
libtpu: 0.0.40
codegen_flags: <defaults>
</compile_context>

<pallas_src>
import jax
import jax.numpy as jnp
from jax.experimental import pallas as pl
from jax.experimental.pallas import tpu as pltpu


def _residual_ff_kernel(x_ref, w1_ref, b1_ref, w2_ref, b2_ref, o_ref):
    # x_ref: (TM, D) f32   w1: (D, H) bf16   b1: (1, H) f32
    # w2:    (H, D) bf16   b2: (1, D) f32    o_ref: (TM, D) f32
    x = x_ref[...]                                   # f32, kept for residual
    # fn(x): Linear -> GELU -> Linear.  MXU runs in bf16, accumulates in f32.
    h = jnp.dot(x.astype(jnp.bfloat16), w1_ref[...],
                preferred_element_type=jnp.float32)
    h = jax.nn.gelu(h + b1_ref[...])                 # f32 bias add + GELU (VPU/EUP)
    y = jnp.dot(h.astype(jnp.bfloat16), w2_ref[...],
                preferred_element_type=jnp.float32)
    y = y + b2_ref[...]
    # Residual: fn(x) + x  — the semantics of the Residual module.
    o_ref[...] = (y + x).astype(o_ref.dtype)


def _round_up(x, m):
    return ((x + m - 1) // m) * m


def residual_feedforward(x, w1, b1, w2, b2, *, tm=256):
    """Residual(FeedForward)(x) == ff(x) + x, fused in a single Pallas kernel.

    x: (B, S, D) float32;  w1: (D, H);  b1: (1, H);  w2: (H, D);  b2: (1, D)
    """
    B, S, D = x.shape
    H = w1.shape[1]
    N = B * S
    x2 = x.reshape(N, D)

    # Tile size along the token axis: multiple of 8, no larger than needed.
    tm = max(8, min(tm, _round_up(N, 8)))
    n_pad = _round_up(N, tm)
    if n_pad != N:
        x2 = jnp.pad(x2, ((0, n_pad - N), (0, 0)))

    # Pre-cast weights to bf16 once (halves weight DMA, enables bf16 MXU path).
    w1b = w1.astype(jnp.bfloat16)
    w2b = w2.astype(jnp.bfloat16)

    out = pl.pallas_call(
        _residual_ff_kernel,
        out_shape=jax.ShapeDtypeStruct((n_pad, D), x.dtype),
        grid_spec=pltpu.PrefetchScalarGridSpec(
            num_scalar_prefetch=0,
            grid=(n_pad // tm,),
            in_specs=[
                pl.BlockSpec((tm, D), lambda i: (i, 0)),   # x tile (pipelined)
                pl.BlockSpec((D, H), lambda i: (0, 0)),    # w1 (VMEM-resident)
                pl.BlockSpec((1, H), lambda i: (0, 0)),    # b1 (VMEM-resident)
                pl.BlockSpec((H, D), lambda i: (0, 0)),    # w2 (VMEM-resident)
                pl.BlockSpec((1, D), lambda i: (0, 0)),    # b2 (VMEM-resident)
            ],
            out_specs=pl.BlockSpec((tm, D), lambda i: (i, 0)),
        ),
        compiler_params=pltpu.CompilerParams(
            dimension_semantics=("parallel",),          # independent token tiles
            vmem_limit_bytes=32 * 1024 * 1024),         # fits v5e/v6e/v7x budgets
    )(x2, w1b, b1, w2b, b2)

    return out[:N].reshape(B, S, D)


def _reference(x, w1, b1, w2, b2):
    # Pure-JAX f32 reference: Residual(FeedForward)(x) = ff(x) + x
    h = jax.nn.gelu(x @ w1 + b1[0])
    return h @ w2 + b2[0] + x


if __name__ == "__main__":
    # Small shapes consistent with the module usage, with a lane-dense (128x)
    # feature dim and enough tokens to exercise the tiled grid (N=512, TM=256).
    B, S, D = 2, 256, 128
    H = 4 * D  # FeedForward inner dim

    key = jax.random.PRNGKey(0)
    kx, k1, k2, k3, k4 = jax.random.split(key, 5)

    x = jax.random.normal(kx, (B, S, D), dtype=jnp.float32)
    w1 = jax.random.normal(k1, (D, H), dtype=jnp.float32) * 0.05
    b1 = jax.random.normal(k2, (1, H), dtype=jnp.float32) * 0.01
    w2 = jax.random.normal(k3, (H, D), dtype=jnp.float32) * 0.05
    b2 = jax.random.normal(k4, (1, D), dtype=jnp.float32) * 0.01

    out = residual_feedforward(x, w1, b1, w2, b2)
    out = jax.block_until_ready(out)

    ref = _reference(x, w1, b1, w2, b2)
    assert out.shape == x.shape and out.dtype == x.dtype
    # bf16 MXU operands with f32 accumulation -> looser tolerance vs f32 ref.
    assert jnp.allclose(out, ref, atol=2e-2, rtol=2e-2), "mismatch vs reference"

    print("KERNEL_OK")
</pallas_src>

<mosaic_0001>
module attributes {stable_mosaic.version = 11 : i64} {
  func.func @_residual_ff_kernel(%arg0: i32, %arg1: memref<256x128xf32, #tpu.memory_space<vmem>>, %arg2: memref<128x512xbf16, #tpu.memory_space<vmem>>, %arg3: memref<1x512xf32, #tpu.memory_space<vmem>>, %arg4: memref<512x128xbf16, #tpu.memory_space<vmem>>, %arg5: memref<1x128xf32, #tpu.memory_space<vmem>>, %arg6: memref<256x128xf32, #tpu.memory_space<vmem>>) attributes {dimension_semantics = [#tpu.dimension_semantics<parallel>], iteration_bounds = array<i64: 2>, scalar_prefetch = 0 : i64, scratch_operands = 0 : i64, tpu.core_type = #tpu.core_type<tc>, window_params = [{transform_indices = @transform_0, window_bounds = array<i64: 256, 128>}, {pipeline_mode = #tpu.pipeline_mode<synchronous>, transform_indices = @transform_1, window_bounds = array<i64: 128, 512>}, {pipeline_mode = #tpu.pipeline_mode<synchronous>, transform_indices = @transform_2, window_bounds = array<i64: 1, 512>}, {pipeline_mode = #tpu.pipeline_mode<synchronous>, transform_indices = @transform_3, window_bounds = array<i64: 512, 128>}, {pipeline_mode = #tpu.pipeline_mode<synchronous>, transform_indices = @transform_4, window_bounds = array<i64: 1, 128>}, {transform_indices = @transform_5, window_bounds = array<i64: 256, 128>}]} {
    %c0 = arith.constant 0 : index
    %c0_0 = arith.constant 0 : index
    %0 = vector.load %arg1[%c0, %c0_0] : memref<256x128xf32, #tpu.memory_space<vmem>>, vector<256x128xf32>
    %1 = arith.truncf %0 : vector<256x128xf32> to vector<256x128xbf16>
    %c0_1 = arith.constant 0 : index
    %c0_2 = arith.constant 0 : index
    %2 = vector.load %arg2[%c0_1, %c0_2] : memref<128x512xbf16, #tpu.memory_space<vmem>>, vector<128x512xbf16>
    %cst = arith.constant dense<0.000000e+00> : vector<256x512xf32>
    %3 = tpu.matmul %1, %2, %cst {dimension_numbers = #tpu.dot_dimension_numbers<[1], [0], [0], [1], [0, 0, 1, 1], [], []>} : vector<256x128xbf16>, vector<128x512xbf16>, vector<256x512xf32> -> vector<256x512xf32>
    %c0_3 = arith.constant 0 : index
    %c0_4 = arith.constant 0 : index
    %4 = vector.load %arg3[%c0_3, %c0_4] : memref<1x512xf32, #tpu.memory_space<vmem>>, vector<1x512xf32>
    %5 = vector.broadcast %4 : vector<1x512xf32> to vector<256x512xf32>
    %6 = arith.addf %3, %5 : vector<256x512xf32>
    %7 = arith.mulf %6, %6 : vector<256x512xf32>
    %8 = arith.mulf %6, %7 : vector<256x512xf32>
    %cst_5 = arith.constant 4.471500e-02 : f32
    %9 = vector.broadcast %cst_5 : f32 to vector<256x512xf32>
    %10 = arith.mulf %9, %8 : vector<256x512xf32>
    %11 = arith.addf %6, %10 : vector<256x512xf32>
    %cst_6 = arith.constant 0.797884583 : f32
    %12 = vector.broadcast %cst_6 : f32 to vector<256x512xf32>
    %13 = arith.mulf %12, %11 : vector<256x512xf32>
    %14 = math.tanh %13 : vector<256x512xf32>
    %cst_7 = arith.constant 1.000000e+00 : f32
    %15 = vector.broadcast %cst_7 : f32 to vector<256x512xf32>
    %16 = arith.addf %15, %14 : vector<256x512xf32>
    %cst_8 = arith.constant 5.000000e-01 : f32
    %17 = vector.broadcast %cst_8 : f32 to vector<256x512xf32>
    %18 = arith.mulf %17, %16 : vector<256x512xf32>
    %19 = arith.mulf %6, %18 : vector<256x512xf32>
    %20 = arith.truncf %19 : vector<256x512xf32> to vector<256x512xbf16>
    %c0_9 = arith.constant 0 : index
    %c0_10 = arith.constant 0 : index
    %21 = vector.load %arg4[%c0_9, %c0_10] : memref<512x128xbf16, #tpu.memory_space<vmem>>, vector<512x128xbf16>
    %cst_11 = arith.constant dense<0.000000e+00> : vector<256x128xf32>
    %22 = tpu.matmul %20, %21, %cst_11 {dimension_numbers = #tpu.dot_dimension_numbers<[1], [0], [0], [1], [0, 0, 1, 1], [], []>} : vector<256x512xbf16>, vector<512x128xbf16>, vector<256x128xf32> -> vector<256x128xf32>
    %c0_12 = arith.constant 0 : index
    %c0_13 = arith.constant 0 : index
    %23 = vector.load %arg5[%c0_12, %c0_13] : memref<1x128xf32, #tpu.memory_space<vmem>>, vector<1x128xf32>
    %24 = vector.broadcast %23 : vector<1x128xf32> to vector<256x128xf32>
    %25 = arith.addf %22, %24 : vector<256x128xf32>
    %26 = arith.addf %25, %0 : vector<256x128xf32>
    %c0_14 = arith.constant 0 : index
    %c0_15 = arith.constant 0 : index
    %27 = vector.load %arg6[%c0_14, %c0_15] : memref<256x128xf32, #tpu.memory_space<vmem>>, vector<256x128xf32>
    tpu.vector_store %arg6[%c0_14, %c0_15], %26 {strides = array<i32>} : memref<256x128xf32, #tpu.memory_space<vmem>>, vector<256x128xf32>,
    return
  }
  func.func @transform_0(%arg0: i32) -> (i32, i32) {
    %c0_i32 = arith.constant 0 : i32
    %c0_i32_0 = arith.constant 0 : i32
    return %arg0, %c0_i32 : i32, i32
  }
  func.func @transform_1(%arg0: i32) -> (i32, i32) {
    %c0_i32 = arith.constant 0 : i32
    %c0_i32_0 = arith.constant 0 : i32
    %c0_i32_1 = arith.constant 0 : i32
    return %c0_i32, %c0_i32_0 : i32, i32
  }
  func.func @transform_2(%arg0: i32) -> (i32, i32) {
    %c0_i32 = arith.constant 0 : i32
    %c0_i32_0 = arith.constant 0 : i32
    %c0_i32_1 = arith.constant 0 : i32
    return %c0_i32, %c0_i32_0 : i32, i32
  }
  func.func @transform_3(%arg0: i32) -> (i32, i32) {
    %c0_i32 = arith.constant 0 : i32
    %c0_i32_0 = arith.constant 0 : i32
    %c0_i32_1 = arith.constant 0 : i32
    return %c0_i32, %c0_i32_0 : i32, i32
  }
  func.func @transform_4(%arg0: i32) -> (i32, i32) {
    %c0_i32 = arith.constant 0 : i32
    %c0_i32_0 = arith.constant 0 : i32
    %c0_i32_1 = arith.constant 0 : i32
    return %c0_i32, %c0_i32_0 : i32, i32
  }
  func.func @transform_5(%arg0: i32) -> (i32, i32) {
    %c0_i32 = arith.constant 0 : i32
    %c0_i32_0 = arith.constant 0 : i32
    return %arg0, %c0_i32 : i32, i32
  }
}

</mosaic_0001>

<bundles_post_ra>
// kernel: tpu_custom_call.1
= control target key start
LH: loop header
LB: loop body
LE: loop exit
PB: predicated region body
PF: predicated region fallthrough
CT: control target
= control target key end

     0   :  { %10 = vsyncpa [#allocation3], 0  ;;  %s5762_s0 = inlined_call_operand.hbm [shape: f32[512,128], index: 0, kind: input, shape index: {}]   ;;  %s5763_s1 = inlined_call_operand.hbm [shape: bf16[128,512], index: 1, kind: input, shape index: {}]   ;;  %s5764_s2 = inlined_call_operand.hbm [shape: f32[1,512], index: 2, kind: input, shape index: {}]   ;;  %s5765_s3 = inlined_call_operand.hbm [shape: bf16[512,128], index: 3, kind: input, shape index: {}]   ;;  %s5766_s4 = inlined_call_operand.vmem [shape: f32[1,128], index: 4, kind: input, shape index: {}]   ;;  %s5767_s5 = inlined_call_operand.hbm [shape: f32[512,128], index: 5, kind: output, shape index: {}]  }
   0x1   :  { %12 = vsyncpa [#allocation3 + $0x1], 0 }
   0x2   :  { %13 = vsyncpa [#allocation6], 0 }
   0x3   :  { %14 = vsyncpa [#allocation9], 0 }
   0x4   :  { %15 = vsyncpa [#allocation4], 0 }
   0x5   :  { %17 = vsyncpa [#allocation4 + $0x1], 0  ;;  %s3906_s18 = smov 0   ;;  %s3908_s19 = smov 0  }
   0x6   :  { %s3910_s20 = smov 0   ;;  %s3912_s21 = smov 0  }
   0x7 LB: > { %s3927_s22 = sadd.s32 4294967295, %s3860_s21   ;;  %s2917_s23 = sadd.s32 4294967294, %s3860_s21   ;;  %s3860_s21 = sphi %s3912_s21, %s6086_s21   ;;  %s3856_s20 = sphi %s3910_s20, %s6085_s20   ;;  %s3852_s19 = sphi %s3908_s19, %s6084_s19   ;;  %s3848_s18 = sphi %s3906_s18, %s6083_s18  }
   0x8   : > { %p43_p0 = scmp.ne.s32.totalorder %s3852_s19, %s3848_s18  ;;  %p5768_p1 = scmp.eq.s32.totalorder %s3927_s22, 0 }
   0x9   : > { %p157_p3 = scmp.eq.s32.totalorder %s2917_s23, 1  ;;  %p2918_p5 = scmp.ge.s32.totalorder %s3860_s21, 1 }
   0xa   : > { %p3936_p4 = por %p5768_p1, %p43_p0  ;;  %p164_p7 = scmp.lt.s32.totalorder %s3860_s21, 3 }
   0xb   : > { %p3941_p6 = por %p157_p3, %p43_p0  ;;  %s3862_s27 = smov [#allocation5]  }
   0xc   : > { %s5845_s24 = scalar_select %p3936_p4, 1, 0 }
   0xd   : > { %s5846_s25 = scalar_select %p3941_p6, 1, 0 }
   0xe   : > { %p3946_p8 = pnand %p2918_p5, %p164_p7  ;;  %s176_s28 = sshll.u32 %s3862_s27, 4  ;;  %s177_s28 = int_to_ptr.vmem [resolvable:$true] %s176_s28 }
   0xf   : > { %s3863_s30 = smov [#allocation7]   ;;  %s3864_s7 = smov [#allocation8]  }
  0x10   : > { %s5847_s26 = scalar_select %p3946_p8, 1, 0 }
  0x11   : > { %p3244_p9 = pneg %p3946_p8  ;;  %s190_s6 = sshll.u32 %s3863_s30, 4  ;;  %s191_s6 = int_to_ptr.vmem [resolvable:$true] %s190_s6 }
  0x12   : > { %s200_s8 = sshll.u32 %s3864_s7, 4  ;;  %s3693_s9 = scalar_lea.vmem %s177_s28, 4096  ;;  %s201_s8 = int_to_ptr.vmem [resolvable:$true] %s200_s8 }
  0x13   : > { %p3955_p11 = pnand %p3244_p9, %p5768_p1  ;;  %p3694_p13 = scmp.ne.s32.totalorder %s177_s28, %s3693_s9 }
  0x14   : > { %p3701_p5 = scmp.lt.s32.totalorder %s177_s28, %s177_s28  ;;  %p3702_p7 = scmp.lt.s32.totalorder %s3693_s9, %s3693_s9 }
  0x15   : > { %p3684_p12 = pneg %p3955_p11 }
  0x16   : > { %p3703_p9 = por %p3702_p7, %p3701_p5 }
  0x17   : > { %p3696_p0 = pnand %p3694_p13, %p3684_p12 }
  0x19   : > { %p3697_p3 = pneg %p3696_p0 }
  0x1b   : > { %p3704_p10 = pnand %p3703_p9, %p3697_p3 }
  0x1d   : > { %3707 = shalt.err (!%p3704_p10)
}
  0x1e   : > { %s3865_s10 = smov 256   ;;  %s3866_s11 = smov 16  }
  0x1f   : > { %3247 = dma.hbm_to_vmem [thread:$0]  (!%p3955_p11), %s5763_s1, 4096, %s177_s28, [#allocation6], %s3865_s10, %s3865_s10, %s3866_s11  }
  0x20   : > { %s3719_s14 = scalar_lea.vmem %s191_s6, 64  ;;  %p3727_p2 = scmp.lt.s32.totalorder %s191_s6, %s191_s6 }
  0x21   : > { %p3720_p1 = scmp.ne.s32.totalorder %s191_s6, %s3719_s14  ;;  %p3728_p6 = scmp.lt.s32.totalorder %s3719_s14, %s3719_s14 }
  0x23   : > { %p3722_p13 = pnand %p3720_p1, %p3684_p12  ;;  %p3729_p5 = por %p3728_p6, %p3727_p2 }
  0x25   : > { %p3723_p0 = pneg %p3722_p13 }
  0x27   : > { %p3730_p3 = pnand %p3729_p5, %p3723_p0 }
  0x29   : > { %3733 = shalt.err (!%p3730_p3)
}
  0x2a   : > { %3250 = dma.hbm_to_vmem [thread:$0]  (!%p3955_p11), %s5764_s2, 64, %s191_s6, [#allocation6]  }
  0x2b   : > { %s3745_s17 = scalar_lea.vmem %s201_s8, 4096  ;;  %p3753_p9 = scmp.lt.s32.totalorder %s201_s8, %s201_s8 }
  0x2c   : > { %p3746_p10 = scmp.ne.s32.totalorder %s201_s8, %s3745_s17  ;;  %p3754_p13 = scmp.lt.s32.totalorder %s3745_s17, %s3745_s17 }
  0x2e   : > { %p3748_p7 = pnand %p3746_p10, %p3684_p12  ;;  %p3755_p4 = por %p3754_p13, %p3753_p9 }
  0x30   : > { %p3749_p1 = pneg %p3748_p7 }
  0x32   : > { %p3756_p2 = pnand %p3755_p4, %p3749_p1 }
  0x34   : > { %3759 = shalt.err (!%p3756_p2)
}
  0x35   : > { %s3867_s23 = smov 64   ;;  %s3868_s27 = smov 4  }
  0x36   : > { %3253 = dma.hbm_to_vmem [thread:$0]  (!%p3955_p11), %s5765_s3, 4096, %s201_s8, [#allocation9], %s3867_s23, %s3867_s23, %s3868_s27  }
  0x37   : > { %s3986_s6 = sadd.s32 1, %s3860_s21   ;;  %s30_s9 = sadd.s32 1, %s3856_s20 }
  0x38   : > { %s27_s7 = ssub.s32 %s3860_s21, %s3986_s6  ;;  %p37_p6 = scmp.ne.s32.totalorder %s3856_s20, %s3852_s19 }
  0x39   : > { %p28_p4 = scmp.eq.s32.totalorder %s27_s7, 0  ;;  %p38_p12 = scmp.eq.s32.totalorder %s3860_s21, 0 }
  0x3a   : > { %p3265_p0 = scmp.lt.s32.totalorder %s3860_s21, 2  ;;  %p5849_p3 = scmp.eq.s32.totalorder %s3927_s22, 1 }
  0x3b   : > { %s3996_s10 = scalar_select %p28_p4, %s3856_s20, %s30_s9  }
  0x3c   : > { %p39_p5 = por %p38_p12, %p37_p6  ;;  %p4000_p10 = por %p5849_p3, %p37_p6 }
  0x3d   : > { %s217_s29 = sand.u32 1, %s3856_s20   ;;  %s3002_s12 = sshll.u32 %s3860_s21, 12 }
  0x3e   : > { %s5850_s11 = scalar_select %p4000_p10, 1, 0 }
  0x3f   : > { %s2923_s8 = sshll.u32 %s217_s29, 8  ;;  %s4009_s15 = scalar_lea.hbm %s5762_s0, %s3002_s12 }
  0x40   : > { %s221_s16 = scalar_lea.vmem [#allocation2], %s2923_s8  ;;  %p4011_p11 = pnand %p3265_p0, %p39_p5 }
  0x41   : > { %s228_s17 = sshll.u32 %s221_s16, 4  ;;  %s4017_s27 = scalar_lea.sflag [#allocation3], %s217_s29  ;;  %s4015_s17 = int_to_ptr.vmem [resolvable:$true] %s228_s17 }
  0x42   : > { %s3760_s28 = scalar_lea.hbm %s4009_s15, 4096  ;;  %p3762_p1 = pneg %p4011_p11 }
  0x43   : > { %p3761_p7 = scmp.ne.s32.totalorder %s4009_s15, %s3760_s28  ;;  %s3765_s9 = scalar_lea.hbm %s5762_s0, 8192 }
  0x44   : > { %p3766_p2 = scmp.lt.s32.totalorder %s4009_s15, %s5762_s0  ;;  %p3767_p4 = scmp.lt.s32.totalorder %s3765_s9, %s3760_s28 }
  0x45   : > { %p3763_p9 = pnand %p3762_p1, %p3761_p7 }
  0x46   : > { %p3768_p6 = por %p3767_p4, %p3766_p2 }
  0x47   : > { %p3764_p13 = pneg %p3763_p9 }
  0x49   : > { %p3769_p12 = pnand %p3768_p6, %p3764_p13 }
  0x4b   : > { %3772 = shalt.err (!%p3769_p12)
}
  0x4c   : > { %s3773_s29 = scalar_lea.vmem %s4015_s17, 4096  ;;  %s3869_s13 = smov [#allocation2]  }
  0x4d   : > { %p3774_p0 = scmp.ne.s32.totalorder %s4015_s17, %s3773_s29  ;;  %s3778_s14 = sshll.u32 %s3869_s13, 4  ;;  %s3779_s14 = int_to_ptr.vmem [resolvable:$false] %s3778_s14 }
  0x4e   : > { %s3780_s16 = scalar_lea.vmem %s3779_s14, 8192  ;;  %p3781_p7 = scmp.lt.s32.totalorder %s4015_s17, %s3779_s14 }
  0x4f   : > { %p3776_p5 = pnand %p3774_p0, %p3762_p1  ;;  %p3782_p9 = scmp.lt.s32.totalorder %s3780_s16, %s3773_s29 }
  0x51   : > { %p3777_p3 = pneg %p3776_p5  ;;  %p3783_p10 = por %p3782_p9, %p3781_p7 }
  0x53   : > { %p3784_p8 = pnand %p3783_p10, %p3777_p3 }
  0x55   : > { %3787 = shalt.err (!%p3784_p8)
}
  0x56   : > { %s3870_s28 = smov 128   ;;  %s3871_s30 = smov 8  }
  0x57   : > { %3257 = dma.hbm_to_vmem [thread:$0]  (!%p4011_p11), %s4009_s15, 4096, %s4015_s17, %s4017_s27, %s3870_s28, %s3870_s28, %s3871_s30  }
  0x58   : > { %p5852_p1 = scmp.ne.s32.totalorder %s5847_s26, 0 }
  0x5a   : > { %240 = sbr.rel (%p5852_p1) target bundleno = 906 (0x38a), region = 40 }
  0x5f   : > { %s4041_s7 = sand.u32 1, %s3852_s19   ;;  %p5853_p8 = scmp.ne.s32.totalorder %s5845_s24, 0 }
  0x60   : > { %s2927_s9 = sshll.u32 %s4041_s7, 8  ;;  %s243_s12 = scalar_lea.sflag [#allocation3], %s4041_s7 }
  0x61   : > { %s4047_s8 = scalar_lea.vmem [#allocation2], %s2927_s9 }
  0x62   : > { %3831 = dma.done.wait (%p5853_p8), %s243_s12, 4096  }
  0x63   : > { %3833 = vsyncadd (%p5853_p8), %s243_s12, 4294963200  ;;  %p5854_p10 = scmp.eq.s32.totalorder %s3927_s22, 0 }
  0x65   : > { %3835 = dma.done.wait (%p5854_p10), [#allocation6], 4160   ;;  %p5855_p11 = pmov %p5854_p10 }
  0x66   : > { %p5856_p13 = pmov %p5854_p10 }
  0x67   : > { %3837 = vsyncadd (%p5855_p11), [#allocation6], 4294963136 }
  0x68   : > { %3839 = dma.done.wait (%p5856_p13), [#allocation9], 4096   ;;  %p5857_p2 = pmov %p5854_p10 }
  0x69   : > { %v3872_v0 = vmov 0   ;;  %v3314_v1 = vld [vmem:[#allocation5 + $0xe4] ss:$16 sps:$4 sm:$0xff]   ;;  %v3316_v2 = vld [vmem:[#allocation5 + $0xec] ss:$16 sps:$4 sm:$0xff]   ;;  %s5608_s15 = scalar_lea.vmem [#allocation10], %s2927_s9 }
  0x6a   : > { %3841 = vsyncadd (%p5857_p2), [#allocation9], 4294963200  ;;  %582 = vmatprep.mubr.bf16.mxu0 %v3872_v0  ;;  %775 = vmatprep.mubr.bf16.mxu1 %v3872_v0  ;;  %v3318_v3 = vld [vmem:[#allocation5 + $0xe0] ss:$16 sps:$4 sm:$0xff]   ;;  %v3319_v4 = vld [vmem:[#allocation5 + $0xe8] ss:$16 sps:$4 sm:$0xff]  }
  0x6b   : > { %550 = vmatprep.subr.bf16.mxu0 %v3314_v1  ;;  %743 = vmatprep.subr.bf16.mxu1 %v3316_v2  ;;  %v3320_v5 = vld [vmem:[#allocation5 + $0xc4] ss:$16 sps:$4 sm:$0xff]   ;;  %v3322_v6 = vld [vmem:[#allocation5 + $0xcc] ss:$16 sps:$4 sm:$0xff]   ;;  %v3324_v7 = vld [vmem:[#allocation5 + $0xc0] ss:$16 sps:$4 sm:$0xff]  }
  0x6c   : > { %551 = vmatpush1.bf16.msra.mxu0 %v3318_v3  ;;  %744 = vmatpush1.bf16.msra.mxu1 %v3319_v4  ;;  %v3325_v8 = vld [vmem:[#allocation5 + $0xc8] ss:$16 sps:$4 sm:$0xff]   ;;  %v3326_v9 = vld [vmem:[#allocation5 + $0xa4] ss:$16 sps:$4 sm:$0xff]   ;;  %v3328_v10 = vld [vmem:[#allocation5 + $0xac] ss:$16 sps:$4 sm:$0xff]  }
  0x6d   : > { %552 = vmatprep.subr.bf16.mxu0 %v3320_v5  ;;  %745 = vmatprep.subr.bf16.mxu1 %v3322_v6  ;;  %v3330_v11 = vld [vmem:[#allocation5 + $0xa0] ss:$16 sps:$4 sm:$0xff]   ;;  %v3331_v12 = vld [vmem:[#allocation5 + $0xa8] ss:$16 sps:$4 sm:$0xff]   ;;  %v3332_v13 = vld [vmem:[#allocation5 + $0x84] ss:$16 sps:$4 sm:$0xff]  }
  0x6e   : > { %v3334_v14 = vld [vmem:[#allocation5 + $0x8c] ss:$16 sps:$4 sm:$0xff]   ;;  %v3336_v15 = vld [vmem:[#allocation5 + $0x80] ss:$16 sps:$4 sm:$0xff]   ;;  %v3337_v16 = vld [vmem:[#allocation5 + $0x88] ss:$16 sps:$4 sm:$0xff]  }
  0x6f   : > { %v3338_v17 = vld [vmem:[#allocation5 + $0x64] ss:$16 sps:$4 sm:$0xff]   ;;  %v3340_v18 = vld [vmem:[#allocation5 + $0x6c] ss:$16 sps:$4 sm:$0xff]   ;;  %v3342_v19 = vld [vmem:[#allocation5 + $0x60] ss:$16 sps:$4 sm:$0xff]  }
  0x70   : > { %553 = vmatpush1.bf16.msra.mxu0 %v3324_v7  ;;  %746 = vmatpush1.bf16.msra.mxu1 %v3325_v8  ;;  %v3343_v20 = vld [vmem:[#allocation5 + $0x68] ss:$16 sps:$4 sm:$0xff]   ;;  %v3344_v21 = vld [vmem:[#allocation5 + $0x44] ss:$16 sps:$4 sm:$0xff]   ;;  %v3346_v22 = vld [vmem:[#allocation5 + $0x4c] ss:$16 sps:$4 sm:$0xff]  }
  0x71   : > { %554 = vmatprep.subr.bf16.mxu0 %v3326_v9  ;;  %747 = vmatprep.subr.bf16.mxu1 %v3328_v10  ;;  %v3348_v23 = vld [vmem:[#allocation5 + $0x40] ss:$16 sps:$4 sm:$0xff]   ;;  %v3349_v24 = vld [vmem:[#allocation5 + $0x48] ss:$16 sps:$4 sm:$0xff]   ;;  %v3350_v25 = vld [vmem:[#allocation5 + $0x24] ss:$16 sps:$4 sm:$0xff]  }
  0x72   : > { %v3352_v26 = vld [vmem:[#allocation5 + $0x2c] ss:$16 sps:$4 sm:$0xff]   ;;  %v3354_v27 = vld [vmem:[#allocation5 + $0x20] ss:$16 sps:$4 sm:$0xff]   ;;  %v3355_v28 = vld [vmem:[#allocation5 + $0x28] ss:$16 sps:$4 sm:$0xff]  }
  0x73   : > { %v3356_v29 = vld [vmem:[#allocation5 + $0x4] ss:$16 sps:$4 sm:$0xff]   ;;  %v3358_v30 = vld [vmem:[#allocation5 + $0xc] ss:$16 sps:$4 sm:$0xff]   ;;  %v3360_v31 = vld [vmem:[#allocation5] ss:$16 sps:$4 sm:$0xff]  }
  0x74   : > { %555 = vmatpush1.bf16.msra.mxu0 %v3330_v11  ;;  %748 = vmatpush1.bf16.msra.mxu1 %v3331_v12  ;;  %v3361_v32 = vld [vmem:[#allocation5 + $0x8] ss:$16 sps:$4 sm:$0xff]   ;;  %v288_v33 = vld [vmem:[%s4047_s8] sm:$0xff]  ;;  %v290_v40 = vld [vmem:[%s4047_s8 + $0x10] sm:$0xff]  ;;  %s3003_s17 = sshll.u32 %s3927_s22, 12  ;;  %s2815_s23 = sshll.u32 %s5608_s15, 4  ;;  %s5717_s23 = int_to_ptr.vmem [resolvable:$true] %s2815_s23 }
  0x75   : > { %556 = vmatprep.subr.bf16.mxu0 %v3332_v13  ;;  %749 = vmatprep.subr.bf16.mxu1 %v3334_v14  ;;  %v289_v34 = vld [vmem:[%s4047_s8 + $0x8] sm:$0xff]  ;;  %v3362_v36 = vld [vmem:[#allocation8 + $0x78] sm:$0xff]   ;;  %v3366_v42 = vld [vmem:[#allocation8 + $0x70] sm:$0xff]   ;;  %s5715_s13 = scalar_lea.hbm %s5767_s5, %s3003_s17  ;;  %s2802_s14 = scalar_lea.sflag [#allocation4], %s4041_s7 }
  0x76   : > { %v320_v35 = vpack.c.bf16 %v289_v34, %v288_v33  ;;  %v3363_v37 = vld [vmem:[#allocation8 + $0x38] sm:$0xff]   ;;  %v3367_v43 = vld [vmem:[#allocation8 + $0x30] sm:$0xff]   ;;  %v3370_v47 = vld [vmem:[#allocation8 + $0x68] sm:$0xff]   ;;  %s3788_s16 = scalar_lea.vmem %s5717_s23, 4096  ;;  %p6080_p6 = scmp.ne.s32.totalorder %s5850_s11, 0 }
  0x77   : > { %v3364_v38 = vld [vmem:[#allocation8 + $0xf8] sm:$0xff]   ;;  %v3368_v44 = vld [vmem:[#allocation8 + $0xf0] sm:$0xff]   ;;  %v3371_v48 = vld [vmem:[#allocation8 + $0x28] sm:$0xff]   ;;  %p3789_p4 = scmp.ne.s32.totalorder %s5717_s23, %s3788_s16  ;;  %s3873_s22 = smov [#allocation10]  }
  0x78   : > { %557 = vmatpush1.bf16.msra.mxu0 %v3336_v15  ;;  %750 = vmatpush1.bf16.msra.mxu1 %v3337_v16  ;;  %v3365_v39 = vld [vmem:[#allocation8 + $0xb8] sm:$0xff]   ;;  %v3369_v46 = vld [vmem:[#allocation8 + $0xb0] sm:$0xff]   ;;  %v293_v50 = vld [vmem:[%s4047_s8 + $0x28] sm:$0xff]  ;;  %s3792_s28 = sshll.u32 %s3873_s22, 4  ;;  %s3793_s28 = int_to_ptr.vmem [resolvable:$false] %s3792_s28 }
  0x79   : > { %558 = vmatprep.subr.bf16.mxu0 %v3338_v17  ;;  %751 = vmatprep.subr.bf16.mxu1 %v3340_v18  ;;  %v291_v41 = vld [vmem:[%s4047_s8 + $0x18] sm:$0xff]  ;;  %v292_v49 = vld [vmem:[%s4047_s8 + $0x20] sm:$0xff]  ;;  %v3372_v51 = vld [vmem:[#allocation8 + $0xe8] sm:$0xff]   ;;  %p3790_p12 = pnand %p3789_p4, %p6080_p6  ;;  %s3794_s30 = scalar_lea.vmem %s3793_s28, 8192 }
  0x7a   : > { %v321_v45 = vpack.c.bf16 %v291_v41, %v290_v40  ;;  %v3373_v52 = vld [vmem:[#allocation8 + $0xa8] sm:$0xff]   ;;  %v3374_v53 = vld [vmem:[#allocation8 + $0x60] sm:$0xff]   ;;  %v322_v56 = vpack.c.bf16 %v293_v50, %v292_v49  ;;  %v3378_v58 = vld [vmem:[#allocation8 + $0x58] sm:$0xff]   ;;  %v370_v50 = vlaneseq  ;;  %p3795_p5 = scmp.lt.s32.totalorder %s5717_s23, %s3793_s28  ;;  %p3796_p3 = scmp.lt.s32.totalorder %s3794_s30, %s3788_s16 }
  0x7b   : > { %v3375_v54 = vld [vmem:[#allocation8 + $0x20] sm:$0xff]   ;;  %v3379_v59 = vld [vmem:[#allocation8 + $0x18] sm:$0xff]   ;;  %v294_v60 = vld [vmem:[%s4047_s8 + $0x30] sm:$0xff]  ;;  %p3791_p0 = pneg %p3790_p12 }
  0x7c   : > { %559 = vmatpush1.bf16.msra.mxu0 %v3342_v19  ;;  %752 = vmatpush1.bf16.msra.mxu1 %v3343_v20  ;;  %v3376_v55 = vld [vmem:[#allocation8 + $0xe0] sm:$0xff]   ;;  %v295_v61 = vld [vmem:[%s4047_s8 + $0x38] sm:$0xff]  ;;  %v298_v9 = vld [vmem:[%s4047_s8 + $0x50] sm:$0xff]  ;;  %p3797_p7 = por %p3796_p3, %p3795_p5 }
  0x7d   : > { %560 = vmatprep.subr.bf16.mxu0 %v3344_v21  ;;  %753 = vmatprep.subr.bf16.mxu1 %v3346_v22  ;;  %v3377_v57 = vld [vmem:[#allocation8 + $0xa0] sm:$0xff]   ;;  %v3380_v62 = vld [vmem:[#allocation8 + $0xd8] sm:$0xff]   ;;  %v3382_v1 = vld [vmem:[#allocation8 + $0x50] sm:$0xff]   ;;  %v323_v4 = vpack.c.bf16 %v295_v61, %v294_v60 }
  0x7e   : > { %v3381_v63 = vld [vmem:[#allocation8 + $0x98] sm:$0xff]   ;;  %v3383_v2 = vld [vmem:[#allocation8 + $0x10] sm:$0xff]   ;;  %v297_v7 = vld [vmem:[%s4047_s8 + $0x48] sm:$0xff]  ;;  %p3798_p9 = pnand %p3797_p7, %p3791_p0 }
  0x7f   : > { %v3384_v3 = vld [vmem:[#allocation8 + $0xd0] sm:$0xff]   ;;  %v296_v6 = vld [vmem:[%s4047_s8 + $0x40] sm:$0xff]  ;;  %v301_v13 = vld [vmem:[%s4047_s8 + $0x68] sm:$0xff] }
  0x80   : > { %561 = vmatpush1.bf16.msra.mxu0 %v3348_v23  ;;  %754 = vmatpush1.bf16.msra.mxu1 %v3349_v24  ;;  %v3385_v5 = vld [vmem:[#allocation8 + $0x90] sm:$0xff]   ;;  %v324_v8 = vpack.c.bf16 %v297_v7, %v296_v6  ;;  %v300_v12 = vld [vmem:[%s4047_s8 + $0x60] sm:$0xff]  ;;  %v305_v19 = vld [vmem:[%s4047_s8 + $0x88] sm:$0xff] }
  0x81   : > { %562 = vmatprep.subr.bf16.mxu0 %v3350_v25  ;;  %755 = vmatprep.subr.bf16.mxu1 %v3352_v26  ;;  %v299_v10 = vld [vmem:[%s4047_s8 + $0x58] sm:$0xff]  ;;  %v326_v14 = vpack.c.bf16 %v301_v13, %v300_v12  ;;  %v302_v15 = vld [vmem:[%s4047_s8 + $0x70] sm:$0xff]  ;;  %v304_v18 = vld [vmem:[%s4047_s8 + $0x80] sm:$0xff] }
  0x82   : > { %v325_v11 = vpack.c.bf16 %v299_v10, %v298_v9  ;;  %v303_v16 = vld [vmem:[%s4047_s8 + $0x78] sm:$0xff]  ;;  %v328_v20 = vpack.c.bf16 %v305_v19, %v304_v18  ;;  %v306_v21 = vld [vmem:[%s4047_s8 + $0x90] sm:$0xff]  ;;  %v308_v24 = vld [vmem:[%s4047_s8 + $0xa0] sm:$0xff] }
  0x83   : > { %v327_v17 = vpack.c.bf16 %v303_v16, %v302_v15  ;;  %v307_v22 = vld [vmem:[%s4047_s8 + $0x98] sm:$0xff]  ;;  %v309_v25 = vld [vmem:[%s4047_s8 + $0xa8] sm:$0xff]  ;;  %v314_v33 = vld [vmem:[%s4047_s8 + $0xd0] sm:$0xff] }
  0x84   : > { %563 = vmatpush1.bf16.msra.mxu0 %v3354_v27  ;;  %756 = vmatpush1.bf16.msra.mxu1 %v3355_v28  ;;  %v329_v23 = vpack.c.bf16 %v307_v22, %v306_v21  ;;  %v330_v26 = vpack.c.bf16 %v309_v25, %v308_v24  ;;  %v310_v27 = vld [vmem:[%s4047_s8 + $0xb0] sm:$0xff]  ;;  %v311_v28 = vld [vmem:[%s4047_s8 + $0xb8] sm:$0xff]  ;;  %v316_v40 = vld [vmem:[%s4047_s8 + $0xe0] sm:$0xff] }
  0x85   : > { %564 = vmatprep.subr.bf16.mxu0 %v3356_v29  ;;  %757 = vmatprep.subr.bf16.mxu1 %v3358_v30  ;;  %v331_v29 = vpack.c.bf16 %v311_v28, %v310_v27  ;;  %v312_v30 = vld [vmem:[%s4047_s8 + $0xc0] sm:$0xff]  ;;  %v315_v34 = vld [vmem:[%s4047_s8 + $0xd8] sm:$0xff]  ;;  %v317_v41 = vld [vmem:[%s4047_s8 + $0xe8] sm:$0xff] }
  0x86   : > { %v3393_v49 = vld [vmem:[#allocation8 + $0x80] sm:$0xff]  }
  0x88   : > { %565 = vmatpush1.bf16.msra.mxu0 %v3360_v31  ;;  %758 = vmatpush1.bf16.msra.mxu1 %v3361_v32  ;;  %v313_v31 = vld [vmem:[%s4047_s8 + $0xc8] sm:$0xff] }
  0x89   : > { %3004 = vmatprep.subr.bf16.mxu0 %v3362_v36  ;;  %3116 = vmatprep.subr.bf16.mxu1 %v3364_v38  ;;  %v332_v32 = vpack.c.bf16 %v313_v31, %v312_v30  ;;  %v3386_v36 = vld [vmem:[#allocation8 + $0x48] sm:$0xff]  }
  0x8a   : > { %v3388_v38 = vld [vmem:[#allocation8 + $0xc8] sm:$0xff]  }
  0x8b   : > { %583 = vmatmul.mubr.bf16.vlgmr.msra.gmra.mxu0 %v320_v35  ;;  %776 = vmatmul.mubr.bf16.vlgmr.msra.gmra.mxu1 %v320_v35  ;;  %v333_v35 = vpack.c.bf16 %v315_v34, %v314_v33 }
  0x8c   : > { %592 = vmatprep.mubr.bf16.mxu0 %v3872_v0  ;;  %785 = vmatprep.mubr.bf16.mxu1 %v3872_v0 }
  0x8d   : > { %3005 = vmatpush3.bf16.msra.mxu0 %v3363_v37  ;;  %3117 = vmatpush3.bf16.msra.mxu1 %v3365_v39  ;;  %v3387_v37 = vld [vmem:[#allocation8 + $0x8] sm:$0xff]  }
  0x8e   : > { %3006 = vmatprep.subr.bf16.mxu0 %v3366_v42  ;;  %3118 = vmatprep.subr.bf16.mxu1 %v3368_v44  ;;  %v3389_v39 = vld [vmem:[#allocation8 + $0x88] sm:$0xff]   ;;  %v334_v42 = vpack.c.bf16 %v317_v41, %v316_v40  ;;  %v319_v44 = vld [vmem:[%s4047_s8 + $0xf8] sm:$0xff] }
  0x91   : > { %3007 = vmatpush3.bf16.msra.mxu0 %v3367_v43  ;;  %3119 = vmatpush3.bf16.msra.mxu1 %v3369_v46  ;;  %v318_v43 = vld [vmem:[%s4047_s8 + $0xf0] sm:$0xff]  ;;  %v3390_v46 = vld [vmem:[#allocation8 + $0x40] sm:$0xff]  }
  0x92   : > { %3008 = vmatprep.subr.bf16.mxu0 %v3370_v47  ;;  %3120 = vmatprep.subr.bf16.mxu1 %v3372_v51  ;;  %v3392_v47 = vld [vmem:[#allocation8 + $0xc0] sm:$0xff]   ;;  %v371_v51 = vshrl.u32 %v370_v50, 7 }
  0x93   : > { %593 = vmatmul.mubr.bf16.gmra.mxu0 %v321_v45  ;;  %786 = vmatmul.mubr.bf16.gmra.mxu1 %v321_v45  ;;  %v335_v45 = vpack.c.bf16 %v319_v44, %v318_v43 }
  0x94   : > { %602 = vmatprep.mubr.bf16.mxu0 %v3872_v0  ;;  %795 = vmatprep.mubr.bf16.mxu1 %v3872_v0 }
  0x95   : > { %3009 = vmatpush3.bf16.msra.mxu0 %v3371_v48  ;;  %3121 = vmatpush3.bf16.msra.mxu1 %v3373_v52  ;;  %v3391_v48 = vld [vmem:[#allocation8] sm:$0xff]   ;;  %v372_v52 = vsub.s32 0, %v371_v51 }
  0x96   : > { %3010 = vmatprep.subr.bf16.mxu0 %v3374_v53  ;;  %3122 = vmatprep.subr.bf16.mxu1 %v3376_v55  ;;  %v380_v53 = vsub.s32 2, %v371_v51  ;;  %v376_v55 = vsub.s32 1, %v371_v51 }
  0x99   : > { %3011 = vmatpush3.bf16.msra.mxu0 %v3375_v54  ;;  %3123 = vmatpush3.bf16.msra.mxu1 %v3377_v57  ;;  %v368_v54 = vld [vmem:[#allocation7] sm:$0xf] }
  0x9a   : > { %3012 = vmatprep.subr.bf16.mxu0 %v3378_v58  ;;  %3124 = vmatprep.subr.bf16.mxu1 %v3380_v62  ;;  %v4127_v57 = vrot.slane %v368_v54, %v380_v53  ;;  %v4129_v58 = vrot.slane %v368_v54, %v376_v55 }
  0x9b   : > { %603 = vmatmul.mubr.bf16.gmra.mxu0 %v322_v56  ;;  %796 = vmatmul.mubr.bf16.gmra.mxu1 %v322_v56  ;;  %v4125_v56 = vrot.slane %v368_v54, %v372_v52 }
  0x9c   : > { %612 = vmatprep.mubr.bf16.mxu0 %v3872_v0  ;;  %805 = vmatprep.mubr.bf16.mxu1 %v3872_v0 }
  0x9d   : > { %3013 = vmatpush3.bf16.msra.mxu0 %v3379_v59  ;;  %3125 = vmatpush3.bf16.msra.mxu1 %v3381_v63 }
  0x9e   : > { %3014 = vmatprep.subr.bf16.mxu0 %v3382_v1  ;;  %3126 = vmatprep.subr.bf16.mxu1 %v3384_v3 }
  0xa1   : > { %3015 = vmatpush3.bf16.msra.mxu0 %v3383_v2  ;;  %3127 = vmatpush3.bf16.msra.mxu1 %v3385_v5 }
  0xa2   : > { %3016 = vmatprep.subr.bf16.mxu0 %v3386_v36  ;;  %3128 = vmatprep.subr.bf16.mxu1 %v3388_v38 }
  0xa3   : > { %613 = vmatmul.mubr.bf16.gmra.mxu0 %v323_v4  ;;  %806 = vmatmul.mubr.bf16.gmra.mxu1 %v323_v4 }
  0xa4   : > { %622 = vmatprep.mubr.bf16.mxu0 %v3872_v0  ;;  %815 = vmatprep.mubr.bf16.mxu1 %v3872_v0 }
  0xa5   : > { %3017 = vmatpush3.bf16.msra.mxu0 %v3387_v37  ;;  %3129 = vmatpush3.bf16.msra.mxu1 %v3389_v39 }
  0xa6   : > { %3018 = vmatprep.subr.bf16.mxu0 %v3390_v46  ;;  %3130 = vmatprep.subr.bf16.mxu1 %v3392_v47 }
  0xa9   : > { %3019 = vmatpush3.bf16.msra.mxu0 %v3391_v48  ;;  %3131 = vmatpush3.bf16.msra.mxu1 %v3393_v49 }
  0xab   : > { %623 = vmatmul.mubr.bf16.gmra.mxu0 %v324_v8  ;;  %816 = vmatmul.mubr.bf16.gmra.mxu1 %v324_v8 }
  0xac   : > { %632 = vmatprep.mubr.bf16.mxu0 %v3872_v0  ;;  %825 = vmatprep.mubr.bf16.mxu1 %v3872_v0 }
  0xb3   : > { %633 = vmatmul.mubr.bf16.gmra.mxu0 %v325_v11  ;;  %826 = vmatmul.mubr.bf16.gmra.mxu1 %v325_v11 }
  0xb4   : > { %642 = vmatprep.mubr.bf16.mxu0 %v3872_v0  ;;  %835 = vmatprep.mubr.bf16.mxu1 %v3872_v0 }
  0xbb   : > { %643 = vmatmul.mubr.bf16.gmra.mxu0 %v326_v14  ;;  %836 = vmatmul.mubr.bf16.gmra.mxu1 %v326_v14 }
  0xbc   : > { %652 = vmatprep.mubr.bf16.mxu0 %v3872_v0  ;;  %845 = vmatprep.mubr.bf16.mxu1 %v3872_v0 }
  0xc3   : > { %653 = vmatmul.mubr.bf16.gmra.mxu0 %v327_v17  ;;  %846 = vmatmul.mubr.bf16.gmra.mxu1 %v327_v17 }
  0xc4   : > { %662 = vmatprep.mubr.bf16.mxu0 %v3872_v0  ;;  %855 = vmatprep.mubr.bf16.mxu1 %v3872_v0 }
  0xcb   : > { %663 = vmatmul.mubr.bf16.gmra.mxu0 %v328_v20  ;;  %856 = vmatmul.mubr.bf16.gmra.mxu1 %v328_v20 }
  0xcc   : > { %672 = vmatprep.mubr.bf16.mxu0 %v3872_v0  ;;  %865 = vmatprep.mubr.bf16.mxu1 %v3872_v0 }
  0xd3   : > { %673 = vmatmul.mubr.bf16.gmra.mxu0 %v329_v23  ;;  %866 = vmatmul.mubr.bf16.gmra.mxu1 %v329_v23 }
  0xd4   : > { %682 = vmatprep.mubr.bf16.mxu0 %v3872_v0  ;;  %875 = vmatprep.mubr.bf16.mxu1 %v3872_v0 }
  0xdb   : > { %683 = vmatmul.mubr.bf16.gmra.mxu0 %v330_v26  ;;  %876 = vmatmul.mubr.bf16.gmra.mxu1 %v330_v26 }
  0xdc   : > { %692 = vmatprep.mubr.bf16.mxu0 %v3872_v0  ;;  %885 = vmatprep.mubr.bf16.mxu1 %v3872_v0 }
  0xe3   : > { %693 = vmatmul.mubr.bf16.gmra.mxu0 %v331_v29  ;;  %886 = vmatmul.mubr.bf16.gmra.mxu1 %v331_v29 }
  0xe4   : > { %702 = vmatprep.mubr.bf16.mxu0 %v3872_v0  ;;  %895 = vmatprep.mubr.bf16.mxu1 %v3872_v0 }
  0xeb   : > { %703 = vmatmul.mubr.bf16.gmra.mxu0 %v332_v32  ;;  %896 = vmatmul.mubr.bf16.gmra.mxu1 %v332_v32 }
  0xec   : > { %712 = vmatprep.mubr.bf16.mxu0 %v3872_v0  ;;  %905 = vmatprep.mubr.bf16.mxu1 %v3872_v0 }
  0xf3   : > { %713 = vmatmul.mubr.bf16.gmra.mxu0 %v333_v35  ;;  %906 = vmatmul.mubr.bf16.gmra.mxu1 %v333_v35 }
  0xf4   : > { %722 = vmatprep.mubr.bf16.mxu0 %v3872_v0  ;;  %915 = vmatprep.mubr.bf16.mxu1 %v3872_v0 }
  0xfb   : > { %723 = vmatmul.mubr.bf16.gmra.mxu0 %v334_v42  ;;  %916 = vmatmul.mubr.bf16.gmra.mxu1 %v334_v42 }
  0xfc   : > { %732 = vmatprep.mubr.bf16.mxu0 %v3872_v0  ;;  %925 = vmatprep.mubr.bf16.mxu1 %v3872_v0  ;;  %v384_v0 = vsub.s32 3, %v371_v51 }
  0xfe   : > { %v4131_v59 = vrot.slane %v368_v54, %v384_v0 }
 0x103   : > { %733 = vmatmul.mubr.bf16.gmra.mxu0 %v335_v45  ;;  %926 = vmatmul.mubr.bf16.gmra.mxu1 %v335_v45 }
 0x14b   : > { %v584_v60 = vpop.f32.mrf.mxu0  ;;  %v777_v61 = vpop.f32.mrf.mxu1 }
 0x14c   : > { %v4134_v62 = vadd.f32 %v584_v60, %v4125_v56  ;;  %v4137_v63 = vadd.f32 %v777_v61, %v4127_v57 }
 0x14d   : > { %v586_v1 = vpop.f32.mrf.mxu0  ;;  %v779_v2 = vpop.f32.mrf.mxu1 }
 0x14e   : > { %v936_v3 = vmul.f32 %v4134_v62, %v4134_v62  ;;  %v938_v4 = vmul.f32 %v4137_v63, %v4137_v63  ;;  %v4144_v5 = vadd.f32 %v586_v1, %v4129_v58  ;;  %v4147_v6 = vadd.f32 %v779_v2, %v4131_v59 }
 0x14f   : > { %v588_v7 = vpop.f32.mrf.mxu0  ;;  %v781_v8 = vpop.f32.mrf.mxu1 }
 0x150   : > { %v1064_v9 = vmul.f32 %v936_v3, %v4134_v62  ;;  %v1066_v10 = vmul.f32 %v938_v4, %v4137_v63  ;;  %v937_v11 = vmul.f32 %v4144_v5, %v4144_v5  ;;  %v939_v12 = vmul.f32 %v4147_v6, %v4147_v6 }
 0x151   : > { %v4156_v13 = vadd.f32 %v588_v7, %v4125_v56  ;;  %v4159_v14 = vadd.f32 %v781_v8, %v4127_v57  ;;  %v590_v15 = vpop.f32.mrf.mxu0  ;;  %v783_v16 = vpop.f32.mrf.mxu1 }
 0x152   : > { %v1192_v17 = vmul.f32 0.044715, %v1064_v9  ;;  %v1194_v18 = vmul.f32 0.044715, %v1066_v10  ;;  %v1065_v19 = vmul.f32 %v937_v11, %v4144_v5  ;;  %v1067_v20 = vmul.f32 %v939_v12, %v4147_v6 }
 0x153   : > { %v940_v21 = vmul.f32 %v4156_v13, %v4156_v13  ;;  %v942_v22 = vmul.f32 %v4159_v14, %v4159_v14  ;;  %v4168_v23 = vadd.f32 %v590_v15, %v4129_v58  ;;  %v4171_v24 = vadd.f32 %v783_v16, %v4131_v59  ;;  %v594_v25 = vpop.f32.mrf.mxu0  ;;  %v787_v26 = vpop.f32.mrf.mxu1 }
 0x154   : > { %v1320_v27 = vadd.f32 %v1192_v17, %v4134_v62  ;;  %v1322_v28 = vadd.f32 %v1194_v18, %v4137_v63  ;;  %v1193_v29 = vmul.f32 0.044715, %v1065_v19  ;;  %v1195_v30 = vmul.f32 0.044715, %v1067_v20 }
 0x155   : > { %v1068_v31 = vmul.f32 %v940_v21, %v4156_v13  ;;  %v1070_v32 = vmul.f32 %v942_v22, %v4159_v14  ;;  %v941_v33 = vmul.f32 %v4168_v23, %v4168_v23  ;;  %v943_v34 = vmul.f32 %v4171_v24, %v4171_v24  ;;  %v596_v35 = vpop.f32.mrf.mxu0  ;;  %v789_v36 = vpop.f32.mrf.mxu1 }
 0x156   : > { %v1448_v37 = vmul.f32 0.7978846, %v1320_v27  ;;  %v1450_v38 = vmul.f32 0.7978846, %v1322_v28  ;;  %v1321_v39 = vadd.f32 %v1193_v29, %v4144_v5  ;;  %v1323_v40 = vadd.f32 %v1195_v30, %v4147_v6 }
 0x157   : > { %v1196_v41 = vmul.f32 0.044715, %v1068_v31  ;;  %v1198_v42 = vmul.f32 0.044715, %v1070_v32  ;;  %v1069_v43 = vmul.f32 %v941_v33, %v4168_v23  ;;  %v1071_v44 = vmul.f32 %v943_v34, %v4171_v24  ;;  %v598_v45 = vpop.f32.mrf.mxu0  ;;  %v791_v49 = vpop.f32.mrf.mxu1 }
 0x158   : > { %3394 = vtanh.f32 %v1448_v37  ;;  %v1449_v46 = vmul.f32 0.7978846, %v1321_v39  ;;  %v1451_v47 = vmul.f32 0.7978846, %v1323_v40  ;;  %v4186_v48 = vadd.f32 %v594_v25, %v4125_v56 }
 0x159   : > { %3396 = vtanh.f32 %v1450_v38  ;;  %v1324_v50 = vadd.f32 %v1196_v41, %v4156_v13  ;;  %v1326_v51 = vadd.f32 %v1198_v42, %v4159_v14  ;;  %v1197_v52 = vmul.f32 0.044715, %v1069_v43  ;;  %v600_v1 = vpop.f32.mrf.mxu0  ;;  %v793_v8 = vpop.f32.mrf.mxu1 }
 0x15a   : > { %3398 = vtanh.f32 %v1449_v46  ;;  %v1199_v53 = vmul.f32 0.044715, %v1071_v44  ;;  %v944_v54 = vmul.f32 %v4186_v48, %v4186_v48  ;;  %v4193_v55 = vadd.f32 %v787_v26, %v4127_v57 }
 0x15b   : > { %3400 = vtanh.f32 %v1451_v47  ;;  %v1452_v0 = vmul.f32 0.7978846, %v1324_v50  ;;  %v1454_v60 = vmul.f32 0.7978846, %v1326_v51  ;;  %v1325_v61 = vadd.f32 %v1197_v52, %v4168_v23  ;;  %v604_v20 = vpop.f32.mrf.mxu0  ;;  %v4220_v26 = vpop.f32.mrf.mxu1 }
 0x15c   : > { %v1327_v2 = vadd.f32 %v1199_v53, %v4171_v24  ;;  %v1072_v3 = vmul.f32 %v944_v54, %v4186_v48  ;;  %v946_v4 = vmul.f32 %v4193_v55, %v4193_v55  ;;  %v4201_v7 = vadd.f32 %v596_v35, %v4129_v58 }
 0x15d   : > { %3402 = vtanh.f32 %v1452_v0  ;;  %v1453_v9 = vmul.f32 0.7978846, %v1325_v61  ;;  %v4204_v10 = vadd.f32 %v789_v36, %v4131_v59  ;;  %v4207_v11 = vadd.f32 %v598_v45, %v4125_v56  ;;  %v606_v39 = vpop.f32.mrf.mxu0  ;;  %v799_v43 = vpop.f32.mrf.mxu1 }
 0x15e   : > { %3404 = vtanh.f32 %v1454_v60  ;;  %v1455_v12 = vmul.f32 0.7978846, %v1327_v2  ;;  %v1200_v15 = vmul.f32 0.044715, %v1072_v3  ;;  %v1074_v16 = vmul.f32 %v946_v4, %v4193_v55 }
 0x15f   : > { %3406 = vtanh.f32 %v1453_v9  ;;  %v945_v17 = vmul.f32 %v4201_v7, %v4201_v7  ;;  %v947_v18 = vmul.f32 %v4204_v10, %v4204_v10  ;;  %v948_v19 = vmul.f32 %v4207_v11, %v4207_v11  ;;  %v608_v2 = vpop.f32.mrf.mxu0 }
 0x160   : > { %3408 = vtanh.f32 %v1455_v12  ;;  %v1328_v21 = vadd.f32 %v1200_v15, %v4186_v48  ;;  %v1202_v22 = vmul.f32 0.044715, %v1074_v16  ;;  %v4218_v25 = vadd.f32 %v791_v49, %v4127_v57  ;;  %v801_v15 = vpop.f32.mrf.mxu1 }
 0x161   : > { %v1073_v27 = vmul.f32 %v945_v17, %v4201_v7  ;;  %v1075_v28 = vmul.f32 %v947_v18, %v4204_v10  ;;  %v1076_v29 = vmul.f32 %v948_v19, %v4207_v11  ;;  %v4226_v30 = vadd.f32 %v600_v1, %v4129_v58 }
 0x162   : > { %v1456_v31 = vmul.f32 0.7978846, %v1328_v21  ;;  %v1330_v32 = vadd.f32 %v1202_v22, %v4193_v55  ;;  %v950_v33 = vmul.f32 %v4218_v25, %v4218_v25  ;;  %v4232_v34 = vadd.f32 %v793_v8, %v4131_v59 }
 0x163   : > { %v1201_v35 = vmul.f32 0.044715, %v1073_v27  ;;  %v1203_v36 = vmul.f32 0.044715, %v1075_v28  ;;  %v1204_v37 = vmul.f32 0.044715, %v1076_v29  ;;  %v949_v38 = vmul.f32 %v4226_v30, %v4226_v30 }
 0x164   : > { %3410 = vtanh.f32 %v1456_v31  ;;  %v1458_v40 = vmul.f32 0.7978846, %v1330_v32  ;;  %v1078_v41 = vmul.f32 %v950_v33, %v4218_v25  ;;  %v951_v42 = vmul.f32 %v4232_v34, %v4232_v34  ;;  %v610_v32 = vpop.f32.mrf.mxu0 }
 0x165   : > { %v3395_v44 = vpop.eup %3394  ;;  %v1329_v45 = vadd.f32 %v1201_v35, %v4201_v7  ;;  %v1331_v46 = vadd.f32 %v1203_v36, %v4204_v10  ;;  %v1332_v47 = vadd.f32 %v1204_v37, %v4207_v11  ;;  %v1077_v49 = vmul.f32 %v949_v38, %v4226_v30  ;;  %v803_v37 = vpop.f32.mrf.mxu1 }
 0x166   : > { %v3397_v50 = vpop.eup %3396  ;;  %v1704_v51 = vadd.f32 1.0, %v3395_v44  ;;  %3412 = vtanh.f32 %v1458_v40  ;;  %v1206_v52 = vmul.f32 0.044715, %v1078_v41  ;;  %v1079_v53 = vmul.f32 %v951_v42, %v4232_v34 }
 0x167   : > { %v4244_v54 = vpop.eup %3398  ;;  %v1706_v0 = vadd.f32 1.0, %v3397_v50  ;;  %v1457_v60 = vmul.f32 0.7978846, %v1329_v45  ;;  %v1459_v61 = vmul.f32 0.7978846, %v1331_v46  ;;  %v4247_v1 = vadd.f32 %v604_v20, %v4125_v56  ;;  %v614_v50 = vpop.f32.mrf.mxu0 }
 0x168   : > { %v4249_v3 = vpop.eup %3400  ;;  %v1832_v4 = vmul.f32 0.5, %v1704_v51  ;;  %v1460_v8 = vmul.f32 0.7978846, %v1332_v47  ;;  %v1334_v9 = vadd.f32 %v1206_v52, %v4218_v25  ;;  %v1205_v12 = vmul.f32 0.044715, %v1077_v49 }
 0x169   : > { %5858 = vst [vmem:[#allocation15_spill] sm:$0xff] %v4247_v1  ;;  %v1834_v16 = vmul.f32 0.5, %v1706_v0  ;;  %3414 = vtanh.f32 %v1457_v60  ;;  %v1207_v17 = vmul.f32 0.044715, %v1079_v53  ;;  %v952_v18 = vmul.f32 %v4247_v1, %v4247_v1 }
 0x16a   : > { %v3403_v19 = vpop.eup %3402  ;;  %v4255_v21 = vmul.f32 %v1832_v4, %v4134_v62  ;;  %3416 = vtanh.f32 %v1459_v61  ;;  %v1462_v20 = vmul.f32 0.7978846, %v1334_v9  ;;  %v1333_v22 = vadd.f32 %v1205_v12, %v4226_v30 }
 0x16b   : > { %v3405_v27 = vpop.eup %3404  ;;  %v4259_v28 = vmul.f32 %v1834_v16, %v4137_v63  ;;  %v1708_v29 = vadd.f32 1.0, %v3403_v19  ;;  %3418 = vtanh.f32 %v1460_v8  ;;  %v1335_v31 = vadd.f32 %v1207_v17, %v4232_v34 }
 0x16c   : > { %v4262_v33 = vpop.eup %3406  ;;  %v1710_v35 = vadd.f32 1.0, %v3405_v27  ;;  %3420 = vtanh.f32 %v1462_v20  ;;  %v1461_v36 = vmul.f32 0.7978846, %v1333_v22  ;;  %v1080_v62 = vmul.f32 %v952_v18, %v4247_v1 }
 0x16d   : > { %v4265_v38 = vpop.eup %3408  ;;  %v1836_v40 = vmul.f32 0.5, %v1708_v29  ;;  %v1463_v41 = vmul.f32 0.7978846, %v1335_v31  ;;  %v4269_v63 = vadd.f32 %v4220_v26, %v4127_v57  ;;  %v4272_v42 = vadd.f32 %v606_v39, %v4129_v58 }
 0x16e   : > { %v1838_v44 = vmul.f32 0.5, %v1710_v35  ;;  %3422 = vtanh.f32 %v1461_v36  ;;  %v1208_v45 = vmul.f32 0.044715, %v1080_v62  ;;  %v4275_v46 = vadd.f32 %v799_v43, %v4131_v59 }
 0x16f   : > { %5859 = vst [vmem:[#allocation16_spill] sm:$0xff] %v4269_v63  ;;  %v4278_v47 = vmul.f32 %v1836_v40, %v4156_v13  ;;  %3424 = vtanh.f32 %v1463_v41  ;;  %v954_v49 = vmul.f32 %v4269_v63, %v4269_v63  ;;  %v953_v26 = vmul.f32 %v4272_v42, %v4272_v42  ;;  %v807_v13 = vpop.f32.mrf.mxu1 }
 0x170   : > { %5860 = vst [vmem:[#allocation17_spill] sm:$0xff] %v4275_v46  ;;  %v4285_v39 = vmul.f32 %v1838_v44, %v4159_v14  ;;  %v1336_v51 = vadd.f32 %v1208_v45, %v4247_v1  ;;  %v955_v43 = vmul.f32 %v4275_v46, %v4275_v46  ;;  %v4291_v52 = vadd.f32 %v608_v2, %v4125_v56 }
 0x171   : > { %v4293_v53 = vpop.eup %3410  ;;  %v1082_v60 = vmul.f32 %v954_v49, %v4269_v63  ;;  %v1081_v61 = vmul.f32 %v953_v26, %v4272_v42  ;;  %v4300_v14 = vadd.f32 %v801_v15, %v4127_v57  ;;  %v4312_v19 = vadd.f32 %v610_v32, %v4129_v58  ;;  %v616_v15 = vpop.f32.mrf.mxu0 }
 0x172   : > { %5861 = vst [vmem:[#allocation18_spill] sm:$0xff] %v4291_v52  ;;  %v1464_v8 = vmul.f32 0.7978846, %v1336_v51  ;;  %v1083_v2 = vmul.f32 %v955_v43, %v4275_v46  ;;  %v956_v9 = vmul.f32 %v4291_v52, %v4291_v52  ;;  %v4316_v27 = vadd.f32 %v803_v37, %v4131_v59  ;;  %v809_v29 = vpop.f32.mrf.mxu1 }
 0x173   : > { %5862 = vst [vmem:[#allocation19_spill] sm:$0xff] %v4300_v14  ;;  %v4307_v12 = vpop.eup %3412  ;;  %v1210_v16 = vmul.f32 0.044715, %v1082_v60  ;;  %v1209_v17 = vmul.f32 0.044715, %v1081_v61  ;;  %v958_v18 = vmul.f32 %v4300_v14, %v4300_v14  ;;  %v957_v62 = vmul.f32 %v4312_v19, %v4312_v19  ;;  %v618_v60 = vpop.f32.mrf.mxu0 }
 0x174   : > { %3426 = vtanh.f32 %v1464_v8  ;;  %v1211_v20 = vmul.f32 0.044715, %v1083_v2  ;;  %v1084_v22 = vmul.f32 %v956_v9, %v4291_v52  ;;  %5863 = vst [vmem:[#allocation20_spill] sm:$0xff] %v4316_v27  ;;  %v959_v44 = vmul.f32 %v4316_v27, %v4316_v27 }
 0x175   : > { %v1338_v31 = vadd.f32 %v1210_v16, %v4269_v63  ;;  %v1337_v35 = vadd.f32 %v1209_v17, %v4272_v42  ;;  %v1086_v36 = vmul.f32 %v958_v18, %v4300_v14  ;;  %v4329_v37 = vadd.f32 %v614_v50, %v4125_v56  ;;  %v811_v50 = vpop.f32.mrf.mxu1 }
 0x176   : > { %v4323_v32 = vpop.eup %3414  ;;  %v1339_v40 = vadd.f32 %v1211_v20, %v4275_v46  ;;  %v1212_v41 = vmul.f32 0.044715, %v1084_v22  ;;  %v1085_v43 = vmul.f32 %v957_v62, %v4312_v19  ;;  %v1087_v9 = vmul.f32 %v959_v44, %v4316_v27 }
 0x177   : > { %5864 = vst [vmem:[#allocation21_spill] sm:$0xff] %v4329_v37  ;;  %v4331_v45 = vpop.eup %3416  ;;  %v1466_v49 = vmul.f32 0.7978846, %v1338_v31  ;;  %v1465_v26 = vmul.f32 0.7978846, %v1337_v35  ;;  %v960_v16 = vmul.f32 %v4329_v37, %v4329_v37  ;;  %v4344_v22 = vadd.f32 %v807_v13, %v4127_v57 }
 0x178   : > { %v1214_v51 = vmul.f32 0.044715, %v1086_v36  ;;  %v4334_v61 = vpop.eup %3418  ;;  %v1467_v8 = vmul.f32 0.7978846, %v1339_v40  ;;  %v1340_v2 = vadd.f32 %v1212_v41, %v4291_v52  ;;  %v1213_v20 = vmul.f32 0.044715, %v1085_v43 }
 0x179   : > { %v4340_v17 = vpop.eup %3420  ;;  %3428 = vtanh.f32 %v1466_v49  ;;  %5865 = vst [vmem:[#allocation22_spill] sm:$0xff] %v4344_v22  ;;  %v1215_v35 = vmul.f32 0.044715, %v1087_v9  ;;  %v1088_v36 = vmul.f32 %v960_v16, %v4329_v37  ;;  %v962_v44 = vmul.f32 %v4344_v22, %v4344_v22  ;;  %v620_v49 = vpop.f32.mrf.mxu0 }
 0x17a   : > { %v1342_v18 = vadd.f32 %v1214_v51, %v4300_v14  ;;  %3430 = vtanh.f32 %v1465_v26  ;;  %v1468_v31 = vmul.f32 0.7978846, %v1340_v2  ;;  %v1341_v41 = vadd.f32 %v1213_v20, %v4312_v19  ;;  %v813_v2 = vpop.f32.mrf.mxu1 }
 0x17b   : > { %v4347_v62 = vpop.eup %3422  ;;  %3432 = vtanh.f32 %v1467_v8  ;;  %v1343_v13 = vadd.f32 %v1215_v35, %v4316_v27  ;;  %v1216_v26 = vmul.f32 0.044715, %v1088_v36  ;;  %v4356_v43 = vadd.f32 %v616_v15, %v4129_v58 }
 0x17c   : > { %v1470_v40 = vmul.f32 0.7978846, %v1342_v18  ;;  %v4352_v51 = vpop.eup %3424  ;;  %3434 = vtanh.f32 %v1468_v31  ;;  %v1469_v9 = vmul.f32 0.7978846, %v1341_v41  ;;  %v1090_v8 = vmul.f32 %v962_v44, %v4344_v22  ;;  %v624_v41 = vpop.f32.mrf.mxu0 }
 0x17d   : > { %5866 = vst [vmem:[#allocation23_spill] sm:$0xff] %v4356_v43  ;;  %v4360_v16 = vadd.f32 %v809_v29, %v4131_v59  ;;  %v1471_v18 = vmul.f32 0.7978846, %v1343_v13  ;;  %v1344_v20 = vadd.f32 %v1216_v26, %v4329_v37  ;;  %v961_v31 = vmul.f32 %v4356_v43, %v4356_v43  ;;  %v817_v26 = vpop.f32.mrf.mxu1 }
 0x17e   : > { %3436 = vtanh.f32 %v1470_v40  ;;  %v4366_v35 = vadd.f32 %v618_v60, %v4125_v56  ;;  %v1218_v15 = vmul.f32 0.044715, %v1090_v8  ;;  %v4371_v40 = vadd.f32 %v811_v50, %v4127_v57 }
 0x17f   : > { %5867 = vst [vmem:[#allocation24_spill] sm:$0xff] %v4360_v16  ;;  %3438 = vtanh.f32 %v1469_v9  ;;  %v963_v36 = vmul.f32 %v4360_v16, %v4360_v16  ;;  %v1472_v29 = vmul.f32 0.7978846, %v1344_v20  ;;  %v1089_v44 = vmul.f32 %v961_v31, %v4356_v43 }
 0x180   : > { %5868 = vst [vmem:[#allocation25_spill] sm:$0xff] %v4366_v35  ;;  %5869 = vst [vmem:[#allocation26_spill] sm:$0xff] %v4371_v40  ;;  %3440 = vtanh.f32 %v1471_v18  ;;  %v964_v13 = vmul.f32 %v4366_v35, %v4366_v35  ;;  %v1346_v60 = vadd.f32 %v1218_v15, %v4344_v22  ;;  %v966_v8 = vmul.f32 %v4371_v40, %v4371_v40 }
 0x181   : > { %v4376_v4 = vpop.eup %3426  ;;  %v1091_v9 = vmul.f32 %v963_v36, %v4360_v16  ;;  %v4383_v50 = vadd.f32 %v620_v49, %v4129_v58  ;;  %3442 = vtanh.f32 %v1472_v29  ;;  %v1217_v18 = vmul.f32 0.044715, %v1089_v44  ;;  %v626_v36 = vpop.f32.mrf.mxu0 }
 0x182   : > { %5870 = vst [vmem:[#allocation27_spill] sm:$0xff] %v4376_v4  ;;  %v1092_v20 = vmul.f32 %v964_v13, %v4366_v35  ;;  %v4387_v31 = vadd.f32 %v813_v2, %v4131_v59  ;;  %v1474_v0 = vmul.f32 0.7978846, %v1346_v60  ;;  %v1094_v14 = vmul.f32 %v966_v8, %v4371_v40  ;;  %v819_v44 = vpop.f32.mrf.mxu1 }
 0x183   : > { %5871 = vst [vmem:[#allocation28_spill] sm:$0xff] %v4383_v50  ;;  %v1219_v37 = vmul.f32 0.044715, %v1091_v9  ;;  %v965_v15 = vmul.f32 %v4383_v50, %v4383_v50  ;;  %v1345_v22 = vadd.f32 %v1217_v18, %v4356_v43  ;;  %v4396_v29 = vadd.f32 %v624_v41, %v4125_v56 }
 0x184   : > { %5872 = vst [vmem:[#allocation29_spill] sm:$0xff] %v4387_v31  ;;  %v1220_v63 = vmul.f32 0.044715, %v1092_v20  ;;  %v967_v49 = vmul.f32 %v4387_v31, %v4387_v31  ;;  %3444 = vtanh.f32 %v1474_v0  ;;  %v1222_v13 = vmul.f32 0.044715, %v1094_v14 }
 0x185   : > { %5873 = vst [vmem:[#allocation30_spill] sm:$0xff] %v4396_v29  ;;  %v1347_v2 = vadd.f32 %v1219_v37, %v4360_v16  ;;  %v1093_v60 = vmul.f32 %v965_v15, %v4383_v50  ;;  %v1473_v8 = vmul.f32 0.7978846, %v1345_v22  ;;  %v968_v20 = vmul.f32 %v4396_v29, %v4396_v29  ;;  %v628_v37 = vpop.f32.mrf.mxu0 }
 0x186   : > { %v4400_v9 = vpop.eup %3428  ;;  %v1348_v52 = vadd.f32 %v1220_v63, %v4366_v35  ;;  %v1095_v18 = vmul.f32 %v967_v49, %v4387_v31  ;;  %v1350_v0 = vadd.f32 %v1222_v13, %v4371_v40  ;;  %v4410_v14 = vadd.f32 %v817_v26, %v4127_v57  ;;  %v821_v35 = vpop.f32.mrf.mxu1 }
 0x187   : > { %5874 = vst [vmem:[#allocation31_spill] sm:$0xff] %v4400_v9  ;;  %v4406_v43 = vpop.eup %3430  ;;  %v1475_v41 = vmul.f32 0.7978846, %v1347_v2  ;;  %v1221_v1 = vmul.f32 0.044715, %v1093_v60  ;;  %3446 = vtanh.f32 %v1473_v8  ;;  %v1096_v49 = vmul.f32 %v968_v20, %v4396_v29 }
 0x188   : > { %5875 = vst [vmem:[#allocation32_spill] sm:$0xff] %v4410_v14  ;;  %v4412_v15 = vpop.eup %3432  ;;  %v1476_v22 = vmul.f32 0.7978846, %v1348_v52  ;;  %v1223_v63 = vmul.f32 0.044715, %v1095_v18  ;;  %v970_v13 = vmul.f32 %v4410_v14, %v4410_v14  ;;  %v4424_v52 = vadd.f32 %v626_v36, %v4129_v58  ;;  %v823_v36 = vpop.f32.mrf.mxu1 }
 0x189   : > { %v4415_v16 = vpop.eup %3434  ;;  %3448 = vtanh.f32 %v1475_v41  ;;  %v1478_v9 = vmul.f32 0.7978846, %v1350_v0  ;;  %v1349_v2 = vadd.f32 %v1221_v1, %v4383_v50  ;;  %v1224_v8 = vmul.f32 0.044715, %v1096_v49  ;;  %v630_v1 = vpop.f32.mrf.mxu0 }
 0x18a   : > { %5876 = vst [vmem:[#allocation33_spill] sm:$0xff] %v4415_v16  ;;  %3450 = vtanh.f32 %v1476_v22  ;;  %v1351_v60 = vadd.f32 %v1223_v63, %v4387_v31  ;;  %5878 = vst [vmem:[#allocation35_spill] sm:$0xff] %v4424_v52  ;;  %v1098_v20 = vmul.f32 %v970_v13, %v4410_v14  ;;  %v4428_v41 = vadd.f32 %v819_v44, %v4131_v59 }
 0x18b   : > { %v4420_v26 = vpop.eup %3436  ;;  %3452 = vtanh.f32 %v1478_v9  ;;  %v1477_v18 = vmul.f32 0.7978846, %v1349_v2  ;;  %v1352_v50 = vadd.f32 %v1224_v8, %v4396_v29  ;;  %v969_v22 = vmul.f32 %v4424_v52, %v4424_v52 }
 0x18c   : > { %5877 = vst [vmem:[#allocation34_spill] sm:$0xff] %v4420_v26  ;;  %5879 = vst [vmem:[#allocation36_spill] sm:$0xff] %v4428_v41  ;;  %v4430_v0 = vpop.eup %3438  ;;  %v1479_v40 = vmul.f32 0.7978846, %v1351_v60  ;;  %v4436_v63 = vadd.f32 %v628_v37, %v4125_v56  ;;  %v1226_v49 = vmul.f32 0.044715, %v1098_v20  ;;  %v971_v44 = vmul.f32 %v4428_v41, %v4428_v41  ;;  %v827_v26 = vpop.f32.mrf.mxu1 }
 0x18d   : > { %v4438_v9 = vpop.eup %3440  ;;  %3454 = vtanh.f32 %v1477_v18  ;;  %v4443_v2 = vadd.f32 %v821_v35, %v4127_v57  ;;  %v1480_v13 = vmul.f32 0.7978846, %v1352_v50  ;;  %v1097_v60 = vmul.f32 %v969_v22, %v4424_v52  ;;  %v634_v35 = vpop.f32.mrf.mxu0 }
 0x18e   : > { %5880 = vst [vmem:[#allocation37_spill] sm:$0xff] %v4436_v63  ;;  %3456 = vtanh.f32 %v1479_v40  ;;  %v972_v8 = vmul.f32 %v4436_v63, %v4436_v63  ;;  %v4448_v37 = vpop.eup %3442  ;;  %v1354_v29 = vadd.f32 %v1226_v49, %v4410_v14  ;;  %v1099_v18 = vmul.f32 %v971_v44, %v4428_v41 }
 0x18f   : > { %5881 = vst [vmem:[#allocation38_spill] sm:$0xff] %v4443_v2  ;;  %5882 = vst [vmem:[#allocation39_spill] sm:$0xff] %v4448_v37  ;;  %v974_v20 = vmul.f32 %v4443_v2, %v4443_v2  ;;  %v4455_v31 = vadd.f32 %v630_v1, %v4129_v58  ;;  %3458 = vtanh.f32 %v1480_v13  ;;  %v1225_v40 = vmul.f32 0.044715, %v1097_v60 }
 0x190   : > { %v1100_v50 = vmul.f32 %v972_v8, %v4436_v63  ;;  %v4459_v22 = vadd.f32 %v823_v36, %v4131_v59  ;;  %v1482_v37 = vmul.f32 0.7978846, %v1354_v29  ;;  %v1227_v16 = vmul.f32 0.044715, %v1099_v18 }
 0x191   : > { %5883 = vst [vmem:[#allocation40_spill] sm:$0xff] %v4455_v31  ;;  %v1102_v49 = vmul.f32 %v974_v20, %v4443_v2  ;;  %v973_v44 = vmul.f32 %v4455_v31, %v4455_v31  ;;  %v4464_v14 = vpop.eup %3444  ;;  %v1353_v1 = vadd.f32 %v1225_v40, %v4424_v52  ;;  %v4470_v60 = vadd.f32 %v634_v35, %v4125_v56  ;;  %v829_v52 = vpop.f32.mrf.mxu1 }
 0x192   : > { %5884 = vst [vmem:[#allocation41_spill] sm:$0xff] %v4459_v22  ;;  %5885 = vst [vmem:[#allocation42_spill] sm:$0xff] %v4464_v14  ;;  %v1228_v27 = vmul.f32 0.044715, %v1100_v50  ;;  %v975_v13 = vmul.f32 %v4459_v22, %v4459_v22  ;;  %3460 = vtanh.f32 %v1482_v37  ;;  %v1355_v29 = vadd.f32 %v1227_v16, %v4428_v41  ;;  %v636_v50 = vpop.f32.mrf.mxu0 }
 0x193   : > { %5886 = vst [vmem:[#allocation43_spill] sm:$0xff] %v4470_v60  ;;  %v1230_v36 = vmul.f32 0.044715, %v1102_v49  ;;  %v1101_v8 = vmul.f32 %v973_v44, %v4455_v31  ;;  %v1481_v18 = vmul.f32 0.7978846, %v1353_v1  ;;  %v976_v40 = vmul.f32 %v4470_v60, %v4470_v60 }
 0x194   : > { %v1356_v20 = vadd.f32 %v1228_v27, %v4436_v63  ;;  %v1103_v14 = vmul.f32 %v975_v13, %v4459_v22  ;;  %v4478_v46 = vpop.eup %3446  ;;  %v1483_v35 = vmul.f32 0.7978846, %v1355_v29  ;;  %v4482_v16 = vadd.f32 %v827_v26, %v4127_v57 }
 0x195   : > { %v1358_v37 = vadd.f32 %v1230_v36, %v4443_v2  ;;  %v1229_v4 = vmul.f32 0.044715, %v1101_v8  ;;  %3462 = vtanh.f32 %v1481_v18  ;;  %v1104_v1 = vmul.f32 %v976_v40, %v4470_v60 }
 0x196   : > { %5887 = vst [vmem:[#allocation44_spill] sm:$0xff] %v4482_v16  ;;  %v4484_v49 = vpop.eup %3448  ;;  %v1484_v27 = vmul.f32 0.7978846, %v1356_v20  ;;  %v1231_v44 = vmul.f32 0.044715, %v1103_v14  ;;  %3464 = vtanh.f32 %v1483_v35  ;;  %v978_v29 = vmul.f32 %v4482_v16, %v4482_v16  ;;  %v638_v14 = vpop.f32.mrf.mxu0 }
 0x197   : > { %v4487_v13 = vpop.eup %3450  ;;  %v1486_v63 = vmul.f32 0.7978846, %v1358_v37  ;;  %v1357_v41 = vadd.f32 %v1229_v4, %v4455_v31  ;;  %v1232_v8 = vmul.f32 0.044715, %v1104_v1  ;;  %v1705_v18 = vadd.f32 1.0, %v4244_v54  ;;  %v831_v20 = vpop.f32.mrf.mxu1 }
 0x198   : > { %5888 = vst [vmem:[#allocation45_spill] sm:$0xff] %v4487_v13  ;;  %v4492_v36 = vpop.eup %3452  ;;  %3466 = vtanh.f32 %v1484_v27  ;;  %v1359_v26 = vadd.f32 %v1231_v44, %v4459_v22  ;;  %v1106_v35 = vmul.f32 %v978_v29, %v4482_v16  ;;  %v1709_v37 = vadd.f32 1.0, %v4262_v33  ;;  %v640_v22 = vpop.f32.mrf.mxu0 }
 0x199   : > { %5889 = vst [vmem:[#allocation46_spill] sm:$0xff] %v4492_v36  ;;  %3468 = vtanh.f32 %v1486_v63  ;;  %v1485_v40 = vmul.f32 0.7978846, %v1357_v41  ;;  %v1360_v31 = vadd.f32 %v1232_v8, %v4470_v60  ;;  %v1833_v36 = vmul.f32 0.5, %v1705_v18  ;;  %v833_v13 = vpop.f32.mrf.mxu1 }
 0x19a   : > { %v4498_v4 = vpop.eup %3454  ;;  %v1487_v2 = vmul.f32 0.7978846, %v1359_v26  ;;  %v1707_v27 = vadd.f32 1.0, %v4249_v3  ;;  %v1234_v54 = vmul.f32 0.044715, %v1106_v35  ;;  %v1837_v1 = vmul.f32 0.5, %v1709_v37 }
 0x19b   : > { %v4502_v44 = vpop.eup %3456  ;;  %3470 = vtanh.f32 %v1485_v40  ;;  %v1711_v63 = vadd.f32 1.0, %v4265_v38  ;;  %v1488_v41 = vmul.f32 0.7978846, %v1360_v31  ;;  %v1961_v29 = vmul.f32 %v1833_v36, %v4144_v5 }
 0x19c   : > { %3472 = vtanh.f32 %v1487_v2  ;;  %v1835_v33 = vmul.f32 0.5, %v1707_v27  ;;  %v4506_v26 = vpop.eup %3458  ;;  %v1362_v8 = vadd.f32 %v1234_v54, %v4482_v16  ;;  %v1965_v3 = vmul.f32 %v1837_v1, %v4168_v23  ;;  %v644_v27 = vpop.f32.mrf.mxu0 }
 0x19d   : > { %v1839_v18 = vmul.f32 0.5, %v1711_v63  ;;  %v4511_v40 = vadd.f32 %v636_v50, %v4129_v58  ;;  %3474 = vtanh.f32 %v1488_v41  ;;  %v4515_v31 = vadd.f32 %v829_v52, %v4131_v59  ;;  %v837_v54 = vpop.f32.mrf.mxu1 }
 0x19e   : > { %v1963_v38 = vmul.f32 %v1835_v33, %v4147_v6  ;;  %v4518_v5 = vadd.f32 %v638_v14, %v4125_v56  ;;  %v1490_v2 = vmul.f32 0.7978846, %v1362_v8  ;;  %v2089_v36 = vpack.c.bf16 %v1965_v3, %v1961_v29 }
 0x19f   : > { %5890 = vst [vmem:[#allocation47_spill] sm:$0xff] %v4511_v40  ;;  %v1967_v35 = vmul.f32 %v1839_v18, %v4171_v24  ;;  %v977_v23 = vmul.f32 %v4511_v40, %v4511_v40  ;;  %v4523_v37 = vpop.eup %3460  ;;  %v979_v50 = vmul.f32 %v4515_v31, %v4515_v31  ;;  %v4530_v52 = vadd.f32 %v831_v20, %v4127_v57 }
 0x1a0   : > { %v980_v6 = vmul.f32 %v4518_v5, %v4518_v5  ;;  %v4533_v14 = vadd.f32 %v640_v22, %v4129_v58  ;;  %3476 = vtanh.f32 %v1490_v2  ;;  %2447 = vmatprep.mubr.bf16.mxu0 %v2089_v36  ;;  %v4537_v63 = vadd.f32 %v833_v13, %v4131_v59 }
 0x1a1   : > { %v2091_v24 = vpack.c.bf16 %v1967_v35, %v1963_v38  ;;  %v1105_v1 = vmul.f32 %v977_v23, %v4511_v40  ;;  %v1107_v41 = vmul.f32 %v979_v50, %v4515_v31  ;;  %v5891_v29 = vpack.c.bf16 %v4278_v47, %v4255_v21 }
 0x1a2   : > { %v1108_v20 = vmul.f32 %v980_v6, %v4518_v5  ;;  %v982_v22 = vmul.f32 %v4530_v52, %v4530_v52  ;;  %v981_v33 = vmul.f32 %v4533_v14, %v4533_v14  ;;  %v4548_v8 = vpop.eup %3462  ;;  %v983_v13 = vmul.f32 %v4537_v63, %v4537_v63 }
 0x1a3   : > { %2448 = vmatmul.mubr.bf16.vlgmr.msra.gmra.mxu0 %v5891_v29  ;;  %2608 = vmatprep.mubr.bf16.mxu1 %v2091_v24  ;;  %v1233_v3 = vmul.f32 0.044715, %v1105_v1  ;;  %v4553_v18 = vadd.f32 %v644_v27, %v4125_v56  ;;  %v4556_v21 = vadd.f32 %v837_v54, %v4127_v57  ;;  %v4558_v47 = vpop.eup %3464  ;;  %v1235_v38 = vmul.f32 0.044715, %v1107_v41 }
 0x1a4   : > { %v5894_v2 = vpack.c.bf16 %v4285_v39, %v4259_v28  ;;  %v1236_v36 = vmul.f32 0.044715, %v1108_v20  ;;  %v1110_v35 = vmul.f32 %v982_v22, %v4530_v52  ;;  %v1109_v23 = vmul.f32 %v981_v33, %v4533_v14 }
 0x1a5   : > { %5892 = vst [vmem:[#allocation48_spill] sm:$0xff] %v4553_v18  ;;  %5893 = vst [vmem:[#allocation49_spill] sm:$0xff] %v4556_v21  ;;  %v4565_v50 = vpop.eup %3466  ;;  %v1361_v6 = vadd.f32 %v1233_v3, %v4511_v40  ;;  %v1111_v27 = vmul.f32 %v983_v13, %v4537_v63  ;;  %v984_v54 = vmul.f32 %v4553_v18, %v4553_v18 }
 0x1a6   : > { %2609 = vmatmul.mubr.bf16.vlgmr.msra.gmra.mxu1 %v5894_v2  ;;  %v986_v24 = vmul.f32 %v4556_v21, %v4556_v21  ;;  %v4573_v1 = vpop.eup %3468  ;;  %v1363_v28 = vadd.f32 %v1235_v38, %v4515_v31  ;;  %v1364_v39 = vadd.f32 %v1236_v36, %v4518_v5  ;;  %v1238_v41 = vmul.f32 0.044715, %v1110_v35 }
 0x1a7   : > { %5895 = vst [vmem:[#allocation50_spill] sm:$0xff] %v4573_v1  ;;  %v1237_v29 = vmul.f32 0.044715, %v1109_v23  ;;  %v1489_v20 = vmul.f32 0.7978846, %v1361_v6  ;;  %v1112_v33 = vmul.f32 %v984_v54, %v4553_v18  ;;  %v646_v54 = vpop.f32.mrf.mxu0 }
 0x1a8   : > { %v1239_v22 = vmul.f32 0.044715, %v1111_v27  ;;  %v1114_v3 = vmul.f32 %v986_v24, %v4556_v21  ;;  %v4579_v13 = vpop.eup %3470  ;;  %v1491_v2 = vmul.f32 0.7978846, %v1363_v28  ;;  %v1492_v16 = vmul.f32 0.7978846, %v1364_v39 }
 0x1a9   : > { %v1366_v60 = vadd.f32 %v1238_v41, %v4530_v52  ;;  %v1365_v40 = vadd.f32 %v1237_v29, %v4533_v14  ;;  %v4583_v1 = vpop.eup %3472  ;;  %3478 = vtanh.f32 %v1489_v20  ;;  %v1240_v36 = vmul.f32 0.044715, %v1112_v33  ;;  %v839_v29 = vpop.f32.mrf.mxu1 }
 0x1aa   : > { %v1367_v38 = vadd.f32 %v1239_v22, %v4537_v63  ;;  %v1242_v35 = vmul.f32 0.044715, %v1114_v3  ;;  %3480 = vtanh.f32 %v1491_v2  ;;  %v1713_v27 = vadd.f32 1.0, %v4323_v32  ;;  %v4587_v24 = vpop.eup %3474 }
 0x1ab   : > { %v1494_v23 = vmul.f32 0.7978846, %v1366_v60  ;;  %v1493_v6 = vmul.f32 0.7978846, %v1365_v40  ;;  %3482 = vtanh.f32 %v1492_v16  ;;  %v1368_v39 = vadd.f32 %v1240_v36, %v4553_v18  ;;  %v648_v36 = vpop.f32.mrf.mxu0  ;;  %v5921_v18 = vld [vmem:[#allocation23_spill] sm:$0xff] }
 0x1ac   : > { %v1495_v28 = vmul.f32 0.7978846, %v1367_v38  ;;  %v1370_v41 = vadd.f32 %v1242_v35, %v4556_v21  ;;  %v1717_v20 = vadd.f32 1.0, %v4347_v62  ;;  %v1841_v22 = vmul.f32 0.5, %v1713_v27 }
 0x1ad   : > { %3484 = vtanh.f32 %v1494_v23  ;;  %v1715_v33 = vadd.f32 1.0, %v4331_v45  ;;  %v1496_v60 = vmul.f32 0.7978846, %v1368_v39  ;;  %v1719_v32 = vadd.f32 1.0, %v4352_v51  ;;  %v4594_v3 = vpop.eup %3476  ;;  %v841_v23 = vpop.f32.mrf.mxu1 }
 0x1ae   : > { %3486 = vtanh.f32 %v1493_v6  ;;  %v1498_v40 = vmul.f32 0.7978846, %v1370_v41  ;;  %v1845_v16 = vmul.f32 0.5, %v1717_v20  ;;  %v1969_v2 = vmul.f32 %v1841_v22, %v4201_v7  ;;  %v650_v22 = vpop.f32.mrf.mxu0 }
 0x1af   : > { %3488 = vtanh.f32 %v1495_v28  ;;  %v1843_v38 = vmul.f32 0.5, %v1715_v33  ;;  %v1847_v35 = vmul.f32 0.5, %v1719_v32  ;;  %v4598_v62 = vadd.f32 %v646_v54, %v4129_v58 }
 0x1b0   : > { %3490 = vtanh.f32 %v1496_v60  ;;  %v4601_v45 = vadd.f32 %v839_v29, %v4131_v59  ;;  %v1973_v51 = vmul.f32 %v1845_v16, %v4226_v30  ;;  %v1712_v27 = vadd.f32 1.0, %v4293_v53  ;;  %v843_v60 = vpop.f32.mrf.mxu1 }
 0x1b1   : > { %3492 = vtanh.f32 %v1498_v40  ;;  %v1971_v6 = vmul.f32 %v1843_v38, %v4204_v10  ;;  %v1975_v7 = vmul.f32 %v1847_v35, %v4232_v34  ;;  %v985_v28 = vmul.f32 %v4598_v62, %v4598_v62 }
 0x1b2   : > { %v987_v54 = vmul.f32 %v4601_v45, %v4601_v45  ;;  %v1716_v39 = vadd.f32 1.0, %v4334_v61  ;;  %v2093_v41 = vpack.c.bf16 %v1973_v51, %v1969_v2  ;;  %v1840_v29 = vmul.f32 0.5, %v1712_v27  ;;  %v654_v27 = vpop.f32.mrf.mxu0 }
 0x1b3   : > { %v1714_v20 = vadd.f32 1.0, %v4307_v12  ;;  %v1718_v30 = vadd.f32 1.0, %v4340_v17  ;;  %v2095_v10 = vpack.c.bf16 %v1975_v7, %v1971_v6  ;;  %v1113_v53 = vmul.f32 %v985_v28, %v4598_v62 }
 0x1b4   : > { %v1115_v34 = vmul.f32 %v987_v54, %v4601_v45  ;;  %v1844_v33 = vmul.f32 0.5, %v1716_v39  ;;  %2455 = vmatprep.mubr.bf16.mxu0 %v2093_v41  ;;  %v1968_v40 = vmul.f32 %v1840_v29, %v4186_v48  ;;  %v4618_v61 = vadd.f32 %v648_v36, %v4125_v56 }
 0x1b5   : > { %v1842_v32 = vmul.f32 0.5, %v1714_v20  ;;  %v1846_v16 = vmul.f32 0.5, %v1718_v30  ;;  %2616 = vmatprep.mubr.bf16.mxu1 %v2095_v10  ;;  %v1241_v12 = vmul.f32 0.044715, %v1113_v53  ;;  %v4622_v38 = vadd.f32 %v841_v23, %v4127_v57 }
 0x1b6   : > { %5896 = vst [vmem:[#allocation51_spill] sm:$0xff] %v4618_v61  ;;  %v1243_v2 = vmul.f32 0.044715, %v1115_v34  ;;  %v1972_v17 = vmul.f32 %v1844_v33, %v4207_v11  ;;  %v4624_v35 = vpop.eup %3478  ;;  %v988_v48 = vmul.f32 %v4618_v61, %v4618_v61  ;;  %v4631_v36 = vadd.f32 %v650_v22, %v4129_v58 }
 0x1b7   : > { %5897 = vst [vmem:[#allocation52_spill] sm:$0xff] %v4622_v38  ;;  %v1970_v51 = vmul.f32 %v1842_v32, %v4193_v55  ;;  %v1974_v6 = vmul.f32 %v1846_v16, %v4218_v25  ;;  %v4633_v7 = vpop.eup %3480  ;;  %v1369_v11 = vadd.f32 %v1241_v12, %v4598_v62  ;;  %v990_v54 = vmul.f32 %v4622_v38, %v4622_v38  ;;  %v847_v55 = vpop.f32.mrf.mxu1 }
 0x1b8   : > { %v1371_v23 = vadd.f32 %v1243_v2, %v4601_v45  ;;  %v2092_v28 = vpack.c.bf16 %v1972_v17, %v1968_v40  ;;  %v4639_v39 = vpop.eup %3482  ;;  %v1116_v41 = vmul.f32 %v988_v48, %v4618_v61  ;;  %v989_v29 = vmul.f32 %v4631_v36, %v4631_v36 }
 0x1b9   : > { %v2094_v25 = vpack.c.bf16 %v1974_v6, %v1970_v51  ;;  %v4645_v20 = vadd.f32 %v843_v60, %v4131_v59  ;;  %v1497_v22 = vmul.f32 0.7978846, %v1369_v11  ;;  %v1118_v53 = vmul.f32 %v990_v54, %v4622_v38 }
 0x1ba   : > { %v4647_v30 = vpop.eup %3484  ;;  %v1499_v10 = vmul.f32 0.7978846, %v1371_v23  ;;  %2456 = vmatmul.mubr.bf16.gmra.mxu0 %v2092_v28  ;;  %v4651_v34 = vadd.f32 %v654_v27, %v4125_v56  ;;  %v1244_v40 = vmul.f32 0.044715, %v1116_v41  ;;  %v1117_v32 = vmul.f32 %v989_v29, %v4631_v36 }
 0x1bb   : > { %v4653_v33 = vpop.eup %3486  ;;  %2617 = vmatmul.mubr.bf16.gmra.mxu1 %v2094_v25  ;;  %v991_v60 = vmul.f32 %v4645_v20, %v4645_v20  ;;  %v4659_v16 = vadd.f32 %v847_v55, %v4127_v57  ;;  %3494 = vtanh.f32 %v1497_v22  ;;  %v1246_v2 = vmul.f32 0.044715, %v1118_v53 }
 0x1bc   : > { %5898 = vst [vmem:[#allocation53_spill] sm:$0xff] %v4651_v34  ;;  %v4661_v12 = vpop.eup %3488  ;;  %v992_v17 = vmul.f32 %v4651_v34, %v4651_v34  ;;  %v1721_v51 = vadd.f32 1.0, %v4406_v43  ;;  %3496 = vtanh.f32 %v1499_v10  ;;  %v1372_v48 = vadd.f32 %v1244_v40, %v4618_v61 }
 0x1bd   : > { %5899 = vst [vmem:[#allocation54_spill] sm:$0xff] %v4659_v16  ;;  %v4666_v6 = vpop.eup %3490  ;;  %v1245_v27 = vmul.f32 0.044715, %v1117_v32  ;;  %v1119_v11 = vmul.f32 %v991_v60, %v4645_v20  ;;  %v1374_v28 = vadd.f32 %v1246_v2, %v4622_v38  ;;  %v994_v55 = vmul.f32 %v4659_v16, %v4659_v16  ;;  %v656_v60 = vpop.f32.mrf.mxu0 }
 0x1be   : > { %v4670_v23 = vpop.eup %3492  ;;  %v1120_v54 = vmul.f32 %v992_v17, %v4651_v34  ;;  %v1725_v25 = vadd.f32 1.0, %v4430_v0  ;;  %v1500_v43 = vmul.f32 0.7978846, %v1372_v48  ;;  %v1849_v22 = vmul.f32 0.5, %v1721_v51 }
 0x1bf   : > { %v1373_v41 = vadd.f32 %v1245_v27, %v4631_v36  ;;  %v1247_v29 = vmul.f32 0.044715, %v1119_v11  ;;  %v1502_v10 = vmul.f32 0.7978846, %v1374_v28  ;;  %v1122_v40 = vmul.f32 %v994_v55, %v4659_v16  ;;  %v849_v11 = vpop.f32.mrf.mxu1 }
 0x1c0   : > { %v1248_v53 = vmul.f32 0.044715, %v1120_v54  ;;  %v1853_v32 = vmul.f32 0.5, %v1725_v25  ;;  %3498 = vtanh.f32 %v1500_v43  ;;  %v1977_v38 = vmul.f32 %v1849_v22, %v4272_v42  ;;  %v658_v42 = vpop.f32.mrf.mxu0 }
 0x1c1   : > { %v1501_v2 = vmul.f32 0.7978846, %v1373_v41  ;;  %v1375_v17 = vadd.f32 %v1247_v29, %v4645_v20  ;;  %3500 = vtanh.f32 %v1502_v10  ;;  %v1250_v48 = vmul.f32 0.044715, %v1122_v40  ;;  %v851_v40 = vpop.f32.mrf.mxu1 }
 0x1c2   : > { %v1376_v0 = vadd.f32 %v1248_v53, %v4651_v34  ;;  %v1981_v27 = vmul.f32 %v1853_v32, %v4312_v19  ;;  %v1723_v28 = vadd.f32 1.0, %v4412_v15  ;;  %v1727_v54 = vadd.f32 1.0, %v4438_v9  ;;  %v5902_v9 = vld [vmem:[#allocation27_spill] sm:$0xff]  ;;  %v5910_v34 = vld [vmem:[#allocation18_spill] sm:$0xff] }
 0x1c3   : > { %3502 = vtanh.f32 %v1501_v2  ;;  %v1503_v51 = vmul.f32 0.7978846, %v1375_v17  ;;  %v1378_v25 = vadd.f32 %v1250_v48, %v4659_v16  ;;  %v4687_v41 = vadd.f32 %v656_v60, %v4129_v58  ;;  %v5904_v60 = vld [vmem:[#allocation20_spill] sm:$0xff]  ;;  %v5908_v16 = vld [vmem:[#allocation15_spill] sm:$0xff] }
 0x1c4   : > { %v1504_v55 = vmul.f32 0.7978846, %v1376_v0  ;;  %v2097_v43 = vpack.c.bf16 %v1981_v27, %v1977_v38  ;;  %v1851_v29 = vmul.f32 0.5, %v1723_v28  ;;  %v1855_v22 = vmul.f32 0.5, %v1727_v54  ;;  %v5903_v38 = vld [vmem:[#allocation17_spill] sm:$0xff]  ;;  %v660_v54 = vpop.f32.mrf.mxu0 }
 0x1c5   : > { %5900 = vst [vmem:[#allocation55_spill] sm:$0xff] %v4687_v41  ;;  %3504 = vtanh.f32 %v1503_v51  ;;  %v4690_v19 = vadd.f32 %v849_v11, %v4131_v59  ;;  %v1506_v10 = vmul.f32 0.7978846, %v1378_v25  ;;  %v993_v15 = vmul.f32 %v4687_v41, %v4687_v41  ;;  %v5905_v0 = vld [vmem:[#allocation33_spill] sm:$0xff]  ;;  %v5906_v51 = vld [vmem:[#allocation31_spill] sm:$0xff] }
 0x1c6   : > { %3506 = vtanh.f32 %v1504_v55  ;;  %2463 = vmatprep.mubr.bf16.mxu0 %v2097_v43  ;;  %v1720_v53 = vadd.f32 1.0, %v5902_v9  ;;  %v1979_v32 = vmul.f32 %v1851_v29, %v5903_v38  ;;  %v1983_v2 = vmul.f32 %v1855_v22, %v5904_v60  ;;  %v5907_v9 = vld [vmem:[#allocation34_spill] sm:$0xff] }
 0x1c7   : > { %5901 = vst [vmem:[#allocation56_spill] sm:$0xff] %v4690_v19  ;;  %v995_v17 = vmul.f32 %v4690_v19, %v4690_v19  ;;  %v1724_v48 = vadd.f32 1.0, %v5905_v0  ;;  %3508 = vtanh.f32 %v1506_v10  ;;  %v1121_v27 = vmul.f32 %v993_v15, %v4687_v41 }
 0x1c8   : > { %v1848_v11 = vmul.f32 0.5, %v1720_v53  ;;  %v1722_v28 = vadd.f32 1.0, %v5906_v51  ;;  %v4702_v55 = vpop.eup %3494  ;;  %v2099_v25 = vpack.c.bf16 %v1983_v2, %v1979_v32  ;;  %v1726_v22 = vadd.f32 1.0, %v5907_v9  ;;  %v853_v53 = vpop.f32.mrf.mxu1 }
 0x1c9   : > { %v1123_v43 = vmul.f32 %v995_v17, %v4690_v19  ;;  %v1852_v29 = vmul.f32 0.5, %v1724_v48  ;;  %v4706_v38 = vpop.eup %3496  ;;  %v1249_v60 = vmul.f32 0.044715, %v1121_v27  ;;  %v4710_v15 = vadd.f32 %v658_v42, %v4125_v56  ;;  %v5912_v48 = vld [vmem:[#allocation16_spill] sm:$0xff]  ;;  %v664_v42 = vpop.f32.mrf.mxu0 }
 0x1ca   : > { %v1976_v0 = vmul.f32 %v1848_v11, %v5908_v16  ;;  %v1850_v10 = vmul.f32 0.5, %v1722_v28  ;;  %2624 = vmatprep.mubr.bf16.mxu1 %v2099_v25  ;;  %v1854_v32 = vmul.f32 0.5, %v1726_v22  ;;  %v4714_v2 = vadd.f32 %v851_v40, %v4127_v57  ;;  %v5914_v25 = vld [vmem:[#allocation19_spill] sm:$0xff] }
 0x1cb   : > { %5909 = vst [vmem:[#allocation27_spill] sm:$0xff] %v4710_v15  ;;  %v1251_v51 = vmul.f32 0.044715, %v1123_v43  ;;  %v1980_v21 = vmul.f32 %v1852_v29, %v5910_v34  ;;  %v1377_v17 = vadd.f32 %v1249_v60, %v4687_v41  ;;  %v996_v16 = vmul.f32 %v4710_v15, %v4710_v15 }
 0x1cc   : > { %5911 = vst [vmem:[#allocation17_spill] sm:$0xff] %v4714_v2  ;;  %v1978_v9 = vmul.f32 %v1850_v10, %v5912_v48  ;;  %v4721_v27 = vadd.f32 %v660_v54, %v4129_v58  ;;  %v1982_v34 = vmul.f32 %v1854_v32, %v5914_v25  ;;  %v998_v40 = vmul.f32 %v4714_v2, %v4714_v2  ;;  %v857_v10 = vpop.f32.mrf.mxu1 }
 0x1cd   : > { %v1379_v11 = vadd.f32 %v1251_v51, %v4690_v19  ;;  %v2096_v28 = vpack.c.bf16 %v1980_v21, %v1976_v0  ;;  %v4727_v43 = vpop.eup %3498  ;;  %v1505_v29 = vmul.f32 0.7978846, %v1377_v17  ;;  %v1124_v22 = vmul.f32 %v996_v16, %v4710_v15 }
 0x1ce   : > { %5913 = vst [vmem:[#allocation20_spill] sm:$0xff] %v4721_v27  ;;  %v997_v60 = vmul.f32 %v4721_v27, %v4721_v27  ;;  %v4733_v54 = vadd.f32 %v853_v53, %v4131_v59  ;;  %v4735_v48 = vpop.eup %3500  ;;  %v2098_v0 = vpack.c.bf16 %v1982_v34, %v1978_v9  ;;  %v1126_v51 = vmul.f32 %v998_v40, %v4714_v2 }
 0x1cf   : > { %5916 = vst [vmem:[#allocation31_spill] sm:$0xff] %v4735_v48  ;;  %v1507_v21 = vmul.f32 0.7978846, %v1379_v11  ;;  %2464 = vmatmul.mubr.bf16.gmra.mxu0 %v2096_v28  ;;  %v4739_v32 = vadd.f32 %v664_v42, %v4125_v56  ;;  %3510 = vtanh.f32 %v1505_v29  ;;  %v1252_v16 = vmul.f32 0.044715, %v1124_v22 }
 0x1d0   : > { %5915 = vst [vmem:[#allocation33_spill] sm:$0xff] %v4733_v54  ;;  %v4741_v17 = vpop.eup %3502  ;;  %v1125_v25 = vmul.f32 %v997_v60, %v4721_v27  ;;  %v999_v53 = vmul.f32 %v4733_v54, %v4733_v54  ;;  %2625 = vmatmul.mubr.bf16.gmra.mxu1 %v2098_v0  ;;  %v1254_v19 = vmul.f32 0.044715, %v1126_v51  ;;  %v4749_v11 = vadd.f32 %v857_v10, %v4127_v57 }
 0x1d1   : > { %5917 = vst [vmem:[#allocation34_spill] sm:$0xff] %v4739_v32  ;;  %3512 = vtanh.f32 %v1507_v21  ;;  %v1000_v9 = vmul.f32 %v4739_v32, %v4739_v32  ;;  %v1380_v28 = vadd.f32 %v1252_v16, %v4710_v15  ;;  %v1729_v29 = vadd.f32 1.0, %v4478_v46 }
 0x1d2   : > { %5918 = vst [vmem:[#allocation15_spill] sm:$0xff] %v4749_v11  ;;  %v4751_v42 = vpop.eup %3504  ;;  %v1253_v34 = vmul.f32 0.044715, %v1125_v25  ;;  %v1127_v40 = vmul.f32 %v999_v53, %v4733_v54  ;;  %v1382_v60 = vadd.f32 %v1254_v19, %v4714_v2  ;;  %v1002_v0 = vmul.f32 %v4749_v11, %v4749_v11  ;;  %v666_v19 = vpop.f32.mrf.mxu0 }
 0x1d3   : > { %v4756_v22 = vpop.eup %3506  ;;  %v1128_v21 = vmul.f32 %v1000_v9, %v4739_v32  ;;  %v1733_v10 = vadd.f32 1.0, %v4498_v4  ;;  %v1508_v51 = vmul.f32 0.7978846, %v1380_v28  ;;  %v1857_v25 = vmul.f32 0.5, %v1729_v29  ;;  %v859_v29 = vpop.f32.mrf.mxu1 }
 0x1d4   : > { %5919 = vst [vmem:[#allocation18_spill] sm:$0xff] %v4756_v22  ;;  %v1381_v41 = vadd.f32 %v1253_v34, %v4721_v27  ;;  %v1255_v16 = vmul.f32 0.044715, %v1127_v40  ;;  %v4764_v15 = vpop.eup %3508  ;;  %v1510_v53 = vmul.f32 0.7978846, %v1382_v60  ;;  %v1130_v22 = vmul.f32 %v1002_v0, %v4749_v11  ;;  %v5922_v34 = vld [vmem:[#allocation28_spill] sm:$0xff] }
 0x1d5   : > { %5920 = vst [vmem:[#allocation16_spill] sm:$0xff] %v4764_v15  ;;  %v1256_v46 = vmul.f32 0.044715, %v1128_v21  ;;  %v1861_v61 = vmul.f32 0.5, %v1733_v10  ;;  %3514 = vtanh.f32 %v1508_v51  ;;  %v1985_v48 = vmul.f32 %v1857_v25, %v5921_v18  ;;  %v668_v18 = vpop.f32.mrf.mxu0  ;;  %v5932_v15 = vld [vmem:[#allocation21_spill] sm:$0xff] }
 0x1d6   : > { %v1509_v9 = vmul.f32 0.7978846, %v1381_v41  ;;  %v1383_v2 = vadd.f32 %v1255_v16, %v4733_v54  ;;  %3516 = vtanh.f32 %v1510_v53  ;;  %v1258_v28 = vmul.f32 0.044715, %v1130_v22  ;;  %v861_v53 = vpop.f32.mrf.mxu1 }
 0x1d7   : > { %v1384_v4 = vadd.f32 %v1256_v46, %v4739_v32  ;;  %v1989_v40 = vmul.f32 %v1861_v61, %v5922_v34  ;;  %v1731_v21 = vadd.f32 1.0, %v4484_v49  ;;  %v1735_v0 = vadd.f32 1.0, %v4502_v44  ;;  %v5925_v44 = vld [vmem:[#allocation39_spill] sm:$0xff]  ;;  %v5926_v46 = vld [vmem:[#allocation24_spill] sm:$0xff] }
 0x1d8   : > { %3518 = vtanh.f32 %v1509_v9  ;;  %v1511_v60 = vmul.f32 0.7978846, %v1383_v2  ;;  %v1386_v41 = vadd.f32 %v1258_v28, %v4749_v11  ;;  %v4775_v16 = vadd.f32 %v666_v19, %v4129_v58  ;;  %v5927_v9 = vld [vmem:[#allocation29_spill] sm:$0xff] }
 0x1d9   : > { %v1512_v10 = vmul.f32 0.7978846, %v1384_v4  ;;  %v2101_v51 = vpack.c.bf16 %v1989_v40, %v1985_v48  ;;  %v1859_v25 = vmul.f32 0.5, %v1731_v21  ;;  %v1863_v22 = vmul.f32 0.5, %v1735_v0  ;;  %v5928_v28 = vld [vmem:[#allocation45_spill] sm:$0xff]  ;;  %v5930_v0 = vld [vmem:[#allocation42_spill] sm:$0xff] }
 0x1da   : > { %5923 = vst [vmem:[#allocation19_spill] sm:$0xff] %v4775_v16  ;;  %3520 = vtanh.f32 %v1511_v60  ;;  %v4778_v61 = vadd.f32 %v859_v29, %v4131_v59  ;;  %v1001_v49 = vmul.f32 %v4775_v16, %v4775_v16  ;;  %v1728_v2 = vadd.f32 1.0, %v5925_v44 }
 0x1db   : > { %3522 = vtanh.f32 %v1512_v10  ;;  %2471 = vmatprep.mubr.bf16.mxu0 %v2101_v51  ;;  %v1987_v48 = vmul.f32 %v1859_v25, %v5926_v46  ;;  %v1991_v19 = vmul.f32 %v1863_v22, %v5927_v9  ;;  %v1732_v34 = vadd.f32 1.0, %v5928_v28  ;;  %v670_v51 = vpop.f32.mrf.mxu0  ;;  %v5931_v46 = vld [vmem:[#allocation46_spill] sm:$0xff] }
 0x1dc   : > { %5924 = vst [vmem:[#allocation23_spill] sm:$0xff] %v4778_v61  ;;  %v1003_v4 = vmul.f32 %v4778_v61, %v4778_v61  ;;  %v4788_v40 = vpop.eup %3510  ;;  %v1514_v29 = vmul.f32 0.7978846, %v1386_v41  ;;  %v1129_v60 = vmul.f32 %v1001_v49, %v4775_v16  ;;  %v1856_v21 = vmul.f32 0.5, %v1728_v2  ;;  %v863_v49 = vpop.f32.mrf.mxu1 }
 0x1dd   : > { %5929 = vst [vmem:[#allocation28_spill] sm:$0xff] %v4788_v40  ;;  %v1730_v10 = vadd.f32 1.0, %v5930_v0  ;;  %v2103_v11 = vpack.c.bf16 %v1991_v19, %v1987_v48  ;;  %v1860_v22 = vmul.f32 0.5, %v1732_v34  ;;  %v1734_v9 = vadd.f32 1.0, %v5931_v46  ;;  %v5934_v0 = vld [vmem:[#allocation25_spill] sm:$0xff] }
 0x1de   : > { %v4792_v44 = vpop.eup %3512  ;;  %v1131_v25 = vmul.f32 %v1003_v4, %v4778_v61  ;;  %v1257_v32 = vmul.f32 0.044715, %v1129_v60  ;;  %v1984_v28 = vmul.f32 %v1856_v21, %v5932_v15  ;;  %v4798_v41 = vadd.f32 %v668_v18, %v4125_v56  ;;  %v5936_v4 = vld [vmem:[#allocation22_spill] sm:$0xff]  ;;  %v674_v18 = vpop.f32.mrf.mxu0 }
 0x1df   : > { %v1858_v54 = vmul.f32 0.5, %v1730_v10  ;;  %2632 = vmatprep.mubr.bf16.mxu1 %v2103_v11  ;;  %v1988_v27 = vmul.f32 %v1860_v22, %v5934_v0  ;;  %v1862_v40 = vmul.f32 0.5, %v1734_v9  ;;  %v4802_v48 = vadd.f32 %v861_v53, %v4127_v57  ;;  %v5937_v10 = vld [vmem:[#allocation26_spill] sm:$0xff]  ;;  %v867_v9 = vpop.f32.mrf.mxu1 }
 0x1e0   : > { %5933 = vst [vmem:[#allocation39_spill] sm:$0xff] %v4798_v41  ;;  %v1259_v2 = vmul.f32 0.044715, %v1131_v25  ;;  %v1385_v19 = vadd.f32 %v1257_v32, %v4775_v16  ;;  %v1004_v15 = vmul.f32 %v4798_v41, %v4798_v41  ;;  %v4809_v60 = vadd.f32 %v670_v51, %v4129_v58 }
 0x1e1   : > { %5935 = vst [vmem:[#allocation24_spill] sm:$0xff] %v4802_v48  ;;  %v1986_v34 = vmul.f32 %v1858_v54, %v5936_v4  ;;  %v2100_v21 = vpack.c.bf16 %v1988_v27, %v1984_v28  ;;  %v1990_v25 = vmul.f32 %v1862_v40, %v5937_v10  ;;  %v1006_v53 = vmul.f32 %v4802_v48, %v4802_v48 }
 0x1e2   : > { %v1387_v11 = vadd.f32 %v1259_v2, %v4778_v61  ;;  %v4815_v22 = vpop.eup %3514  ;;  %v1513_v32 = vmul.f32 0.7978846, %v1385_v19  ;;  %v1132_v54 = vmul.f32 %v1004_v15, %v4798_v41  ;;  %v1005_v46 = vmul.f32 %v4809_v60, %v4809_v60 }
 0x1e3   : > { %5938 = vst [vmem:[#allocation29_spill] sm:$0xff] %v4815_v22  ;;  %v4821_v51 = vadd.f32 %v863_v49, %v4131_v59  ;;  %v4823_v0 = vpop.eup %3516  ;;  %3524 = vtanh.f32 %v1514_v29  ;;  %2472 = vmatmul.mubr.bf16.gmra.mxu0 %v2100_v21  ;;  %v2102_v27 = vpack.c.bf16 %v1990_v25, %v1986_v34  ;;  %v1134_v40 = vmul.f32 %v1006_v53, %v4802_v48  ;;  %v5944_v22 = vld [vmem:[#allocation35_spill] sm:$0xff] }
 0x1e4   : > { %5939 = vst [vmem:[#allocation45_spill] sm:$0xff] %v4823_v0  ;;  %v4827_v28 = vadd.f32 %v674_v18, %v4125_v56  ;;  %v1515_v19 = vmul.f32 0.7978846, %v1387_v11  ;;  %v1260_v4 = vmul.f32 0.044715, %v1132_v54  ;;  %v1133_v15 = vmul.f32 %v1005_v46, %v4809_v60 }
 0x1e5   : > { %v4829_v2 = vpop.eup %3518  ;;  %v1007_v49 = vmul.f32 %v4821_v51, %v4821_v51  ;;  %3526 = vtanh.f32 %v1513_v32  ;;  %2633 = vmatmul.mubr.bf16.gmra.mxu1 %v2102_v27  ;;  %v1262_v10 = vmul.f32 0.044715, %v1134_v40  ;;  %v4837_v34 = vadd.f32 %v867_v9, %v4127_v57 }
 0x1e6   : > { %5940 = vst [vmem:[#allocation42_spill] sm:$0xff] %v4827_v28  ;;  %v1008_v29 = vmul.f32 %v4827_v28, %v4827_v28  ;;  %v1388_v21 = vadd.f32 %v1260_v4, %v4798_v41  ;;  %v1261_v11 = vmul.f32 0.044715, %v1133_v15  ;;  %v1737_v53 = vadd.f32 1.0, %v4548_v8 }
 0x1e7   : > { %5941 = vst [vmem:[#allocation46_spill] sm:$0xff] %v4837_v34  ;;  %v4839_v18 = vpop.eup %3520  ;;  %v1135_v25 = vmul.f32 %v1007_v49, %v4821_v51  ;;  %v1390_v32 = vadd.f32 %v1262_v10, %v4802_v48  ;;  %v1010_v27 = vmul.f32 %v4837_v34, %v4837_v34  ;;  %v1741_v9 = vadd.f32 1.0, %v4579_v13 }
 0x1e8   : > { %5942 = vst [vmem:[#allocation21_spill] sm:$0xff] %v4839_v18  ;;  %v4844_v54 = vpop.eup %3522  ;;  %v1136_v46 = vmul.f32 %v1008_v29, %v4827_v28  ;;  %v1516_v40 = vmul.f32 0.7978846, %v1388_v21  ;;  %v1389_v61 = vadd.f32 %v1261_v11, %v4809_v60  ;;  %v1865_v15 = vmul.f32 0.5, %v1737_v53  ;;  %v5945_v21 = vld [vmem:[#allocation40_spill] sm:$0xff]  ;;  %v869_v11 = vpop.f32.mrf.mxu1 }
 0x1e9   : > { %5943 = vst [vmem:[#allocation25_spill] sm:$0xff] %v4844_v54  ;;  %v1263_v4 = vmul.f32 0.044715, %v1135_v25  ;;  %v1518_v41 = vmul.f32 0.7978846, %v1390_v32  ;;  %v1138_v8 = vmul.f32 %v1010_v27, %v4837_v34  ;;  %v1869_v16 = vmul.f32 0.5, %v1741_v9  ;;  %v676_v54 = vpop.f32.mrf.mxu0 }
 0x1ea   : > { %v1264_v49 = vmul.f32 0.044715, %v1136_v46  ;;  %3528 = vtanh.f32 %v1515_v19  ;;  %v1517_v10 = vmul.f32 0.7978846, %v1389_v61  ;;  %v1993_v13 = vmul.f32 %v1865_v15, %v5944_v22  ;;  %v5949_v15 = vld [vmem:[#allocation41_spill] sm:$0xff] }
 0x1eb   : > { %v1391_v29 = vadd.f32 %v1263_v4, %v4821_v51  ;;  %v1266_v0 = vmul.f32 0.044715, %v1138_v8  ;;  %v1997_v18 = vmul.f32 %v1869_v16, %v5945_v21  ;;  %3530 = vtanh.f32 %v1516_v40  ;;  %v678_v19 = vpop.f32.mrf.mxu0 }
 0x1ec   : > { %v1392_v48 = vadd.f32 %v1264_v49, %v4827_v28  ;;  %v1739_v25 = vadd.f32 1.0, %v4558_v47  ;;  %v1743_v53 = vadd.f32 1.0, %v4583_v1  ;;  %3532 = vtanh.f32 %v1518_v41  ;;  %v871_v41 = vpop.f32.mrf.mxu1 }
 0x1ed   : > { %v1519_v32 = vmul.f32 0.7978846, %v1391_v29  ;;  %v2105_v46 = vpack.c.bf16 %v1997_v18, %v1993_v13  ;;  %v4860_v61 = vadd.f32 %v676_v54, %v4129_v58  ;;  %3534 = vtanh.f32 %v1517_v10  ;;  %v5948_v54 = vld [vmem:[#allocation36_spill] sm:$0xff]  ;;  %v680_v13 = vpop.f32.mrf.mxu0 }
 0x1ee   : > { %v1867_v27 = vmul.f32 0.5, %v1739_v25  ;;  %v1871_v9 = vmul.f32 0.5, %v1743_v53  ;;  %v4863_v22 = vadd.f32 %v869_v11, %v4131_v59  ;;  %v1520_v16 = vmul.f32 0.7978846, %v1392_v48  ;;  %v5950_v53 = vld [vmem:[#allocation50_spill] sm:$0xff] }
 0x1ef   : > { %5946 = vst [vmem:[#allocation22_spill] sm:$0xff] %v4860_v61  ;;  %v1394_v40 = vadd.f32 %v1266_v0, %v4837_v34  ;;  %2479 = vmatprep.mubr.bf16.mxu0 %v2105_v46  ;;  %v1009_v47 = vmul.f32 %v4860_v61, %v4860_v61  ;;  %v1736_v1 = vadd.f32 1.0, %v4506_v26  ;;  %v1740_v48 = vadd.f32 1.0, %v4565_v50 }
 0x1f0   : > { %5947 = vst [vmem:[#allocation26_spill] sm:$0xff] %v4863_v22  ;;  %v4869_v18 = vpop.eup %3524  ;;  %v1995_v4 = vmul.f32 %v1867_v27, %v5948_v54  ;;  %v1999_v49 = vmul.f32 %v1871_v9, %v5949_v15  ;;  %v1011_v8 = vmul.f32 %v4863_v22, %v4863_v22  ;;  %3536 = vtanh.f32 %v1519_v32  ;;  %v5951_v9 = vld [vmem:[#allocation30_spill] sm:$0xff]  ;;  %v873_v32 = vpop.f32.mrf.mxu1 }
 0x1f1   : > { %v1137_v0 = vmul.f32 %v1009_v47, %v4860_v61  ;;  %v1864_v10 = vmul.f32 0.5, %v1736_v1  ;;  %v1738_v29 = vadd.f32 1.0, %v4523_v37  ;;  %v1868_v25 = vmul.f32 0.5, %v1740_v48  ;;  %v5953_v37 = vld [vmem:[#allocation37_spill] sm:$0xff] }
 0x1f2   : > { %v4878_v26 = vpop.eup %3526  ;;  %v2107_v21 = vpack.c.bf16 %v1999_v49, %v1995_v4  ;;  %v1139_v11 = vmul.f32 %v1011_v8, %v4863_v22  ;;  %v1742_v46 = vadd.f32 1.0, %v5950_v53  ;;  %v4884_v50 = vadd.f32 %v678_v19, %v4125_v56  ;;  %v5955_v8 = vld [vmem:[#allocation32_spill] sm:$0xff]  ;;  %v684_v19 = vpop.f32.mrf.mxu0 }
 0x1f3   : > { %v1265_v27 = vmul.f32 0.044715, %v1137_v0  ;;  %v1992_v54 = vmul.f32 %v1864_v10, %v5951_v9  ;;  %v1866_v15 = vmul.f32 0.5, %v1738_v29  ;;  %v1996_v1 = vmul.f32 %v1868_v25, %v5953_v37  ;;  %v877_v9 = vpop.f32.mrf.mxu1 }
 0x1f4   : > { %5952 = vst [vmem:[#allocation35_spill] sm:$0xff] %v4884_v50  ;;  %2640 = vmatprep.mubr.bf16.mxu1 %v2107_v21  ;;  %v1267_v47 = vmul.f32 0.044715, %v1139_v11  ;;  %v1870_v34 = vmul.f32 0.5, %v1742_v46  ;;  %v4888_v4 = vadd.f32 %v871_v41, %v4127_v57  ;;  %v1012_v0 = vmul.f32 %v4884_v50, %v4884_v50  ;;  %v5956_v11 = vld [vmem:[#allocation38_spill] sm:$0xff] }
 0x1f5   : > { %v1393_v49 = vadd.f32 %v1265_v27, %v4860_v61  ;;  %v1994_v48 = vmul.f32 %v1866_v15, %v5955_v8  ;;  %v4895_v10 = vadd.f32 %v680_v13, %v4129_v58  ;;  %v2104_v21 = vpack.c.bf16 %v1996_v1, %v1992_v54  ;;  %v5960_v61 = vld [vmem:[#allocation47_spill] sm:$0xff] }
 0x1f6   : > { %5954 = vst [vmem:[#allocation40_spill] sm:$0xff] %v4888_v4  ;;  %v1395_v29 = vadd.f32 %v1267_v47, %v4863_v22  ;;  %v1998_v25 = vmul.f32 %v1870_v34, %v5956_v11  ;;  %v1014_v41 = vmul.f32 %v4888_v4, %v4888_v4  ;;  %3538 = vtanh.f32 %v1520_v16 }
 0x1f7   : > { %v4901_v53 = vpop.eup %3528  ;;  %v1140_v46 = vmul.f32 %v1012_v0, %v4884_v50  ;;  %v1013_v27 = vmul.f32 %v4895_v10, %v4895_v10  ;;  %v4907_v13 = vadd.f32 %v873_v32, %v4131_v59  ;;  %v1522_v15 = vmul.f32 0.7978846, %v1394_v40  ;;  %2480 = vmatmul.mubr.bf16.gmra.mxu0 %v2104_v21 }
 0x1f8   : > { %v2106_v54 = vpack.c.bf16 %v1998_v25, %v1994_v48  ;;  %v1142_v34 = vmul.f32 %v1014_v41, %v4888_v4  ;;  %v4911_v47 = vadd.f32 %v684_v19, %v4125_v56  ;;  %v4913_v37 = vpop.eup %3530  ;;  %v1521_v16 = vmul.f32 0.7978846, %v1393_v49 }
 0x1f9   : > { %v1268_v1 = vmul.f32 0.044715, %v1140_v46  ;;  %v1141_v8 = vmul.f32 %v1013_v27, %v4895_v10  ;;  %v1015_v0 = vmul.f32 %v4907_v13, %v4907_v13  ;;  %v4918_v32 = vpop.eup %3532  ;;  %v1523_v11 = vmul.f32 0.7978846, %v1395_v29 }
 0x1fa   : > { %5957 = vst [vmem:[#allocation36_spill] sm:$0xff] %v4911_v47  ;;  %5958 = vst [vmem:[#allocation41_spill] sm:$0xff] %v4918_v32  ;;  %2641 = vmatmul.mubr.bf16.gmra.mxu1 %v2106_v54  ;;  %v1270_v40 = vmul.f32 0.044715, %v1142_v34  ;;  %v1016_v48 = vmul.f32 %v4911_v47, %v4911_v47  ;;  %v4923_v19 = vadd.f32 %v877_v9, %v4127_v57  ;;  %v4925_v21 = vpop.eup %3534  ;;  %v1745_v46 = vadd.f32 1.0, %v4624_v35 }
 0x1fb   : > { %v1396_v49 = vadd.f32 %v1268_v1, %v4884_v50  ;;  %v1269_v25 = vmul.f32 0.044715, %v1141_v8  ;;  %v1143_v41 = vmul.f32 %v1015_v0, %v4907_v13  ;;  %v1749_v34 = vadd.f32 1.0, %v4653_v33  ;;  %v686_v50 = vpop.f32.mrf.mxu0 }
 0x1fc   : > { %5959 = vst [vmem:[#allocation50_spill] sm:$0xff] %v4923_v19  ;;  %v1398_v27 = vadd.f32 %v1270_v40, %v4888_v4  ;;  %v1144_v29 = vmul.f32 %v1016_v48, %v4911_v47  ;;  %v1018_v54 = vmul.f32 %v4923_v19, %v4923_v19  ;;  %3540 = vtanh.f32 %v1522_v15  ;;  %v879_v15 = vpop.f32.mrf.mxu1 }
 0x1fd   : > { %v1524_v9 = vmul.f32 0.7978846, %v1396_v49  ;;  %v1397_v28 = vadd.f32 %v1269_v25, %v4895_v10  ;;  %v1873_v22 = vmul.f32 0.5, %v1745_v46  ;;  %v4936_v1 = vpop.eup %3536  ;;  %3542 = vtanh.f32 %v1521_v16 }
 0x1fe   : > { %v1526_v8 = vmul.f32 0.7978846, %v1398_v27  ;;  %v1271_v0 = vmul.f32 0.044715, %v1143_v41  ;;  %v1877_v35 = vmul.f32 0.5, %v1749_v34  ;;  %3544 = vtanh.f32 %v1523_v11 }
 0x1ff   : > { %v1272_v40 = vmul.f32 0.044715, %v1144_v29  ;;  %v1525_v48 = vmul.f32 0.7978846, %v1397_v28  ;;  %v1146_v4 = vmul.f32 %v1018_v54, %v4923_v19  ;;  %v2001_v32 = vmul.f32 %v1873_v22, %v5960_v61  ;;  %v688_v28 = vpop.f32.mrf.mxu0 }
 0x200   : > { %v2005_v33 = vmul.f32 %v1877_v35, %v4533_v14  ;;  %3546 = vtanh.f32 %v1524_v9  ;;  %v1747_v49 = vadd.f32 1.0, %v4633_v7  ;;  %v1751_v25 = vadd.f32 1.0, %v4661_v12 }
 0x201   : > { %3548 = vtanh.f32 %v1526_v8  ;;  %v1399_v16 = vadd.f32 %v1271_v0, %v4907_v13  ;;  %v4945_v11 = vadd.f32 %v686_v50, %v4129_v58  ;;  %v1400_v46 = vadd.f32 %v1272_v40, %v4911_v47  ;;  %v881_v50 = vpop.f32.mrf.mxu1  ;;  %v690_v40 = vpop.f32.mrf.mxu0  ;;  %v5991_v47 = vld [vmem:[#allocation45_spill] sm:$0xff] }
 0x202   : > { %v2109_v41 = vpack.c.bf16 %v2005_v33, %v2001_v32  ;;  %v1875_v27 = vmul.f32 0.5, %v1747_v49  ;;  %v1879_v61 = vmul.f32 0.5, %v1751_v25  ;;  %v4949_v14 = vadd.f32 %v879_v15, %v4131_v59 }
 0x203   : > { %v4951_v22 = vpop.eup %3538  ;;  %3550 = vtanh.f32 %v1525_v48  ;;  %v1274_v7 = vmul.f32 0.044715, %v1146_v4  ;;  %v1017_v12 = vmul.f32 %v4945_v11, %v4945_v11  ;;  %v1744_v32 = vadd.f32 1.0, %v4587_v24 }
 0x204   : > { %2487 = vmatprep.mubr.bf16.mxu0 %v2109_v41  ;;  %v2003_v29 = vmul.f32 %v1875_v27, %v4515_v31  ;;  %v2007_v54 = vmul.f32 %v1879_v61, %v4537_v63  ;;  %v1019_v34 = vmul.f32 %v4949_v14, %v4949_v14  ;;  %v1748_v9 = vadd.f32 1.0, %v4639_v39  ;;  %v883_v39 = vpop.f32.mrf.mxu1 }
 0x205   : > { %v1527_v8 = vmul.f32 0.7978846, %v1399_v16  ;;  %v1145_v0 = vmul.f32 %v1017_v12, %v4945_v11  ;;  %v1872_v4 = vmul.f32 0.5, %v1744_v32  ;;  %v1746_v35 = vadd.f32 1.0, %v4594_v3  ;;  %v5962_v16 = vld [vmem:[#allocation43_spill] sm:$0xff] }
 0x206   : > { %v2111_v48 = vpack.c.bf16 %v2007_v54, %v2003_v29  ;;  %v1147_v24 = vmul.f32 %v1019_v34, %v4949_v14  ;;  %v1876_v33 = vmul.f32 0.5, %v1748_v9  ;;  %v1750_v31 = vadd.f32 1.0, %v4647_v30  ;;  %v694_v29 = vpop.f32.mrf.mxu0 }
 0x207   : > { %v1402_v63 = vadd.f32 %v1274_v7, %v4923_v19  ;;  %v1273_v15 = vmul.f32 0.044715, %v1145_v0  ;;  %v1874_v49 = vmul.f32 0.5, %v1746_v35  ;;  %v4967_v25 = vadd.f32 %v688_v28, %v4125_v56 }
 0x208   : > { %2648 = vmatprep.mubr.bf16.mxu1 %v2111_v48  ;;  %v2000_v41 = vmul.f32 %v1872_v4, %v5962_v16  ;;  %v2004_v3 = vmul.f32 %v1876_v33, %v4518_v5  ;;  %v1878_v27 = vmul.f32 0.5, %v1750_v31  ;;  %v4972_v61 = vadd.f32 %v881_v50, %v4127_v57  ;;  %v5964_v5 = vld [vmem:[#allocation44_spill] sm:$0xff]  ;;  %v887_v33 = vpop.f32.mrf.mxu1 }
 0x209   : > { %5961 = vst [vmem:[#allocation30_spill] sm:$0xff] %v4967_v25  ;;  %v4974_v12 = vpop.eup %3540  ;;  %v1401_v30 = vadd.f32 %v1273_v15, %v4945_v11  ;;  %v1275_v7 = vmul.f32 0.044715, %v1147_v24  ;;  %v1020_v32 = vmul.f32 %v4967_v25, %v4967_v25  ;;  %v4980_v28 = vadd.f32 %v690_v40, %v4129_v58 }
 0x20a   : > { %5963 = vst [vmem:[#allocation37_spill] sm:$0xff] %v4972_v61  ;;  %v4982_v54 = vpop.eup %3542  ;;  %v2108_v34 = vpack.c.bf16 %v2004_v3, %v2000_v41  ;;  %v2002_v9 = vmul.f32 %v1874_v49, %v5964_v5  ;;  %v2006_v50 = vmul.f32 %v1878_v27, %v4530_v52  ;;  %v1022_v0 = vmul.f32 %v4972_v61, %v4972_v61 }
 0x20b   : > { %v4988_v4 = vpop.eup %3544  ;;  %v1528_v35 = vmul.f32 0.7978846, %v1400_v46  ;;  %v1148_v48 = vmul.f32 %v1020_v32, %v4967_v25  ;;  %v1021_v40 = vmul.f32 %v4980_v28, %v4980_v28  ;;  %v4994_v24 = vadd.f32 %v883_v39, %v4131_v59 }
 0x20c   : > { %v1530_v31 = vmul.f32 0.7978846, %v1402_v63  ;;  %2488 = vmatmul.mubr.bf16.gmra.mxu0 %v2108_v34  ;;  %v2110_v15 = vpack.c.bf16 %v2006_v50, %v2002_v9  ;;  %v1150_v52 = vmul.f32 %v1022_v0, %v4972_v61  ;;  %v4998_v49 = vadd.f32 %v694_v29, %v4125_v56 }
 0x20d   : > { %v5000_v16 = vpop.eup %3546  ;;  %v1403_v46 = vadd.f32 %v1275_v7, %v4949_v14  ;;  %v1276_v41 = vmul.f32 0.044715, %v1148_v48  ;;  %v1149_v3 = vmul.f32 %v1021_v40, %v4980_v28  ;;  %v1023_v39 = vmul.f32 %v4994_v24, %v4994_v24 }
 0x20e   : > { %5965 = vst [vmem:[#allocation32_spill] sm:$0xff] %v4998_v49  ;;  %v5006_v27 = vpop.eup %3548  ;;  %v1529_v63 = vmul.f32 0.7978846, %v1401_v30  ;;  %2649 = vmatmul.mubr.bf16.gmra.mxu1 %v2110_v15  ;;  %v1278_v32 = vmul.f32 0.044715, %v1150_v52  ;;  %v1024_v34 = vmul.f32 %v4998_v49, %v4998_v49  ;;  %v5011_v29 = vadd.f32 %v887_v33, %v4127_v57 }
 0x20f   : > { %v1404_v5 = vadd.f32 %v1276_v41, %v4967_v25  ;;  %v1277_v7 = vmul.f32 0.044715, %v1149_v3  ;;  %v1151_v9 = vmul.f32 %v1023_v39, %v4994_v24  ;;  %v1753_v50 = vadd.f32 1.0, %v4702_v55  ;;  %v696_v39 = vpop.f32.mrf.mxu0 }
 0x210   : > { %5966 = vst [vmem:[#allocation38_spill] sm:$0xff] %v5011_v29  ;;  %v5016_v0 = vpop.eup %3550  ;;  %3552 = vtanh.f32 %v1527_v8  ;;  %v1406_v30 = vadd.f32 %v1278_v32, %v4972_v61  ;;  %v1152_v48 = vmul.f32 %v1024_v34, %v4998_v49  ;;  %v1757_v40 = vadd.f32 1.0, %v4741_v17 }
 0x211   : > { %3554 = vtanh.f32 %v1528_v35  ;;  %v1531_v15 = vmul.f32 0.7978846, %v1403_v46  ;;  %v1026_v33 = vmul.f32 %v5011_v29, %v5011_v29  ;;  %v1881_v52 = vmul.f32 0.5, %v1753_v50  ;;  %v889_v35 = vpop.f32.mrf.mxu1 }
 0x212   : > { %3556 = vtanh.f32 %v1530_v31  ;;  %v1532_v41 = vmul.f32 0.7978846, %v1404_v5  ;;  %v1405_v3 = vadd.f32 %v1277_v7, %v4980_v28  ;;  %v1885_v55 = vmul.f32 0.5, %v1757_v40 }
 0x213   : > { %3558 = vtanh.f32 %v1529_v63  ;;  %v1279_v8 = vmul.f32 0.044715, %v1151_v9  ;;  %v1534_v19 = vmul.f32 0.7978846, %v1406_v30  ;;  %v1280_v32 = vmul.f32 0.044715, %v1152_v48  ;;  %v698_v9 = vpop.f32.mrf.mxu0 }
 0x214   : > { %v2009_v34 = vmul.f32 %v1881_v52, %v4598_v62  ;;  %v2013_v17 = vmul.f32 %v1885_v55, %v4631_v36  ;;  %3560 = vtanh.f32 %v1531_v15  ;;  %v1154_v46 = vmul.f32 %v1026_v33, %v5011_v29 }
 0x215   : > { %v1755_v50 = vadd.f32 1.0, %v4706_v38  ;;  %v1759_v31 = vadd.f32 1.0, %v4751_v42  ;;  %3562 = vtanh.f32 %v1532_v41  ;;  %v5029_v5 = vmul.f32 0.7978846, %v1405_v3  ;;  %v891_v3 = vpop.f32.mrf.mxu1 }
 0x216   : > { %v2113_v7 = vpack.c.bf16 %v2013_v17, %v2009_v34  ;;  %v5032_v63 = vadd.f32 %v696_v39, %v4129_v58  ;;  %v1407_v62 = vadd.f32 %v1279_v8, %v4994_v24  ;;  %v5036_v48 = vadd.f32 %v889_v35, %v4131_v59 }
 0x217   : > { %v1883_v30 = vmul.f32 0.5, %v1755_v50  ;;  %v1887_v36 = vmul.f32 0.5, %v1759_v31  ;;  %3564 = vtanh.f32 %v1534_v19  ;;  %v1408_v38 = vadd.f32 %v1280_v32, %v4998_v49  ;;  %v700_v32 = vpop.f32.mrf.mxu0 }
 0x218   : > { %5967 = vst [vmem:[#allocation47_spill] sm:$0xff] %v5032_v63  ;;  %5968 = vst [vmem:[#allocation43_spill] sm:$0xff] %v5036_v48  ;;  %2495 = vmatprep.mubr.bf16.mxu0 %v2113_v7  ;;  %v1025_v42 = vmul.f32 %v5032_v63, %v5032_v63  ;;  %v1752_v40 = vadd.f32 1.0, %v4666_v6  ;;  %v1027_v52 = vmul.f32 %v5036_v48, %v5036_v48  ;;  %v1756_v41 = vadd.f32 1.0, %v4727_v43 }
 0x219   : > { %v2011_v15 = vmul.f32 %v1883_v30, %v4601_v45  ;;  %v2015_v33 = vmul.f32 %v1887_v36, %v4645_v20  ;;  %v1282_v55 = vmul.f32 0.044715, %v1154_v46  ;;  %v1754_v8 = vadd.f32 1.0, %v4670_v23  ;;  %v5969_v45 = vld [vmem:[#allocation31_spill] sm:$0xff]  ;;  %v5971_v46 = vld [vmem:[#allocation48_spill] sm:$0xff] }
 0x21a   : > { %v1153_v19 = vmul.f32 %v1025_v42, %v5032_v63  ;;  %v1880_v39 = vmul.f32 0.5, %v1752_v40  ;;  %v1155_v6 = vmul.f32 %v1027_v52, %v5036_v48  ;;  %v1884_v17 = vmul.f32 0.5, %v1756_v41  ;;  %v5972_v36 = vld [vmem:[#allocation51_spill] sm:$0xff] }
 0x21b   : > { %v2115_v34 = vpack.c.bf16 %v2015_v33, %v2011_v15  ;;  %v1758_v35 = vadd.f32 1.0, %v5969_v45  ;;  %v1535_v20 = vmul.f32 0.7978846, %v1407_v62  ;;  %v1882_v31 = vmul.f32 0.5, %v1754_v8  ;;  %v893_v15 = vpop.f32.mrf.mxu1 }
 0x21c   : > { %v1281_v50 = vmul.f32 0.044715, %v1153_v19  ;;  %v5052_v7 = vadd.f32 %v698_v9, %v4125_v56  ;;  %v2008_v30 = vmul.f32 %v1880_v39, %v5971_v46  ;;  %v2012_v23 = vmul.f32 %v1884_v17, %v5972_v36  ;;  %v704_v19 = vpop.f32.mrf.mxu0 }
 0x21d   : > { %v5054_v43 = vpop.eup %3552  ;;  %2656 = vmatprep.mubr.bf16.mxu1 %v2115_v34  ;;  %v1886_v42 = vmul.f32 0.5, %v1758_v35  ;;  %v5059_v40 = vadd.f32 %v891_v3, %v4127_v57  ;;  %v1410_v62 = vadd.f32 %v1282_v55, %v5011_v29  ;;  %v1283_v52 = vmul.f32 0.044715, %v1155_v6  ;;  %v5976_v34 = vld [vmem:[#allocation49_spill] sm:$0xff]  ;;  %v5977_v3 = vld [vmem:[#allocation52_spill] sm:$0xff] }
 0x21e   : > { %5970 = vst [vmem:[#allocation44_spill] sm:$0xff] %v5052_v7  ;;  %v5061_v33 = vpop.eup %3554  ;;  %v1028_v9 = vmul.f32 %v5052_v7, %v5052_v7  ;;  %v5067_v41 = vadd.f32 %v700_v32, %v4129_v58  ;;  %v2112_v8 = vpack.c.bf16 %v2012_v23, %v2008_v30  ;;  %v2010_v17 = vmul.f32 %v1882_v31, %v5976_v34  ;;  %v897_v34 = vpop.f32.mrf.mxu1 }
 0x21f   : > { %5973 = vst [vmem:[#allocation31_spill] sm:$0xff] %v5059_v40  ;;  %v5069_v39 = vpop.eup %3556  ;;  %v2014_v45 = vmul.f32 %v1886_v42, %v5977_v3  ;;  %v1030_v35 = vmul.f32 %v5059_v40, %v5059_v40  ;;  %v1409_v55 = vadd.f32 %v1281_v50, %v5032_v63  ;;  %v5082_v36 = vadd.f32 %v893_v15, %v4131_v59 }
 0x220   : > { %5974 = vst [vmem:[#allocation48_spill] sm:$0xff] %v5067_v41  ;;  %5975 = vst [vmem:[#allocation51_spill] sm:$0xff] %v5069_v39  ;;  %v5075_v46 = vpop.eup %3558  ;;  %v1156_v6 = vmul.f32 %v1028_v9, %v5052_v7  ;;  %v1029_v32 = vmul.f32 %v5067_v41, %v5067_v41  ;;  %v1536_v30 = vmul.f32 0.7978846, %v1408_v38  ;;  %2496 = vmatmul.mubr.bf16.gmra.mxu0 %v2112_v8  ;;  %v1538_v50 = vmul.f32 0.7978846, %v1410_v62 }
 0x221   : > { %5978 = vst [vmem:[#allocation49_spill] sm:$0xff] %v5082_v36  ;;  %v2114_v31 = vpack.c.bf16 %v2014_v45, %v2010_v17  ;;  %v1158_v23 = vmul.f32 %v1030_v35, %v5059_v40  ;;  %v5086_v42 = vadd.f32 %v704_v19, %v4125_v56  ;;  %v5088_v3 = vpop.eup %3560  ;;  %v1411_v9 = vadd.f32 %v1283_v52, %v5036_v48  ;;  %v5979_v52 = vld [vmem:[#allocation28_spill] sm:$0xff] }
 0x222   : > { %v1284_v29 = vmul.f32 0.044715, %v1156_v6  ;;  %v1157_v49 = vmul.f32 %v1029_v32, %v5067_v41  ;;  %v5092_v63 = vpop.eup %3562  ;;  %3566 = vtanh.f32 %v5029_v5  ;;  %v1031_v15 = vmul.f32 %v5082_v36, %v5082_v36 }
 0x223   : > { %2657 = vmatmul.mubr.bf16.gmra.mxu1 %v2114_v31  ;;  %v1286_v38 = vmul.f32 0.044715, %v1158_v23  ;;  %v1032_v19 = vmul.f32 %v5086_v42, %v5086_v42  ;;  %3568 = vtanh.f32 %v1535_v20  ;;  %v1537_v8 = vmul.f32 0.7978846, %v1409_v55 }
 0x224   : > { %v5100_v62 = vadd.f32 %v897_v34, %v4127_v57  ;;  %v1761_v17 = vadd.f32 1.0, %v5979_v52  ;;  %v5103_v45 = vpop.eup %3564  ;;  %3570 = vtanh.f32 %v1536_v30  ;;  %v1412_v5 = vadd.f32 %v1284_v29, %v5052_v7  ;;  %v706_v52 = vpop.f32.mrf.mxu0  ;;  %v5981_v7 = vld [vmem:[#allocation55_spill] sm:$0xff] }
 0x225   : > { %5980 = vst [vmem:[#allocation52_spill] sm:$0xff] %v5103_v45  ;;  %v1160_v35 = vmul.f32 %v1032_v19, %v5086_v42  ;;  %v1765_v6 = vadd.f32 1.0, %v4829_v2  ;;  %3572 = vtanh.f32 %v1538_v50  ;;  %v1539_v32 = vmul.f32 0.7978846, %v1411_v9  ;;  %v5982_v50 = vld [vmem:[#allocation20_spill] sm:$0xff] }
 0x226   : > { %v1285_v31 = vmul.f32 0.044715, %v1157_v49  ;;  %v1889_v23 = vmul.f32 0.5, %v1761_v17  ;;  %v1414_v20 = vadd.f32 %v1286_v38, %v5059_v40  ;;  %v1159_v55 = vmul.f32 %v1031_v15, %v5082_v36  ;;  %v899_v49 = vpop.f32.mrf.mxu1  ;;  %v5983_v17 = vld [vmem:[#allocation21_spill] sm:$0xff] }
 0x227   : > { %v1288_v34 = vmul.f32 0.044715, %v1160_v35  ;;  %v1893_v48 = vmul.f32 0.5, %v1765_v6  ;;  %3574 = vtanh.f32 %v1537_v8  ;;  %v1034_v30 = vmul.f32 %v5100_v62, %v5100_v62 }
 0x228   : > { %v1540_v29 = vmul.f32 0.7978846, %v1412_v5  ;;  %v2017_v2 = vmul.f32 %v1889_v23, %v5981_v7  ;;  %3576 = vtanh.f32 %v1539_v32  ;;  %v1413_v38 = vadd.f32 %v1285_v31, %v5067_v41  ;;  %v708_v5 = vpop.f32.mrf.mxu0  ;;  %v5986_v31 = vld [vmem:[#allocation18_spill] sm:$0xff] }
 0x229   : > { %v1416_v19 = vadd.f32 %v1288_v34, %v5086_v42  ;;  %v2021_v9 = vmul.f32 %v1893_v48, %v5982_v50  ;;  %v1763_v15 = vadd.f32 1.0, %v4792_v44  ;;  %v1767_v35 = vadd.f32 1.0, %v5983_v17  ;;  %v5988_v50 = vld [vmem:[#allocation33_spill] sm:$0xff] }
 0x22a   : > { %v1542_v6 = vmul.f32 0.7978846, %v1414_v20  ;;  %v1287_v8 = vmul.f32 0.044715, %v1159_v55  ;;  %v5119_v61 = vadd.f32 %v706_v52, %v4129_v58  ;;  %v5122_v48 = vadd.f32 %v899_v49, %v4131_v59  ;;  %v901_v20 = vpop.f32.mrf.mxu1  ;;  %v5987_v52 = vld [vmem:[#allocation56_spill] sm:$0xff] }
 0x22b   : > { %v2117_v40 = vpack.c.bf16 %v2021_v9, %v2017_v2  ;;  %v1544_v34 = vmul.f32 0.7978846, %v1416_v19  ;;  %v1891_v25 = vmul.f32 0.5, %v1763_v15  ;;  %v1895_v7 = vmul.f32 0.5, %v1767_v35  ;;  %v5989_v9 = vld [vmem:[#allocation29_spill] sm:$0xff]  ;;  %v710_v35 = vpop.f32.mrf.mxu0 }
 0x22c   : > { %5984 = vst [vmem:[#allocation28_spill] sm:$0xff] %v5119_v61  ;;  %5985 = vst [vmem:[#allocation55_spill] sm:$0xff] %v5122_v48  ;;  %3578 = vtanh.f32 %v1540_v29  ;;  %v1162_v32 = vmul.f32 %v1034_v30, %v5100_v62  ;;  %v1033_v44 = vmul.f32 %v5119_v61, %v5119_v61  ;;  %v1760_v23 = vadd.f32 1.0, %v5986_v31 }
 0x22d   : > { %2503 = vmatprep.mubr.bf16.mxu0 %v2117_v40  ;;  %v1541_v55 = vmul.f32 0.7978846, %v1413_v38  ;;  %v2019_v2 = vmul.f32 %v1891_v25, %v5987_v52  ;;  %v2023_v19 = vmul.f32 %v1895_v7, %v5988_v50  ;;  %v1764_v15 = vadd.f32 1.0, %v5989_v9  ;;  %v5990_v40 = vld [vmem:[#allocation16_spill] sm:$0xff] }
 0x22e   : > { %v1161_v49 = vmul.f32 %v1033_v44, %v5119_v61  ;;  %v1035_v29 = vmul.f32 %v5122_v48, %v5122_v48  ;;  %v1888_v30 = vmul.f32 0.5, %v1760_v23  ;;  %v1762_v17 = vadd.f32 1.0, %v5990_v40  ;;  %v903_v23 = vpop.f32.mrf.mxu1  ;;  %v5993_v40 = vld [vmem:[#allocation53_spill] sm:$0xff] }
 0x22f   : > { %v5135_v41 = vpop.eup %3566  ;;  %3580 = vtanh.f32 %v1544_v34  ;;  %v2119_v31 = vpack.c.bf16 %v2023_v19, %v2019_v2  ;;  %v1892_v38 = vmul.f32 0.5, %v1764_v15  ;;  %v1766_v25 = vadd.f32 1.0, %v5991_v47  ;;  %v5994_v34 = vld [vmem:[#allocation27_spill] sm:$0xff] }
 0x230   : > { %v5138_v52 = vpop.eup %3568  ;;  %v1415_v7 = vadd.f32 %v1287_v8, %v5082_v36  ;;  %v1290_v50 = vmul.f32 0.044715, %v1162_v32  ;;  %v1890_v44 = vmul.f32 0.5, %v1762_v17  ;;  %v5142_v9 = vadd.f32 %v708_v5, %v4125_v56 }
 0x231   : > { %v5144_v45 = vpop.eup %3570  ;;  %2664 = vmatprep.mubr.bf16.mxu1 %v2119_v31  ;;  %v2016_v39 = vmul.f32 %v1888_v30, %v5993_v40  ;;  %v2020_v2 = vmul.f32 %v1892_v38, %v5994_v34  ;;  %v1894_v19 = vmul.f32 0.5, %v1766_v25  ;;  %v5149_v47 = vadd.f32 %v901_v20, %v4127_v57  ;;  %v714_v31 = vpop.f32.mrf.mxu0  ;;  %v5997_v30 = vld [vmem:[#allocation54_spill] sm:$0xff]  ;;  %v5998_v38 = vld [vmem:[#allocation17_spill] sm:$0xff] }
 0x232   : > { %5992 = vst [vmem:[#allocation20_spill] sm:$0xff] %v5144_v45  ;;  %v5151_v15 = vpop.eup %3572  ;;  %v1289_v8 = vmul.f32 0.044715, %v1161_v49  ;;  %v1163_v32 = vmul.f32 %v1035_v29, %v5122_v48  ;;  %v1036_v5 = vmul.f32 %v5142_v9, %v5142_v9  ;;  %v5157_v17 = vadd.f32 %v710_v35, %v4129_v58 }
 0x233   : > { %5995 = vst [vmem:[#allocation21_spill] sm:$0xff] %v5151_v15  ;;  %v2116_v36 = vpack.c.bf16 %v2020_v2, %v2016_v39  ;;  %v2018_v40 = vmul.f32 %v1890_v44, %v5997_v30  ;;  %v2022_v25 = vmul.f32 %v1894_v19, %v5998_v38  ;;  %v1038_v20 = vmul.f32 %v5149_v47, %v5149_v47  ;;  %v907_v15 = vpop.f32.mrf.mxu1 }
 0x234   : > { %5996 = vst [vmem:[#allocation18_spill] sm:$0xff] %v5157_v17  ;;  %v5163_v34 = vpop.eup %3574  ;;  %3582 = vtanh.f32 %v1542_v6  ;;  %v1418_v49 = vadd.f32 %v1290_v50, %v5100_v62  ;;  %v1164_v29 = vmul.f32 %v1036_v5, %v5142_v9  ;;  %v1037_v35 = vmul.f32 %v5157_v17, %v5157_v17 }
 0x235   : > { %5999 = vst [vmem:[#allocation56_spill] sm:$0xff] %v5163_v34  ;;  %2504 = vmatmul.mubr.bf16.gmra.mxu0 %v2116_v36  ;;  %v2118_v39 = vpack.c.bf16 %v2022_v25, %v2018_v40  ;;  %v1166_v44 = vmul.f32 %v1038_v20, %v5149_v47  ;;  %v5171_v2 = vadd.f32 %v903_v23, %v4131_v59  ;;  %v5176_v30 = vpop.eup %3576  ;;  %3584 = vtanh.f32 %v1541_v55 }
 0x236   : > { %v5174_v19 = vadd.f32 %v714_v31, %v4125_v56  ;;  %6001 = vst [vmem:[#allocation29_spill] sm:$0xff] %v5176_v30  ;;  %v1543_v6 = vmul.f32 0.7978846, %v1415_v7  ;;  %v1417_v50 = vadd.f32 %v1289_v8, %v5119_v61  ;;  %v1292_v5 = vmul.f32 0.044715, %v1164_v29  ;;  %v909_v30 = vpop.f32.mrf.mxu1 }
 0x237   : > { %6000 = vst [vmem:[#allocation33_spill] sm:$0xff] %v5171_v2  ;;  %v1291_v38 = vmul.f32 0.044715, %v1163_v32  ;;  %2665 = vmatmul.mubr.bf16.gmra.mxu1 %v2118_v39  ;;  %v1294_v45 = vmul.f32 0.044715, %v1166_v44  ;;  %v5182_v40 = vadd.f32 %v907_v15, %v4127_v57  ;;  %v1165_v25 = vmul.f32 %v1037_v35, %v5157_v17 }
 0x238   : > { %v1040_v36 = vmul.f32 %v5174_v19, %v5174_v19  ;;  %v1546_v23 = vmul.f32 0.7978846, %v1418_v49  ;;  %v1420_v31 = vadd.f32 %v1292_v5, %v5142_v9  ;;  %v1769_v55 = vadd.f32 1.0, %v4878_v26 }
 0x239   : > { %v5187_v7 = vpop.eup %3578  ;;  %v1422_v8 = vadd.f32 %v1294_v45, %v5149_v47  ;;  %v1039_v32 = vmul.f32 %v5171_v2, %v5171_v2  ;;  %v1042_v15 = vmul.f32 %v5182_v40, %v5182_v40  ;;  %3586 = vtanh.f32 %v1543_v6 }
 0x23a   : > { %6002 = vst [vmem:[#allocation16_spill] sm:$0xff] %v5187_v7  ;;  %v1168_v20 = vmul.f32 %v1040_v36, %v5174_v19  ;;  %v1545_v49 = vmul.f32 0.7978846, %v1417_v50  ;;  %v1548_v29 = vmul.f32 0.7978846, %v1420_v31  ;;  %v1773_v39 = vadd.f32 1.0, %v4925_v21  ;;  %v716_v31 = vpop.f32.mrf.mxu0 }
 0x23b   : > { %v1419_v35 = vadd.f32 %v1291_v38, %v5122_v48  ;;  %v1550_v26 = vmul.f32 0.7978846, %v1422_v8  ;;  %v1170_v5 = vmul.f32 %v1042_v15, %v5182_v40  ;;  %3588 = vtanh.f32 %v1546_v23  ;;  %v6003_v8 = vld [vmem:[#allocation19_spill] sm:$0xff]  ;;  %v911_v48 = vpop.f32.mrf.mxu1 }
 0x23c   : > { %v1296_v44 = vmul.f32 0.044715, %v1168_v20  ;;  %v3581_v45 = vpop.eup %3580  ;;  %v1897_v61 = vmul.f32 0.5, %v1769_v55  ;;  %3590 = vtanh.f32 %v1548_v29  ;;  %v1293_v7 = vmul.f32 0.044715, %v1165_v25 }
 0x23d   : > { %v1167_v36 = vmul.f32 %v1039_v32, %v5171_v2  ;;  %3592 = vtanh.f32 %v1545_v49  ;;  %v1901_v50 = vmul.f32 0.5, %v1773_v39  ;;  %v1800_v21 = vadd.f32 1.0, %v3581_v45  ;;  %v6006_v45 = vld [vmem:[#allocation25_spill] sm:$0xff] }
 0x23e   : > { %v1424_v6 = vadd.f32 %v1296_v44, %v5174_v19  ;;  %v1547_v34 = vmul.f32 0.7978846, %v1419_v35  ;;  %3594 = vtanh.f32 %v1550_v26  ;;  %v1298_v38 = vmul.f32 0.044715, %v1170_v5 }
 0x23f   : > { %v2025_v20 = vmul.f32 %v1897_v61, %v6003_v8  ;;  %v2029_v15 = vmul.f32 %v1901_v50, %v4809_v60  ;;  %v1771_v23 = vadd.f32 1.0, %v4901_v53  ;;  %v1775_v25 = vadd.f32 1.0, %v4936_v1  ;;  %v718_v60 = vpop.f32.mrf.mxu0 }
 0x240   : > { %v1421_v32 = vadd.f32 %v1293_v7, %v5157_v17  ;;  %v1295_v49 = vmul.f32 0.044715, %v1167_v36  ;;  %v5208_v29 = vadd.f32 %v716_v31, %v4129_v58  ;;  %v5211_v39 = vadd.f32 %v909_v30, %v4131_v59  ;;  %v6007_v30 = vld [vmem:[#allocation23_spill] sm:$0xff] }
 0x241   : > { %v5204_v55 = vpop.eup %3582  ;;  %v1552_v35 = vmul.f32 0.7978846, %v1424_v6  ;;  %v2121_v26 = vpack.c.bf16 %v2029_v15, %v2025_v20  ;;  %v1899_v61 = vmul.f32 0.5, %v1771_v23  ;;  %v1903_v44 = vmul.f32 0.5, %v1775_v25  ;;  %v6008_v23 = vld [vmem:[#allocation41_spill] sm:$0xff] }
 0x242   : > { %6004 = vst [vmem:[#allocation45_spill] sm:$0xff] %v5204_v55  ;;  %6005 = vst [vmem:[#allocation53_spill] sm:$0xff] %v5211_v39  ;;  %v5213_v5 = vpop.eup %3584  ;;  %v1426_v53 = vadd.f32 %v1298_v38, %v5182_v40  ;;  %v1041_v1 = vmul.f32 %v5208_v29, %v5208_v29  ;;  %v1043_v7 = vmul.f32 %v5211_v39, %v5211_v39  ;;  %v1768_v36 = vadd.f32 1.0, %v6006_v45 }
 0x243   : > { %2511 = vmatprep.mubr.bf16.mxu0 %v2121_v26  ;;  %v2027_v50 = vmul.f32 %v1899_v61, %v6007_v30  ;;  %v2031_v6 = vmul.f32 %v1903_v44, %v4821_v51  ;;  %v1772_v31 = vadd.f32 1.0, %v4913_v37  ;;  %v1770_v8 = vadd.f32 1.0, %v4869_v18  ;;  %v720_v61 = vpop.f32.mrf.mxu0 }
 0x244   : > { %v1169_v20 = vmul.f32 %v1041_v1, %v5208_v29  ;;  %v1171_v38 = vmul.f32 %v1043_v7, %v5211_v39  ;;  %v1896_v15 = vmul.f32 0.5, %v1768_v36  ;;  %v1774_v25 = vadd.f32 1.0, %v6008_v23  ;;  %v6010_v1 = vld [vmem:[#allocation34_spill] sm:$0xff]  ;;  %v6011_v36 = vld [vmem:[#allocation39_spill] sm:$0xff] }
 0x245   : > { %v2123_v17 = vpack.c.bf16 %v2031_v6, %v2027_v50  ;;  %v1900_v55 = vmul.f32 0.5, %v1772_v31  ;;  %v1898_v45 = vmul.f32 0.5, %v1770_v8  ;;  %v5229_v26 = vadd.f32 %v718_v60, %v4125_v56  ;;  %v6012_v8 = vld [vmem:[#allocation15_spill] sm:$0xff] }
 0x246   : > { %v5231_v51 = vpop.eup %3586  ;;  %v1423_v37 = vadd.f32 %v1295_v49, %v5171_v2  ;;  %3596 = vtanh.f32 %v1552_v35  ;;  %v1297_v18 = vmul.f32 0.044715, %v1169_v20  ;;  %v1902_v44 = vmul.f32 0.5, %v1774_v25 }
 0x247   : > { %6009 = vst [vmem:[#allocation27_spill] sm:$0xff] %v5231_v51  ;;  %2672 = vmatprep.mubr.bf16.mxu1 %v2123_v17  ;;  %v2024_v7 = vmul.f32 %v1896_v15, %v6010_v1  ;;  %v2028_v30 = vmul.f32 %v1900_v55, %v6011_v36  ;;  %v1044_v50 = vmul.f32 %v5229_v26, %v5229_v26  ;;  %v1299_v31 = vmul.f32 0.044715, %v1171_v38  ;;  %v6013_v51 = vld [vmem:[#allocation24_spill] sm:$0xff]  ;;  %v724_v1 = vpop.f32.mrf.mxu0 }
 0x248   : > { %v5239_v6 = vadd.f32 %v911_v48, %v4127_v57  ;;  %v3589_v60 = vpop.eup %3588  ;;  %v2026_v23 = vmul.f32 %v1898_v45, %v6012_v8  ;;  %v2030_v49 = vmul.f32 %v1902_v44, %v6013_v51  ;;  %v5244_v35 = vadd.f32 %v720_v61, %v4129_v58 }
 0x249   : > { %v3591_v17 = vpop.eup %3590  ;;  %v1554_v20 = vmul.f32 0.7978846, %v1426_v53  ;;  %v2120_v15 = vpack.c.bf16 %v2028_v30, %v2024_v7  ;;  %v1172_v55 = vmul.f32 %v1044_v50, %v5229_v26  ;;  %v1928_v36 = vmul.f32 0.5, %v1800_v21  ;;  %v913_v7 = vpop.f32.mrf.mxu1 }
 0x24a   : > { %v1046_v25 = vmul.f32 %v5239_v6, %v5239_v6  ;;  %v5249_v48 = vpop.eup %3592  ;;  %3598 = vtanh.f32 %v1547_v34  ;;  %v1425_v38 = vadd.f32 %v1297_v18, %v5208_v29  ;;  %v2122_v45 = vpack.c.bf16 %v2030_v49, %v2026_v23 }
 0x24b   : > { %v3595_v51 = vpop.eup %3594  ;;  %v1802_v44 = vadd.f32 1.0, %v3589_v60  ;;  %v1549_v61 = vmul.f32 0.7978846, %v1421_v32  ;;  %2512 = vmatmul.mubr.bf16.gmra.mxu0 %v2120_v15  ;;  %v1300_v8 = vmul.f32 0.044715, %v1172_v55  ;;  %v1804_v30 = vadd.f32 1.0, %v3591_v17 }
 0x24c   : > { %v1174_v53 = vmul.f32 %v1046_v25, %v5239_v6  ;;  %v1427_v50 = vadd.f32 %v1299_v31, %v5211_v39  ;;  %2673 = vmatmul.mubr.bf16.gmra.mxu1 %v2122_v45  ;;  %v1045_v2 = vmul.f32 %v5244_v35, %v5244_v35  ;;  %v5257_v34 = vadd.f32 %v724_v1, %v4125_v56  ;;  %v917_v45 = vpop.f32.mrf.mxu1 }
 0x24d   : > { %v1551_v21 = vmul.f32 0.7978846, %v1423_v37  ;;  %3600 = vtanh.f32 %v1554_v20  ;;  %v1428_v18 = vadd.f32 %v1300_v8, %v5229_v26  ;;  %v1806_v60 = vadd.f32 1.0, %v3595_v51 }
 0x24e   : > { %v1302_v32 = vmul.f32 0.044715, %v1174_v53  ;;  %v1553_v23 = vmul.f32 0.7978846, %v1425_v38  ;;  %v5261_v49 = vadd.f32 %v913_v7, %v4131_v59  ;;  %v1048_v31 = vmul.f32 %v5257_v34, %v5257_v34 }
 0x24f   : > { %v1930_v17 = vmul.f32 0.5, %v1802_v44  ;;  %3602 = vtanh.f32 %v1549_v61  ;;  %v1556_v15 = vmul.f32 0.7978846, %v1428_v18  ;;  %v1932_v25 = vmul.f32 0.5, %v1804_v30 }
 0x250   : > { %6014 = vst [vmem:[#allocation54_spill] sm:$0xff] %v5261_v49  ;;  %v1430_v55 = vadd.f32 %v1302_v32, %v5239_v6  ;;  %v1555_v1 = vmul.f32 0.7978846, %v1427_v50  ;;  %v1173_v37 = vmul.f32 %v1045_v2, %v5244_v35  ;;  %v1176_v20 = vmul.f32 %v1048_v31, %v5257_v34 }
 0x251   : > { %v5269_v38 = vmul.f32 %v1928_v36, %v5086_v42  ;;  %3604 = vtanh.f32 %v1551_v21  ;;  %v1934_v51 = vmul.f32 0.5, %v1806_v60  ;;  %v1047_v44 = vmul.f32 %v5261_v49, %v5261_v49  ;;  %v726_v60 = vpop.f32.mrf.mxu0 }
 0x252   : > { %3606 = vtanh.f32 %v1553_v23  ;;  %v1304_v61 = vmul.f32 0.044715, %v1176_v20  ;;  %v1558_v53 = vmul.f32 0.7978846, %v1430_v55  ;;  %v5274_v7 = vadd.f32 %v917_v45, %v4127_v57  ;;  %v919_v23 = vpop.f32.mrf.mxu1  ;;  %v6019_v20 = vld [vmem:[#allocation22_spill] sm:$0xff] }
 0x253   : > { %6015 = vst [vmem:[#allocation17_spill] sm:$0xff] %v5269_v38  ;;  %v3597_v8 = vpop.eup %3596  ;;  %3608 = vtanh.f32 %v1556_v15  ;;  %v1777_v2 = vadd.f32 1.0, %v4982_v54  ;;  %v5278_v30 = vmul.f32 %v1930_v17, %v5100_v62  ;;  %v5281_v42 = vmul.f32 %v1932_v25, %v5142_v9 }
 0x254   : > { %3610 = vtanh.f32 %v1555_v1  ;;  %v1301_v36 = vmul.f32 0.044715, %v1173_v37  ;;  %v1432_v50 = vadd.f32 %v1304_v61, %v5257_v34  ;;  %v1781_v21 = vadd.f32 1.0, %v5016_v0 }
 0x255   : > { %6016 = vst [vmem:[#allocation19_spill] sm:$0xff] %v5278_v30  ;;  %6017 = vst [vmem:[#allocation25_spill] sm:$0xff] %v5281_v42  ;;  %v1905_v18 = vmul.f32 0.5, %v1777_v2  ;;  %v1779_v32 = vadd.f32 1.0, %v4988_v4  ;;  %v5287_v31 = vmul.f32 %v1934_v51, %v5149_v47  ;;  %v1808_v54 = vadd.f32 1.0, %v3597_v8  ;;  %v6020_v51 = vld [vmem:[#allocation26_spill] sm:$0xff] }
 0x256   : > { %v1175_v62 = vmul.f32 %v1047_v44, %v5261_v49  ;;  %v1783_v9 = vadd.f32 1.0, %v5054_v43  ;;  %3612 = vtanh.f32 %v1558_v53  ;;  %v1050_v15 = vmul.f32 %v5274_v7, %v5274_v7 }
 0x257   : > { %6018 = vst [vmem:[#allocation23_spill] sm:$0xff] %v5287_v31  ;;  %v5291_v17 = vpop.eup %3598  ;;  %v1909_v0 = vmul.f32 0.5, %v1781_v21  ;;  %v1907_v55 = vmul.f32 0.5, %v1779_v32  ;;  %v1429_v4 = vadd.f32 %v1301_v36, %v5244_v35  ;;  %v5297_v1 = vadd.f32 %v726_v60, %v4129_v58  ;;  %v728_v21 = vpop.f32.mrf.mxu0  ;;  %v6023_v31 = vld [vmem:[#allocation46_spill] sm:$0xff] }
 0x258   : > { %v1911_v25 = vmul.f32 0.5, %v1783_v9  ;;  %v5300_v47 = vadd.f32 %v919_v23, %v4131_v59  ;;  %v1560_v37 = vmul.f32 0.7978846, %v1432_v50  ;;  %v2033_v43 = vmul.f32 %v1905_v18, %v6019_v20  ;;  %v921_v60 = vpop.f32.mrf.mxu1 }
 0x259   : > { %v2037_v45 = vmul.f32 %v1909_v0, %v4895_v10  ;;  %v2035_v44 = vmul.f32 %v1907_v55, %v6020_v51  ;;  %v1049_v53 = vmul.f32 %v5297_v1, %v5297_v1  ;;  %v1776_v36 = vadd.f32 1.0, %v4951_v22 }
 0x25a   : > { %v3601_v61 = vpop.eup %3600  ;;  %v2039_v8 = vmul.f32 %v1911_v25, %v4907_v13  ;;  %v1051_v2 = vmul.f32 %v5300_v47, %v5300_v47  ;;  %v1178_v50 = vmul.f32 %v1050_v15, %v5274_v7  ;;  %v1780_v18 = vadd.f32 1.0, %v5000_v16 }
 0x25b   : > { %v2125_v32 = vpack.c.bf16 %v2037_v45, %v2033_v43  ;;  %v1778_v10 = vadd.f32 1.0, %v4974_v12  ;;  %v1303_v13 = vmul.f32 0.044715, %v1175_v62  ;;  %v1177_v0 = vmul.f32 %v1049_v53, %v5297_v1  ;;  %v730_v45 = vpop.f32.mrf.mxu0  ;;  %v6022_v53 = vld [vmem:[#allocation35_spill] sm:$0xff] }
 0x25c   : > { %v5314_v23 = vpop.eup %3602  ;;  %v2127_v9 = vpack.c.bf16 %v2039_v8, %v2035_v44  ;;  %v1904_v55 = vmul.f32 0.5, %v1776_v36  ;;  %v1908_v25 = vmul.f32 0.5, %v1780_v18  ;;  %v1782_v22 = vadd.f32 1.0, %v5006_v27  ;;  %v6021_v8 = vld [vmem:[#allocation42_spill] sm:$0xff] }
 0x25d   : > { %2519 = vmatprep.mubr.bf16.mxu0 %v2125_v32  ;;  %v1906_v20 = vmul.f32 0.5, %v1778_v10  ;;  %v5319_v15 = vadd.f32 %v728_v21, %v4125_v56  ;;  %v1810_v16 = vadd.f32 1.0, %v3601_v61  ;;  %3614 = vtanh.f32 %v1560_v37  ;;  %v923_v32 = vpop.f32.mrf.mxu1  ;;  %v734_v30 = vpop.f32.mrf.mxu0 }
 0x25e   : > { %v5321_v43 = vpop.eup %3604  ;;  %2680 = vmatprep.mubr.bf16.mxu1 %v2127_v9  ;;  %v1179_v12 = vmul.f32 %v1051_v2, %v5300_v47  ;;  %v5325_v62 = vadd.f32 %v921_v60, %v4127_v57  ;;  %v1306_v44 = vmul.f32 0.044715, %v1178_v50  ;;  %v2032_v27 = vmul.f32 %v1904_v55, %v6021_v8  ;;  %v6024_v8 = vld [vmem:[#allocation40_spill] sm:$0xff] }
 0x25f   : > { %v5327_v51 = vpop.eup %3606  ;;  %v2036_v36 = vmul.f32 %v1908_v25, %v6022_v53  ;;  %v1910_v21 = vmul.f32 0.5, %v1782_v22  ;;  %v1557_v10 = vmul.f32 0.7978846, %v1429_v4  ;;  %v1431_v37 = vadd.f32 %v1303_v13, %v5261_v49 }
 0x260   : > { %v3609_v18 = vpop.eup %3608  ;;  %v1052_v61 = vmul.f32 %v5319_v15, %v5319_v15  ;;  %v1054_v2 = vmul.f32 %v5325_v62, %v5325_v62  ;;  %v1305_v9 = vmul.f32 0.044715, %v1177_v0  ;;  %v2034_v55 = vmul.f32 %v1906_v20, %v6023_v31  ;;  %v927_v0 = vpop.f32.mrf.mxu1 }
 0x261   : > { %v5336_v60 = vpop.eup %3610  ;;  %v2124_v50 = vpack.c.bf16 %v2036_v36, %v2032_v27  ;;  %v2038_v25 = vmul.f32 %v1910_v21, %v6024_v8  ;;  %v1936_v22 = vmul.f32 0.5, %v1808_v54  ;;  %v1307_v53 = vmul.f32 0.044715, %v1179_v12 }
 0x262   : > { %v1180_v4 = vmul.f32 %v1052_v61, %v5319_v15  ;;  %v1182_v13 = vmul.f32 %v1054_v2, %v5325_v62  ;;  %v1812_v49 = vadd.f32 1.0, %v3609_v18  ;;  %v1434_v39 = vadd.f32 %v1306_v44, %v5274_v7  ;;  %v929_v8 = vpop.f32.mrf.mxu1 }
 0x263   : > { %2520 = vmatmul.mubr.bf16.gmra.mxu0 %v2124_v50  ;;  %v2126_v42 = vpack.c.bf16 %v2038_v25, %v2034_v55  ;;  %v5344_v38 = vadd.f32 %v730_v45, %v4129_v58  ;;  %v3613_v27 = vpop.eup %3612  ;;  %v1938_v31 = vmul.f32 0.5, %v1810_v16  ;;  %3616 = vtanh.f32 %v1557_v10 }
 0x264   : > { %v1308_v20 = vmul.f32 0.044715, %v1180_v4  ;;  %v5347_v54 = vadd.f32 %v923_v32, %v4131_v59  ;;  %v1559_v12 = vmul.f32 0.7978846, %v1431_v37  ;;  %v1433_v36 = vadd.f32 %v1305_v9, %v5297_v1  ;;  %v736_v32 = vpop.f32.mrf.mxu0 }
 0x265   : > { %2681 = vmatmul.mubr.bf16.gmra.mxu1 %v2126_v42  ;;  %v1053_v44 = vmul.f32 %v5344_v38, %v5344_v38  ;;  %v5353_v21 = vadd.f32 %v734_v30, %v4125_v56  ;;  %v1435_v45 = vadd.f32 %v1307_v53, %v5300_v47  ;;  %v1310_v18 = vmul.f32 0.044715, %v1182_v13 }
 0x266   : > { %v1055_v16 = vmul.f32 %v5347_v54, %v5347_v54  ;;  %v5359_v10 = vadd.f32 %v927_v0, %v4127_v57  ;;  %v1940_v37 = vmul.f32 0.5, %v1812_v49  ;;  %v1814_v61 = vadd.f32 1.0, %v3613_v27  ;;  %v738_v27 = vpop.f32.mrf.mxu0 }
 0x267   : > { %6025 = vst [vmem:[#allocation41_spill] sm:$0xff] %v5353_v21  ;;  %v1562_v2 = vmul.f32 0.7978846, %v1434_v39  ;;  %v1181_v42 = vmul.f32 %v1053_v44, %v5344_v38  ;;  %v1436_v9 = vadd.f32 %v1308_v20, %v5319_v15  ;;  %v1056_v50 = vmul.f32 %v5353_v21, %v5353_v21 }
 0x268   : > { %6026 = vst [vmem:[#allocation34_spill] sm:$0xff] %v5359_v10  ;;  %v1183_v30 = vmul.f32 %v1055_v16, %v5347_v54  ;;  %v1785_v55 = vadd.f32 1.0, %v5075_v46  ;;  %v5368_v25 = vmul.f32 %v1936_v22, %v5174_v19  ;;  %3618 = vtanh.f32 %v1559_v12 }
 0x269   : > { %v1561_v53 = vmul.f32 0.7978846, %v1433_v36  ;;  %v1058_v39 = vmul.f32 %v5359_v10, %v5359_v10  ;;  %v1563_v49 = vmul.f32 0.7978846, %v1435_v45  ;;  %v1438_v4 = vadd.f32 %v1310_v18, %v5325_v62  ;;  %v931_v18 = vpop.f32.mrf.mxu1 }
 0x26a   : > { %v1309_v13 = vmul.f32 0.044715, %v1181_v42  ;;  %v1789_v0 = vadd.f32 1.0, %v5135_v41  ;;  %v3615_v20 = vpop.eup %3614  ;;  %v5375_v44 = vmul.f32 %v1938_v31, %v5182_v40  ;;  %v5378_v46 = vmul.f32 %v1940_v37, %v5229_v26  ;;  %v740_v37 = vpop.f32.mrf.mxu0 }
 0x26b   : > { %v5380_v19 = vmul.f32 0.5, %v1814_v61  ;;  %3620 = vtanh.f32 %v1562_v2  ;;  %v1564_v22 = vmul.f32 0.7978846, %v1436_v9  ;;  %v1311_v12 = vmul.f32 0.044715, %v1183_v30 }
 0x26c   : > { %v1184_v36 = vmul.f32 %v1056_v50, %v5353_v21  ;;  %v1913_v45 = vmul.f32 0.5, %v1785_v55  ;;  %3622 = vtanh.f32 %v1561_v53  ;;  %v1186_v41 = vmul.f32 %v1058_v39, %v5359_v10  ;;  %v5395_v39 = vpop.f32.mrf.mxu0 }
 0x26d   : > { %v1917_v16 = vmul.f32 0.5, %v1789_v0  ;;  %v1787_v42 = vadd.f32 1.0, %v5088_v3  ;;  %v1816_v40 = vadd.f32 1.0, %v3615_v20  ;;  %3624 = vtanh.f32 %v1563_v49  ;;  %v5393_v3 = vpop.f32.mrf.mxu1 }
 0x26e   : > { %v1566_v31 = vmul.f32 0.7978846, %v1438_v4  ;;  %v1437_v26 = vadd.f32 %v1309_v13, %v5344_v38  ;;  %v2041_v61 = vmul.f32 %v1913_v45, %v4945_v11  ;;  %v1791_v9 = vadd.f32 1.0, %v5138_v52 }
 0x26f   : > { %v2045_v2 = vmul.f32 %v1917_v16, %v4980_v28  ;;  %v1915_v30 = vmul.f32 0.5, %v1787_v42  ;;  %3626 = vtanh.f32 %v1564_v22  ;;  %v1439_v50 = vadd.f32 %v1311_v12, %v5347_v54  ;;  %v5406_v22 = vpop.f32.mrf.mxu1 }
 0x270   : > { %v1312_v55 = vmul.f32 0.044715, %v1184_v36  ;;  %v5391_v53 = vadd.f32 %v736_v32, %v4129_v58  ;;  %v5397_v49 = vpop.eup %3616  ;;  %v1314_v4 = vmul.f32 0.044715, %v1186_v41  ;;  %v1919_v13 = vmul.f32 0.5, %v1791_v9  ;;  %6028 = vst [vmem:[#allocation15_spill] sm:$0xff] %v5406_v22 }
 0x271   : > { %v2129_v11 = vpack.c.bf16 %v2045_v2, %v2041_v61  ;;  %v5400_v28 = vadd.f32 %v929_v8, %v4131_v59  ;;  %v1565_v52 = vmul.f32 0.7978846, %v1437_v26  ;;  %v1784_v20 = vadd.f32 1.0, %v5061_v33  ;;  %v6029_v8 = vld [vmem:[#allocation51_spill] sm:$0xff]  ;;  %v6030_v61 = vld [vmem:[#allocation52_spill] sm:$0xff]  ;;  %v5415_v2 = vpop.f32.mrf.mxu0  ;;  %v6033_v22 = vld [vmem:[#allocation30_spill] sm:$0xff] }
 0x272   : > { %v1057_v0 = vmul.f32 %v5391_v53, %v5391_v53  ;;  %v1788_v32 = vadd.f32 1.0, %v5092_v63  ;;  %v2043_v12 = vmul.f32 %v1915_v30, %v4949_v14  ;;  %v2047_v36 = vmul.f32 %v1919_v13, %v4994_v24  ;;  %v6032_v13 = vld [vmem:[#allocation36_spill] sm:$0xff] }
 0x273   : > { %6027 = vst [vmem:[#allocation39_spill] sm:$0xff] %v5400_v28  ;;  %2527 = vmatprep.mubr.bf16.mxu0 %v2129_v11  ;;  %v1059_v45 = vmul.f32 %v5400_v28, %v5400_v28  ;;  %v1786_v41 = vadd.f32 1.0, %v6029_v8  ;;  %v1912_v42 = vmul.f32 0.5, %v1784_v20  ;;  %v1790_v33 = vadd.f32 1.0, %v6030_v61 }
 0x274   : > { %v1185_v16 = vmul.f32 %v1057_v0, %v5391_v53  ;;  %v1916_v26 = vmul.f32 0.5, %v1788_v32  ;;  %v2131_v63 = vpack.c.bf16 %v2047_v36, %v2043_v12  ;;  %v5419_v14 = vadd.f32 %v738_v27, %v4125_v56  ;;  %v5425_v32 = vpop.f32.mrf.mxu1 }
 0x275   : > { %v1187_v9 = vmul.f32 %v1059_v45, %v5400_v28  ;;  %v1914_v11 = vmul.f32 0.5, %v1786_v41  ;;  %v5421_v24 = vpop.eup %3618  ;;  %v2040_v8 = vmul.f32 %v1912_v42, %v6032_v13  ;;  %v1918_v20 = vmul.f32 0.5, %v1790_v33  ;;  %v6036_v13 = vld [vmem:[#allocation37_spill] sm:$0xff] }
 0x276   : > { %6031 = vst [vmem:[#allocation24_spill] sm:$0xff] %v5419_v14  ;;  %v1313_v30 = vmul.f32 0.044715, %v1185_v16  ;;  %v2044_v0 = vmul.f32 %v1916_v26, %v6033_v22  ;;  %v1440_v61 = vadd.f32 %v1312_v55, %v5353_v21  ;;  %2688 = vmatprep.mubr.bf16.mxu1 %v2131_v63  ;;  %v1060_v36 = vmul.f32 %v5419_v14, %v5419_v14  ;;  %v6035_v16 = vld [vmem:[#allocation50_spill] sm:$0xff]  ;;  %v5435_v26 = vpop.f32.mrf.mxu0 }
 0x277   : > { %v1315_v12 = vmul.f32 0.044715, %v1187_v9  ;;  %v5431_v56 = vadd.f32 %v931_v18, %v4127_v57  ;;  %v1567_v45 = vmul.f32 0.7978846, %v1439_v50  ;;  %v2042_v42 = vmul.f32 %v1914_v11, %v6035_v16 }
 0x278   : > { %v3621_v27 = vpop.eup %3620  ;;  %v2128_v41 = vpack.c.bf16 %v2044_v0, %v2040_v8  ;;  %v2046_v22 = vmul.f32 %v1918_v20, %v6036_v13  ;;  %v1442_v33 = vadd.f32 %v1314_v4, %v5359_v10  ;;  %v1441_v55 = vadd.f32 %v1313_v30, %v5391_v53  ;;  %v5449_v8 = vpop.f32.mrf.mxu1 }
 0x279   : > { %6034 = vst [vmem:[#allocation22_spill] sm:$0xff] %v5431_v56  ;;  %v1188_v63 = vmul.f32 %v1060_v36, %v5419_v14  ;;  %v1062_v9 = vmul.f32 %v5431_v56, %v5431_v56  ;;  %v5442_v57 = vpop.eup %3622  ;;  %v5444_v18 = vmul.f32 0.5, %v1816_v40  ;;  %3628 = vtanh.f32 %v1566_v31  ;;  %v5461_v31 = vpop.f32.mrf.mxu0 }
 0x27a   : > { %2528 = vmatmul.mubr.bf16.gmra.mxu0 %v2128_v41  ;;  %v2130_v50 = vpack.c.bf16 %v2046_v22, %v2042_v42  ;;  %v5447_v11 = vadd.f32 %v740_v37, %v4129_v58  ;;  %v5451_v4 = vpop.eup %3624  ;;  %v1568_v30 = vmul.f32 0.7978846, %v1440_v61  ;;  %v1443_v0 = vadd.f32 %v1315_v12, %v5400_v28 }
 0x27b   : > { %v1316_v20 = vmul.f32 0.044715, %v1188_v63  ;;  %v1190_v36 = vmul.f32 %v1062_v9, %v5431_v56  ;;  %v1818_v16 = vadd.f32 1.0, %v3621_v27  ;;  %3630 = vtanh.f32 %v1565_v52  ;;  %v6038_v27 = vld [vmem:[#allocation56_spill] sm:$0xff]  ;;  %v5469_v63 = vpop.f32.mrf.mxu1  ;;  %v6040_v9 = vld [vmem:[#allocation29_spill] sm:$0xff]  ;;  %v5474_v10 = vpop.f32.mrf.mxu0 }
 0x27c   : > { %2689 = vmatmul.mubr.bf16.gmra.mxu1 %v2130_v50  ;;  %v1061_v40 = vmul.f32 %v5447_v11, %v5447_v11  ;;  %v5459_v58 = vadd.f32 %v5393_v3, %v4131_v59  ;;  %v3627_v37 = vpop.eup %3626  ;;  %3632 = vtanh.f32 %v1567_v45  ;;  %v1570_v61 = vmul.f32 0.7978846, %v1442_v33  ;;  %6039 = vst [vmem:[#allocation42_spill] sm:$0xff] %v5469_v63 }
 0x27d   : > { %v1569_v41 = vmul.f32 0.7978846, %v1441_v55  ;;  %v1444_v12 = vadd.f32 %v1316_v20, %v5419_v14  ;;  %v1793_v13 = vadd.f32 1.0, %v6038_v27  ;;  %v1797_v22 = vadd.f32 1.0, %v5213_v5  ;;  %v6041_v20 = vld [vmem:[#allocation27_spill] sm:$0xff] }
 0x27e   : > { %6037 = vst [vmem:[#allocation26_spill] sm:$0xff] %v5459_v58  ;;  %v1189_v42 = vmul.f32 %v1061_v40, %v5447_v11  ;;  %v1063_v52 = vmul.f32 %v5459_v58, %v5459_v58  ;;  %3634 = vtanh.f32 %v1568_v30  ;;  %v1571_v59 = vmul.f32 0.7978846, %v1443_v0 }
 0x27f   : > { %v1318_v3 = vmul.f32 0.044715, %v1190_v36  ;;  %v1795_v45 = vadd.f32 1.0, %v6040_v9  ;;  %v1921_v50 = vmul.f32 0.5, %v1793_v13  ;;  %v1799_v40 = vadd.f32 1.0, %v6041_v20  ;;  %v5481_v36 = vpop.f32.mrf.mxu1  ;;  %v6044_v13 = vld [vmem:[#allocation48_spill] sm:$0xff] }
 0x280   : > { %v1317_v33 = vmul.f32 0.044715, %v1189_v42  ;;  %v1191_v55 = vmul.f32 %v1063_v52, %v5459_v58  ;;  %v5476_v21 = vmul.f32 0.5, %v1818_v16  ;;  %3636 = vtanh.f32 %v1570_v61  ;;  %6042 = vst [vmem:[#allocation35_spill] sm:$0xff] %v5481_v36  ;;  %v6043_v42 = vld [vmem:[#allocation47_spill] sm:$0xff] }
 0x281   : > { %v1572_v27 = vmul.f32 0.7978846, %v1444_v12  ;;  %v1925_v5 = vmul.f32 0.5, %v1797_v22  ;;  %v5478_v14 = vadd.f32 1.0, %v3627_v37  ;;  %3638 = vtanh.f32 %v1569_v41  ;;  %v5487_v37 = vpop.f32.mrf.mxu0  ;;  %v6045_v22 = vld [vmem:[#allocation43_spill] sm:$0xff] }
 0x282   : > { %v1445_v30 = vadd.f32 %v1317_v33, %v5447_v11  ;;  %v1319_v0 = vmul.f32 0.044715, %v1191_v55  ;;  %3640 = vtanh.f32 %v1571_v59  ;;  %v2049_v52 = vmul.f32 %v1921_v50, %v6043_v42  ;;  %v6046_v55 = vld [vmem:[#allocation20_spill] sm:$0xff]  ;;  %v6047_v50 = vld [vmem:[#allocation49_spill] sm:$0xff] }
 0x283   : > { %v2053_v9 = vmul.f32 %v1925_v5, %v6044_v13  ;;  %v1923_v20 = vmul.f32 0.5, %v1795_v45  ;;  %v1446_v16 = vadd.f32 %v1318_v3, %v5431_v56  ;;  %v1927_v12 = vmul.f32 0.5, %v1799_v40  ;;  %v6048_v5 = vld [vmem:[#allocation16_spill] sm:$0xff]  ;;  %v5493_v13 = vpop.f32.mrf.mxu1  ;;  %v6050_v40 = vld [vmem:[#allocation21_spill] sm:$0xff] }
 0x284   : > { %v1573_v28 = vmul.f32 0.7978846, %v1445_v30  ;;  %v1447_v61 = vadd.f32 %v1319_v0, %v5459_v58  ;;  %3642 = vtanh.f32 %v1572_v27  ;;  %v1792_v36 = vadd.f32 1.0, %v6046_v55  ;;  %6049 = vst [vmem:[#allocation46_spill] sm:$0xff] %v5493_v13  ;;  %v6051_v56 = vld [vmem:[#allocation45_spill] sm:$0xff]  ;;  %v6057_v13 = vld [vmem:[#allocation31_spill] sm:$0xff] }
 0x285   : > { %v2133_v41 = vpack.c.bf16 %v2053_v9, %v2049_v52  ;;  %v2051_v33 = vmul.f32 %v1923_v20, %v6045_v22  ;;  %v2055_v42 = vmul.f32 %v1927_v12, %v6047_v50  ;;  %v1796_v45 = vadd.f32 1.0, %v6048_v5  ;;  %v6053_v22 = vld [vmem:[#allocation32_spill] sm:$0xff] }
 0x286   : > { %3644 = vtanh.f32 %v1573_v28  ;;  %v1575_v59 = vmul.f32 0.7978846, %v1447_v61  ;;  %v3629_v3 = vpop.eup %3628  ;;  %v1920_v30 = vmul.f32 0.5, %v1792_v36  ;;  %v1794_v0 = vadd.f32 1.0, %v6050_v40  ;;  %v5499_v61 = vpop.f32.mrf.mxu0  ;;  %v6054_v40 = vld [vmem:[#allocation44_spill] sm:$0xff] }
 0x287   : > { %2535 = vmatprep.mubr.bf16.mxu0 %v2133_v41  ;;  %v1798_v27 = vadd.f32 1.0, %v6051_v56  ;;  %v1801_v52 = vadd.f32 1.0, %v5249_v48  ;;  %v2135_v9 = vpack.c.bf16 %v2055_v42, %v2051_v33  ;;  %v1924_v20 = vmul.f32 0.5, %v1796_v45  ;;  %6052 = vst [vmem:[#allocation40_spill] sm:$0xff] %v5499_v61  ;;  %v6056_v42 = vld [vmem:[#allocation38_spill] sm:$0xff] }
 0x288   : > { %3646 = vtanh.f32 %v1575_v59  ;;  %v1805_v28 = vadd.f32 1.0, %v5314_v23  ;;  %v3631_v12 = vpop.eup %3630  ;;  %v2048_v55 = vmul.f32 %v1920_v30, %v6053_v22  ;;  %v1922_v50 = vmul.f32 0.5, %v1794_v0  ;;  %v5505_v59 = vpop.f32.mrf.mxu1  ;;  %v6058_v30 = vld [vmem:[#allocation28_spill] sm:$0xff]  ;;  %v6059_v22 = vld [vmem:[#allocation18_spill] sm:$0xff] }
 0x289   : > { %v1926_v5 = vmul.f32 0.5, %v1798_v27  ;;  %v1929_v41 = vmul.f32 0.5, %v1801_v52  ;;  %v3633_v36 = vpop.eup %3632  ;;  %2696 = vmatprep.mubr.bf16.mxu1 %v2135_v9  ;;  %v2052_v58 = vmul.f32 %v1924_v20, %v6054_v40  ;;  %v1803_v48 = vadd.f32 1.0, %v5291_v17  ;;  %6055 = vst [vmem:[#allocation51_spill] sm:$0xff] %v5505_v59 }
 0x28a   : > { %v1933_v56 = vmul.f32 0.5, %v1805_v28  ;;  %v1807_v33 = vadd.f32 1.0, %v5321_v43  ;;  %v1574_v23 = vmul.f32 0.7978846, %v1446_v16  ;;  %v2050_v45 = vmul.f32 %v1922_v50, %v6056_v42  ;;  %v5511_v28 = vpop.f32.mrf.mxu0 }
 0x28b   : > { %v2054_v61 = vmul.f32 %v1926_v5, %v6057_v13  ;;  %v2057_v0 = vmul.f32 %v1929_v41, %v6058_v30  ;;  %v3635_v27 = vpop.eup %3634  ;;  %v2132_v52 = vpack.c.bf16 %v2052_v58, %v2048_v55  ;;  %v1931_v63 = vmul.f32 0.5, %v1803_v48  ;;  %v6060_v13 = vld [vmem:[#allocation55_spill] sm:$0xff]  ;;  %v6061_v41 = vld [vmem:[#allocation33_spill] sm:$0xff]  ;;  %v5518_v55 = vpop.f32.mrf.mxu1 }
 0x28c   : > { %v2061_v9 = vmul.f32 %v1933_v56, %v6059_v22  ;;  %v1935_v20 = vmul.f32 0.5, %v1807_v33  ;;  %v1822_v17 = vadd.f32 1.0, %v3629_v3  ;;  %v1809_v43 = vadd.f32 1.0, %v5327_v51 }
 0x28d   : > { %v2134_v40 = vpack.c.bf16 %v2054_v61, %v2050_v45  ;;  %v1813_v16 = vadd.f32 1.0, %v5397_v49  ;;  %v3637_v59 = vpop.eup %3636  ;;  %2536 = vmatmul.mubr.bf16.gmra.mxu0 %v2132_v52  ;;  %v2059_v5 = vmul.f32 %v1931_v63, %v6060_v13  ;;  %v1811_v58 = vadd.f32 1.0, %v5336_v60 }
 0x28e   : > { %v2137_v50 = vpack.c.bf16 %v2061_v9, %v2057_v0  ;;  %v2063_v42 = vmul.f32 %v1935_v20, %v6061_v41  ;;  %v3639_v56 = vpop.eup %3638  ;;  %3648 = vtanh.f32 %v1574_v23  ;;  %v1937_v3 = vmul.f32 0.5, %v1809_v43  ;;  %v6062_v20 = vld [vmem:[#allocation17_spill] sm:$0xff] }
 0x28f   : > { %2697 = vmatmul.mubr.bf16.gmra.mxu1 %v2134_v40  ;;  %v1941_v61 = vmul.f32 0.5, %v1813_v16  ;;  %v1815_v51 = vadd.f32 1.0, %v5421_v24  ;;  %v3641_v48 = vpop.eup %3640  ;;  %v5523_v49 = vmul.f32 %v5380_v19, %v5239_v6  ;;  %v5527_v63 = vmul.f32 %v5444_v18, %v5257_v34  ;;  %v5529_v45 = vpop.f32.mrf.mxu0  ;;  %v6065_v16 = vld [vmem:[#allocation54_spill] sm:$0xff] }
 0x290   : > { %2543 = vmatprep.mubr.bf16.mxu0 %v2137_v50  ;;  %v2139_v60 = vpack.c.bf16 %v2063_v42, %v2059_v5  ;;  %v1939_v33 = vmul.f32 0.5, %v1811_v58  ;;  %v1948_v23 = vmul.f32 0.5, %v5478_v14  ;;  %v1950_v30 = vmul.f32 0.5, %v1822_v17  ;;  %v5539_v22 = vpop.f32.mrf.mxu1  ;;  %v6063_v14 = vld [vmem:[#allocation25_spill] sm:$0xff]  ;;  %v6066_v42 = vld [vmem:[#allocation19_spill] sm:$0xff] }
 0x291   : > { %v2065_v0 = vmul.f32 %v1937_v3, %v5208_v29  ;;  %v2069_v24 = vmul.f32 %v1941_v61, %v5244_v35  ;;  %v3643_v52 = vpop.eup %3642  ;;  %v5536_v6 = vmul.f32 %v5476_v21, %v5274_v7  ;;  %v1943_v34 = vmul.f32 0.5, %v1815_v51  ;;  %v6064_v29 = vld [vmem:[#allocation53_spill] sm:$0xff]  ;;  %v3033_v5 = vpop.f32.mrf.mxu0  ;;  %v6067_v58 = vld [vmem:[#allocation23_spill] sm:$0xff] }
 0x292   : > { %2704 = vmatprep.mubr.bf16.mxu1 %v2139_v60  ;;  %v1817_v19 = vadd.f32 1.0, %v5442_v57  ;;  %v1821_v18 = vadd.f32 1.0, %v3631_v12  ;;  %v2136_v17 = vpack.c.bf16 %v6063_v14, %v6062_v20  ;;  %v2067_v43 = vmul.f32 %v1939_v33, %v6064_v29 }
 0x293   : > { %v3645_v9 = vpop.eup %3644  ;;  %v2141_v40 = vpack.c.bf16 %v2069_v24, %v2065_v0  ;;  %v1819_v35 = vadd.f32 1.0, %v5451_v4  ;;  %v2071_v50 = vmul.f32 %v1943_v34, %v6065_v16  ;;  %v1823_v13 = vadd.f32 1.0, %v3633_v36  ;;  %v3145_v0 = vpop.f32.mrf.mxu1  ;;  %v6070_v16 = vld [vmem:[#allocation40_spill] sm:$0xff] }
 0x294   : > { %v1945_v7 = vmul.f32 0.5, %v1817_v19  ;;  %v1949_v21 = vmul.f32 0.5, %v1821_v18  ;;  %v5547_v57 = vmul.f32 %v1948_v23, %v5319_v15  ;;  %v5550_v12 = vmul.f32 %v1950_v30, %v5325_v62  ;;  %v3035_v19 = vpop.f32.mrf.mxu0 }
 0x295   : > { %v3647_v41 = vpop.eup %3646  ;;  %v2138_v3 = vpack.c.bf16 %v6067_v58, %v6066_v42  ;;  %v1947_v61 = vmul.f32 0.5, %v1819_v35  ;;  %v1828_v51 = vadd.f32 1.0, %v3643_v52  ;;  %2544 = vmatmul.mubr.bf16.gmra.mxu0 %v2136_v17  ;;  %v2143_v4 = vpack.c.bf16 %v2071_v50, %v2067_v43  ;;  %v6068_v43 = vld [vmem:[#allocation15_spill] sm:$0xff]  ;;  %v6074_v58 = vld [vmem:[#allocation26_spill] sm:$0xff] }
 0x296   : > { %v2077_v60 = vmul.f32 %v1949_v21, %v5344_v38  ;;  %v1951_v33 = vmul.f32 0.5, %v1823_v13  ;;  %v5555_v36 = vadd.f32 1.0, %v3635_v27  ;;  %2551 = vmatprep.mubr.bf16.mxu0 %v2141_v40  ;;  %v1825_v15 = vadd.f32 1.0, %v3639_v56  ;;  %v5567_v56 = vld [vmem:[%s5766_s4] ss:$0 sm:$0xff] }
 0x297   : > { %2705 = vmatmul.mubr.bf16.gmra.mxu1 %v2138_v3  ;;  %v1829_v23 = vadd.f32 1.0, %v3645_v9  ;;  %v1827_v24 = vadd.f32 1.0, %v3641_v48  ;;  %v5557_v62 = vadd.f32 1.0, %v3637_v59  ;;  %v2073_v30 = vmul.f32 %v1945_v7, %v5297_v1  ;;  %v3147_v9 = vpop.f32.mrf.mxu1  ;;  %v6071_v7 = vld [vmem:[#allocation35_spill] sm:$0xff]  ;;  %v6072_v21 = vld [vmem:[#allocation46_spill] sm:$0xff] }
 0x298   : > { %2712 = vmatprep.mubr.bf16.mxu1 %v2143_v4  ;;  %v2079_v52 = vmul.f32 %v1951_v33, %v5347_v54  ;;  %v1831_v34 = vadd.f32 1.0, %v3647_v41  ;;  %v2140_v38 = vpack.c.bf16 %v5378_v46, %v5368_v25  ;;  %v2075_v27 = vmul.f32 %v1947_v61, %v5300_v47  ;;  %v3650_v61 = vld [vmem:[%s4047_s8] sm:$0xff] }
 0x299   : > { %v1953_v18 = vmul.f32 0.5, %v1825_v15  ;;  %v1957_v20 = vmul.f32 0.5, %v1829_v23  ;;  %v5569_v59 = vmul.f32 0.5, %v1828_v51  ;;  %v2142_v1 = vpack.c.bf16 %v5523_v49, %v5375_v44  ;;  %v3148_v13 = vpop.f32.mrf.mxu1 }
 0x29a   : > { %v2145_v54 = vpack.c.bf16 %v2077_v60, %v2073_v30  ;;  %v3022_v48 = vadd.f32 %v5415_v2, %v5395_v39  ;;  %v2147_v25 = vpack.c.bf16 %v2079_v52, %v2075_v27  ;;  %v1955_v46 = vmul.f32 0.5, %v1827_v24  ;;  %v3036_v39 = vpop.f32.mrf.mxu0  ;;  %v6075_v52 = vld [vmem:[#allocation39_spill] sm:$0xff] }
 0x29b   : > { %v1959_v47 = vmul.f32 0.5, %v1831_v34  ;;  %v3025_v14 = vadd.f32 %v5461_v31, %v5435_v26  ;;  %v3649_v17 = vpop.eup %3648  ;;  %v5578_v40 = vmul.f32 %v1953_v18, %v5391_v53  ;;  %v3134_v44 = vadd.f32 %v5425_v32, %v6068_v43  ;;  %v6069_v26 = vld [vmem:[#allocation42_spill] sm:$0xff] }
 0x29c   : > { %v2450_v29 = vadd.f32 %v3022_v48, %v5567_v56  ;;  %v3028_v49 = vadd.f32 %v5487_v37, %v5474_v10  ;;  %v5586_v2 = vmul.f32 %v1957_v20, %v5447_v11  ;;  %v3137_v31 = vadd.f32 %v6069_v26, %v5449_v8  ;;  %v6073_v37 = vld [vmem:[#allocation51_spill] sm:$0xff]  ;;  %v6076_v26 = vld [vmem:[#allocation24_spill] sm:$0xff] }
 0x29d   : > { %v2453_v35 = vadd.f32 %v3025_v14, %v5567_v56  ;;  %v3031_v53 = vadd.f32 %v5511_v28, %v6070_v16  ;;  %2552 = vmatmul.mubr.bf16.gmra.mxu0 %v2140_v38  ;;  %v3140_v10 = vadd.f32 %v6072_v21, %v6071_v7  ;;  %v3143_v11 = vadd.f32 %v5518_v55, %v6073_v37  ;;  %v3651_v55 = vld [vmem:[%s4047_s8 + $0x8] sm:$0xff]  ;;  %v6077_v16 = vld [vmem:[#allocation22_spill] sm:$0xff]  ;;  %v6078_v21 = vld [vmem:[#allocation41_spill] sm:$0xff] }
 0x29e   : > { %v2611_v50 = vadd.f32 %v3134_v44, %v2450_v29  ;;  %v2458_v32 = vadd.f32 %v3028_v49, %v5567_v56  ;;  %v1830_v41 = vadd.f32 1.0, %v3649_v17  ;;  %2559 = vmatprep.mubr.bf16.mxu0 %v2145_v54  ;;  %v3034_v28 = vadd.f32 %v3033_v5, %v5529_v45  ;;  %v3652_v45 = vld [vmem:[%s4047_s8 + $0x10] sm:$0xff]  ;;  %v6079_v37 = vld [vmem:[#allocation34_spill] sm:$0xff] }
 0x29f   : > { %2713 = vmatmul.mubr.bf16.gmra.mxu1 %v2142_v1  ;;  %v2614_v8 = vadd.f32 %v3137_v31, %v2453_v35  ;;  %v2461_v42 = vadd.f32 %v3031_v53, %v5567_v56  ;;  %v2087_v3 = vmul.f32 %v1959_v47, %v6074_v58  ;;  %v3037_v60 = vadd.f32 %v3036_v39, %v3035_v19 }
 0x2a0   : > { %2720 = vmatprep.mubr.bf16.mxu1 %v2147_v25  ;;  %v2737_v51 = vadd.f32 %v3650_v61, %v2611_v50  ;;  %v2619_v4 = vadd.f32 %v3140_v10, %v2458_v32  ;;  %v2466_v24 = vadd.f32 %v3034_v28, %v5567_v56  ;;  %v3146_v30 = vadd.f32 %v3145_v0, %v5539_v22  ;;  %v3653_v0 = vld [vmem:[%s4047_s8 + $0x18] sm:$0xff]  ;;  %v3656_v50 = vld [vmem:[%s4047_s8 + $0x30] sm:$0xff] }
 0x2a1   : > { %v2738_v15 = vadd.f32 %v3651_v55, %v2614_v8  ;;  %v2622_v23 = vadd.f32 %v3143_v11, %v2461_v42  ;;  %v2083_v34 = vmul.f32 %v1955_v46, %v6075_v52  ;;  %v2469_v19 = vadd.f32 %v3037_v60, %v5567_v56  ;;  %v3658_v52 = vld [vmem:[%s4047_s8 + $0x40] sm:$0xff] }
 0x2a2   : > { %2769 = vst [vmem:[%s5608_s15] sm:$0xff] %v2737_v51  ;;  %v2739_v5 = vadd.f32 %v3652_v45, %v2619_v4  ;;  %v3149_v38 = vadd.f32 %v3148_v13, %v3147_v9  ;;  %v2149_v22 = vpack.c.bf16 %v5586_v2, %v5578_v40  ;;  %v2627_v1 = vadd.f32 %v3146_v30, %v2466_v24  ;;  %v3654_v40 = vld [vmem:[%s4047_s8 + $0x20] sm:$0xff] }
 0x2a3   : > { %v3038_v33 = vpop.f32.mrf.mxu0  ;;  %2770 = vst [vmem:[%s5608_s15 + $0x8] sm:$0xff] %v2738_v15  ;;  %v2740_v20 = vadd.f32 %v3653_v0, %v2622_v23  ;;  %v1958_v48 = vmul.f32 0.5, %v1830_v41  ;;  %v2144_v25 = vpack.c.bf16 %v5547_v57, %v5527_v63  ;;  %v2151_v46 = vpack.c.bf16 %v2087_v3, %v2083_v34  ;;  %v3655_v63 = vld [vmem:[%s4047_s8 + $0x28] sm:$0xff] }
 0x2a4   : > { %2771 = vst [vmem:[%s5608_s15 + $0x10] sm:$0xff] %v2739_v5  ;;  %v2630_v9 = vadd.f32 %v3149_v38, %v2469_v19  ;;  %v2146_v17 = vpack.c.bf16 %v5550_v12, %v5536_v6  ;;  %v2741_v29 = vadd.f32 %v3654_v40, %v2627_v1  ;;  %v1952_v49 = vmul.f32 0.5, %v5555_v36  ;;  %v3659_v38 = vld [vmem:[%s4047_s8 + $0x48] sm:$0xff]  ;;  %v3660_v40 = vld [vmem:[%s4047_s8 + $0x50] sm:$0xff] }
 0x2a5   : > { %v3150_v27 = vpop.f32.mrf.mxu1  ;;  %v3039_v18 = vpop.f32.mrf.mxu0  ;;  %2772 = vst [vmem:[%s5608_s15 + $0x18] sm:$0xff] %v2740_v20  ;;  %2560 = vmatmul.mubr.bf16.gmra.mxu0 %v2144_v25  ;;  %v1954_v35 = vmul.f32 0.5, %v5557_v62  ;;  %v2084_v31 = vmul.f32 %v5569_v59, %v6076_v26  ;;  %v2086_v53 = vmul.f32 %v1958_v48, %v6077_v16  ;;  %v3657_v59 = vld [vmem:[%s4047_s8 + $0x38] sm:$0xff] }
 0x2a6   : > { %v3040_v54 = vadd.f32 %v3039_v18, %v3038_v33  ;;  %v2742_v57 = vadd.f32 %v3655_v63, %v2630_v9  ;;  %2567 = vmatprep.mubr.bf16.mxu0 %v2149_v22  ;;  %2773 = vst [vmem:[%s5608_s15 + $0x20] sm:$0xff] %v2741_v29  ;;  %v2080_v10 = vmul.f32 %v1952_v49, %v6078_v21  ;;  %v3661_v63 = vld [vmem:[%s4047_s8 + $0x58] sm:$0xff] }
 0x2a7   : > { %v3151_v47 = vpop.f32.mrf.mxu1  ;;  %v3041_v14 = vpop.f32.mrf.mxu0  ;;  %2721 = vmatmul.mubr.bf16.gmra.mxu1 %v2146_v17  ;;  %v2082_v11 = vmul.f32 %v1954_v35, %v6079_v37 }
 0x2a8   : > { %v2474_v43 = vadd.f32 %v3040_v54, %v5567_v56  ;;  %v3152_v44 = vadd.f32 %v3151_v47, %v3150_v27  ;;  %2728 = vmatprep.mubr.bf16.mxu1 %v2151_v46  ;;  %2774 = vst [vmem:[%s5608_s15 + $0x28] sm:$0xff] %v2742_v57  ;;  %v2148_v41 = vpack.c.bf16 %v2084_v31, %v2080_v10 }
 0x2a9   : > { %v3153_v39 = vpop.f32.mrf.mxu1  ;;  %v3042_v2 = vpop.f32.mrf.mxu0  ;;  %v2150_v8 = vpack.c.bf16 %v2086_v53, %v2082_v11 }
 0x2aa   : > { %v2635_v6 = vadd.f32 %v3152_v44, %v2474_v43  ;;  %v3043_v12 = vadd.f32 %v3042_v2, %v3041_v14 }
 0x2ab   : > { %v3154_v36 = vpop.f32.mrf.mxu1 }
 0x2ac   : > { %v2743_v32 = vadd.f32 %v3656_v50, %v2635_v6  ;;  %v2477_v62 = vadd.f32 %v3043_v12, %v5567_v56  ;;  %v3155_v7 = vadd.f32 %v3154_v36, %v3153_v39 }
 0x2ad   : > { %2568 = vmatmul.mubr.bf16.gmra.mxu0 %v2148_v41 }
 0x2ae   : > { %2775 = vst [vmem:[%s5608_s15 + $0x30] sm:$0xff] %v2743_v32  ;;  %v2638_v13 = vadd.f32 %v3155_v7, %v2477_v62  ;;  %v3662_v7 = vld [vmem:[%s4047_s8 + $0x60] sm:$0xff] }
 0x2af   : > { %2729 = vmatmul.mubr.bf16.gmra.mxu1 %v2150_v8 }
 0x2b0   : > { %v2744_v42 = vadd.f32 %v3657_v59, %v2638_v13  ;;  %v3663_v13 = vld [vmem:[%s4047_s8 + $0x68] sm:$0xff] }
 0x2b2   : > { %2776 = vst [vmem:[%s5608_s15 + $0x38] sm:$0xff] %v2744_v42 }
 0x2b7   : > { %v3044_v28 = vpop.f32.mrf.mxu0 }
 0x2b9   : > { %v3045_v3 = vpop.f32.mrf.mxu0 }
 0x2ba   : > { %v3156_v58 = vpop.f32.mrf.mxu1  ;;  %v3046_v61 = vadd.f32 %v3045_v3, %v3044_v28 }
 0x2bb   : > { %v3047_v4 = vpop.f32.mrf.mxu0 }
 0x2bc   : > { %v3157_v51 = vpop.f32.mrf.mxu1  ;;  %v2482_v60 = vadd.f32 %v3046_v61, %v5567_v56 }
 0x2bd   : > { %v3158_v33 = vadd.f32 %v3157_v51, %v3156_v58  ;;  %v3048_v15 = vpop.f32.mrf.mxu0 }
 0x2be   : > { %v3159_v55 = vpop.f32.mrf.mxu1  ;;  %v3049_v24 = vadd.f32 %v3048_v15, %v3047_v4 }
 0x2bf   : > { %v2643_v23 = vadd.f32 %v3158_v33, %v2482_v60 }
 0x2c0   : > { %v3160_v30 = vpop.f32.mrf.mxu1  ;;  %v2485_v45 = vadd.f32 %v3049_v24, %v5567_v56 }
 0x2c1   : > { %v2745_v34 = vadd.f32 %v3658_v52, %v2643_v23  ;;  %v3161_v5 = vadd.f32 %v3160_v30, %v3159_v55  ;;  %v3664_v23 = vld [vmem:[%s4047_s8 + $0x70] sm:$0xff] }
 0x2c3   : > { %2777 = vst [vmem:[%s5608_s15 + $0x40] sm:$0xff] %v2745_v34  ;;  %v2646_v19 = vadd.f32 %v3161_v5, %v2485_v45  ;;  %v3665_v45 = vld [vmem:[%s4047_s8 + $0x78] sm:$0xff] }
 0x2c5   : > { %v2746_v27 = vadd.f32 %v3659_v38, %v2646_v19 }
 0x2c7   : > { %2778 = vst [vmem:[%s5608_s15 + $0x48] sm:$0xff] %v2746_v27 }
 0x2cc   : > { %v3050_v18 = vpop.f32.mrf.mxu0 }
 0x2ce   : > { %v3162_v22 = vpop.f32.mrf.mxu1  ;;  %v3051_v0 = vpop.f32.mrf.mxu0 }
 0x2cf   : > { %v3052_v20 = vadd.f32 %v3051_v0, %v3050_v18 }
 0x2d0   : > { %v3163_v1 = vpop.f32.mrf.mxu1  ;;  %v3053_v54 = vpop.f32.mrf.mxu0 }
 0x2d1   : > { %v2490_v48 = vadd.f32 %v3052_v20, %v5567_v56  ;;  %v3164_v25 = vadd.f32 %v3163_v1, %v3162_v22 }
 0x2d2   : > { %v3165_v46 = vpop.f32.mrf.mxu1  ;;  %v3054_v9 = vpop.f32.mrf.mxu0 }
 0x2d3   : > { %v2651_v47 = vadd.f32 %v3164_v25, %v2490_v48  ;;  %v3055_v14 = vadd.f32 %v3054_v9, %v3053_v54 }
 0x2d4   : > { %v3166_v17 = vpop.f32.mrf.mxu1 }
 0x2d5   : > { %v2747_v29 = vadd.f32 %v3660_v40, %v2651_v47  ;;  %v2493_v43 = vadd.f32 %v3055_v14, %v5567_v56  ;;  %v3167_v44 = vadd.f32 %v3166_v17, %v3165_v46  ;;  %v3666_v47 = vld [vmem:[%s4047_s8 + $0x80] sm:$0xff] }
 0x2d7   : > { %2779 = vst [vmem:[%s5608_s15 + $0x50] sm:$0xff] %v2747_v29  ;;  %v2654_v49 = vadd.f32 %v3167_v44, %v2493_v43  ;;  %v3667_v43 = vld [vmem:[%s4047_s8 + $0x88] sm:$0xff] }
 0x2d9   : > { %v2748_v57 = vadd.f32 %v3661_v63, %v2654_v49 }
 0x2db   : > { %2780 = vst [vmem:[%s5608_s15 + $0x58] sm:$0xff] %v2748_v57 }
 0x2e0   : > { %v3056_v39 = vpop.f32.mrf.mxu0 }
 0x2e2   : > { %v3057_v35 = vpop.f32.mrf.mxu0 }
 0x2e3   : > { %v3168_v2 = vpop.f32.mrf.mxu1  ;;  %v3058_v6 = vadd.f32 %v3057_v35, %v3056_v39 }
 0x2e4   : > { %v3059_v26 = vpop.f32.mrf.mxu0 }
 0x2e5   : > { %v3169_v12 = vpop.f32.mrf.mxu1  ;;  %v2498_v31 = vadd.f32 %v3058_v6, %v5567_v56 }
 0x2e6   : > { %v3170_v36 = vadd.f32 %v3169_v12, %v3168_v2  ;;  %v3060_v53 = vpop.f32.mrf.mxu0 }
 0x2e7   : > { %v3171_v16 = vpop.f32.mrf.mxu1  ;;  %v3061_v32 = vadd.f32 %v3060_v53, %v3059_v26 }
 0x2e8   : > { %v2659_v50 = vadd.f32 %v3170_v36, %v2498_v31 }
 0x2e9   : > { %v3172_v62 = vpop.f32.mrf.mxu1  ;;  %v2501_v10 = vadd.f32 %v3061_v32, %v5567_v56 }
 0x2ea   : > { %v2749_v21 = vadd.f32 %v3662_v7, %v2659_v50  ;;  %v3173_v37 = vadd.f32 %v3172_v62, %v3171_v16  ;;  %v3668_v50 = vld [vmem:[%s4047_s8 + $0x90] sm:$0xff] }
 0x2ec   : > { %2781 = vst [vmem:[%s5608_s15 + $0x60] sm:$0xff] %v2749_v21  ;;  %v2662_v11 = vadd.f32 %v3173_v37, %v2501_v10  ;;  %v3669_v10 = vld [vmem:[%s4047_s8 + $0x98] sm:$0xff] }
 0x2ee   : > { %v2750_v41 = vadd.f32 %v3663_v13, %v2662_v11 }
 0x2f0   : > { %2782 = vst [vmem:[%s5608_s15 + $0x68] sm:$0xff] %v2750_v41 }
 0x2f5   : > { %v3062_v8 = vpop.f32.mrf.mxu0 }
 0x2f7   : > { %v3174_v59 = vpop.f32.mrf.mxu1  ;;  %v3063_v42 = vpop.f32.mrf.mxu0 }
 0x2f8   : > { %v3064_v28 = vadd.f32 %v3063_v42, %v3062_v8 }
 0x2f9   : > { %v3175_v58 = vpop.f32.mrf.mxu1  ;;  %v3065_v3 = vpop.f32.mrf.mxu0 }
 0x2fa   : > { %v2506_v61 = vadd.f32 %v3064_v28, %v5567_v56  ;;  %v3176_v51 = vadd.f32 %v3175_v58, %v3174_v59 }
 0x2fb   : > { %v3177_v4 = vpop.f32.mrf.mxu1  ;;  %v3066_v60 = vpop.f32.mrf.mxu0 }
 0x2fc   : > { %v2667_v33 = vadd.f32 %v3176_v51, %v2506_v61  ;;  %v3067_v55 = vadd.f32 %v3066_v60, %v3065_v3 }
 0x2fd   : > { %v3178_v15 = vpop.f32.mrf.mxu1 }
 0x2fe   : > { %v2751_v24 = vadd.f32 %v3664_v23, %v2667_v33  ;;  %v2509_v30 = vadd.f32 %v3067_v55, %v5567_v56  ;;  %v3179_v52 = vadd.f32 %v3178_v15, %v3177_v4  ;;  %v3670_v33 = vld [vmem:[%s4047_s8 + $0xa0] sm:$0xff] }
 0x300   : > { %2783 = vst [vmem:[%s5608_s15 + $0x70] sm:$0xff] %v2751_v24  ;;  %v2670_v34 = vadd.f32 %v3179_v52, %v2509_v30  ;;  %v3671_v30 = vld [vmem:[%s4047_s8 + $0xa8] sm:$0xff] }
 0x302   : > { %v2752_v5 = vadd.f32 %v3665_v45, %v2670_v34 }
 0x304   : > { %2784 = vst [vmem:[%s5608_s15 + $0x78] sm:$0xff] %v2752_v5 }
 0x30b   : > { %v3068_v19 = vpop.f32.mrf.mxu0 }
 0x30c   : > { %v3180_v38 = vpop.f32.mrf.mxu1 }
 0x30d   : > { %v3069_v27 = vpop.f32.mrf.mxu0 }
 0x30e   : > { %v3070_v18 = vadd.f32 %v3069_v27, %v3068_v19  ;;  %v3181_v22 = vpop.f32.mrf.mxu1 }
 0x30f   : > { %v3071_v0 = vpop.f32.mrf.mxu0  ;;  %v3182_v1 = vadd.f32 %v3181_v22, %v3180_v38 }
 0x310   : > { %v2514_v20 = vadd.f32 %v3070_v18, %v5567_v56  ;;  %v3183_v54 = vpop.f32.mrf.mxu1 }
 0x311   : > { %v3072_v48 = vpop.f32.mrf.mxu0 }
 0x312   : > { %v2675_v25 = vadd.f32 %v3182_v1, %v2514_v20  ;;  %v3073_v46 = vadd.f32 %v3072_v48, %v3071_v0  ;;  %v3184_v9 = vpop.f32.mrf.mxu1 }
 0x313   : > { %v3185_v40 = vadd.f32 %v3184_v9, %v3183_v54 }
 0x314   : > { %v2753_v14 = vadd.f32 %v3666_v47, %v2675_v25  ;;  %v2517_v17 = vadd.f32 %v3073_v46, %v5567_v56  ;;  %v3672_v46 = vld [vmem:[%s4047_s8 + $0xb0] sm:$0xff] }
 0x316   : > { %2785 = vst [vmem:[%s5608_s15 + $0x80] sm:$0xff] %v2753_v14  ;;  %v2678_v29 = vadd.f32 %v3185_v40, %v2517_v17 }
 0x318   : > { %v2754_v44 = vadd.f32 %v3667_v43, %v2678_v29 }
 0x31a   : > { %2786 = vst [vmem:[%s5608_s15 + $0x88] sm:$0xff] %v2754_v44 }
 0x323   : > { %v3074_v49 = vpop.f32.mrf.mxu0 }
 0x325   : > { %v3186_v63 = vpop.f32.mrf.mxu1  ;;  %v3075_v57 = vpop.f32.mrf.mxu0 }
 0x326   : > { %v3076_v39 = vadd.f32 %v3075_v57, %v3074_v49 }
 0x327   : > { %v3187_v2 = vpop.f32.mrf.mxu1  ;;  %v3077_v35 = vpop.f32.mrf.mxu0 }
 0x328   : > { %v2522_v6 = vadd.f32 %v3076_v39, %v5567_v56  ;;  %v3188_v12 = vadd.f32 %v3187_v2, %v3186_v63  ;;  %v3673_v63 = vld [vmem:[%s4047_s8 + $0xb8] sm:$0xff] }
 0x329   : > { %v3189_v26 = vpop.f32.mrf.mxu1  ;;  %v3078_v31 = vpop.f32.mrf.mxu0 }
 0x32a   : > { %v2683_v36 = vadd.f32 %v3188_v12, %v2522_v6  ;;  %v3079_v16 = vadd.f32 %v3078_v31, %v3077_v35 }
 0x32b   : > { %v3190_v53 = vpop.f32.mrf.mxu1 }
 0x32c   : > { %v2755_v32 = vadd.f32 %v3668_v50, %v2683_v36  ;;  %v2525_v62 = vadd.f32 %v3079_v16, %v5567_v56  ;;  %v3191_v7 = vadd.f32 %v3190_v53, %v3189_v26  ;;  %v3674_v16 = vld [vmem:[%s4047_s8 + $0xc0] sm:$0xff] }
 0x32e   : > { %2787 = vst [vmem:[%s5608_s15 + $0x90] sm:$0xff] %v2755_v32  ;;  %v2686_v21 = vadd.f32 %v3191_v7, %v2525_v62 }
 0x330   : > { %v2756_v37 = vadd.f32 %v3669_v10, %v2686_v21 }
 0x332   : > { %2788 = vst [vmem:[%s5608_s15 + $0x98] sm:$0xff] %v2756_v37 }
 0x33a   : > { %v3080_v11 = vpop.f32.mrf.mxu0 }
 0x33c   : > { %v3192_v13 = vpop.f32.mrf.mxu1  ;;  %v3081_v41 = vpop.f32.mrf.mxu0 }
 0x33d   : > { %v3082_v8 = vadd.f32 %v3081_v41, %v3080_v11 }
 0x33e   : > { %v3193_v59 = vpop.f32.mrf.mxu1  ;;  %v3083_v42 = vpop.f32.mrf.mxu0 }
 0x33f   : > { %v2530_v28 = vadd.f32 %v3082_v8, %v5567_v56  ;;  %v3194_v58 = vadd.f32 %v3193_v59, %v3192_v13  ;;  %v3675_v13 = vld [vmem:[%s4047_s8 + $0xc8] sm:$0xff] }
 0x340   : > { %v3195_v3 = vpop.f32.mrf.mxu1  ;;  %v3084_v61 = vpop.f32.mrf.mxu0 }
 0x341   : > { %v2691_v51 = vadd.f32 %v3194_v58, %v2530_v28  ;;  %v3085_v4 = vadd.f32 %v3084_v61, %v3083_v42 }
 0x342   : > { %v3196_v60 = vpop.f32.mrf.mxu1 }
 0x343   : > { %v2757_v55 = vadd.f32 %v3670_v33, %v2691_v51  ;;  %v2533_v15 = vadd.f32 %v3085_v4, %v5567_v56  ;;  %v3197_v23 = vadd.f32 %v3196_v60, %v3195_v3  ;;  %v3676_v4 = vld [vmem:[%s4047_s8 + $0xd0] sm:$0xff] }
 0x345   : > { %2789 = vst [vmem:[%s5608_s15 + $0xa0] sm:$0xff] %v2757_v55  ;;  %v2694_v24 = vadd.f32 %v3197_v23, %v2533_v15 }
 0x347   : > { %v2758_v52 = vadd.f32 %v3671_v30, %v2694_v24 }
 0x349   : > { %2790 = vst [vmem:[%s5608_s15 + $0xa8] sm:$0xff] %v2758_v52 }
 0x34d   : > { %v3086_v34 = vpop.f32.mrf.mxu0 }
 0x34f   : > { %v3198_v45 = vpop.f32.mrf.mxu1  ;;  %v3087_v5 = vpop.f32.mrf.mxu0 }
 0x350   : > { %v3088_v19 = vadd.f32 %v3087_v5, %v3086_v34 }
 0x351   : > { %v3199_v38 = vpop.f32.mrf.mxu1  ;;  %v3089_v27 = vpop.f32.mrf.mxu0 }
 0x352   : > { %v2538_v18 = vadd.f32 %v3088_v19, %v5567_v56  ;;  %v3200_v22 = vadd.f32 %v3199_v38, %v3198_v45  ;;  %v3677_v45 = vld [vmem:[%s4047_s8 + $0xd8] sm:$0xff] }
 0x353   : > { %v3201_v0 = vpop.f32.mrf.mxu1  ;;  %v3090_v20 = vpop.f32.mrf.mxu0 }
 0x354   : > { %v2699_v1 = vadd.f32 %v3200_v22, %v2538_v18  ;;  %v3091_v54 = vadd.f32 %v3090_v20, %v3089_v27 }
 0x355   : > { %v3202_v48 = vpop.f32.mrf.mxu1  ;;  %v3092_v25 = vpop.f32.mrf.mxu0 }
 0x356   : > { %v2759_v9 = vadd.f32 %v3672_v46, %v2699_v1  ;;  %v2541_v47 = vadd.f32 %v3091_v54, %v5567_v56  ;;  %v3203_v14 = vadd.f32 %v3202_v48, %v3201_v0  ;;  %v3678_v54 = vld [vmem:[%s4047_s8 + $0xe0] sm:$0xff] }
 0x357   : > { %v3204_v17 = vpop.f32.mrf.mxu1  ;;  %v3093_v40 = vpop.f32.mrf.mxu0 }
 0x358   : > { %2791 = vst [vmem:[%s5608_s15 + $0xb0] sm:$0xff] %v2759_v9  ;;  %v2702_v29 = vadd.f32 %v3203_v14, %v2541_v47  ;;  %v3094_v43 = vadd.f32 %v3093_v40, %v3092_v25 }
 0x359   : > { %v3205_v44 = vpop.f32.mrf.mxu1  ;;  %v3095_v49 = vpop.f32.mrf.mxu0 }
 0x35a   : > { %v2760_v57 = vadd.f32 %v3673_v63, %v2702_v29  ;;  %v2546_v39 = vadd.f32 %v3094_v43, %v5567_v56  ;;  %v3206_v2 = vadd.f32 %v3205_v44, %v3204_v17  ;;  %v3679_v43 = vld [vmem:[%s4047_s8 + $0xe8] sm:$0xff] }
 0x35b   : > { %v3207_v35 = vpop.f32.mrf.mxu1  ;;  %v3096_v6 = vpop.f32.mrf.mxu0 }
 0x35c   : > { %2792 = vst [vmem:[%s5608_s15 + $0xb8] sm:$0xff] %v2760_v57  ;;  %v2707_v12 = vadd.f32 %v3206_v2, %v2546_v39  ;;  %v3097_v26 = vadd.f32 %v3096_v6, %v3095_v49 }
 0x35d   : > { %v3208_v31 = vpop.f32.mrf.mxu1  ;;  %v3098_v36 = vpop.f32.mrf.mxu0 }
 0x35e   : > { %v2761_v53 = vadd.f32 %v3674_v16, %v2707_v12  ;;  %v2549_v50 = vadd.f32 %v3097_v26, %v5567_v56  ;;  %v3209_v32 = vadd.f32 %v3208_v31, %v3207_v35  ;;  %v3680_v12 = vld [vmem:[%s4047_s8 + $0xf0] sm:$0xff] }
 0x35f   : > { %v3210_v62 = vpop.f32.mrf.mxu1  ;;  %v3099_v7 = vpop.f32.mrf.mxu0 }
 0x360   : > { %2793 = vst [vmem:[%s5608_s15 + $0xc0] sm:$0xff] %v2761_v53  ;;  %v2710_v21 = vadd.f32 %v3209_v32, %v2549_v50  ;;  %v3100_v10 = vadd.f32 %v3099_v7, %v3098_v36  ;;  %v3681_v53 = vld [vmem:[%s4047_s8 + $0xf8] sm:$0xff] }
 0x361   : > { %v3211_v37 = vpop.f32.mrf.mxu1  ;;  %v3101_v11 = vpop.f32.mrf.mxu0 }
 0x362   : > { %v2762_v41 = vadd.f32 %v3675_v13, %v2710_v21  ;;  %v2554_v8 = vadd.f32 %v3100_v10, %v5567_v56  ;;  %v3212_v59 = vadd.f32 %v3211_v37, %v3210_v62 }
 0x363   : > { %v3213_v42 = vpop.f32.mrf.mxu1  ;;  %v3102_v28 = vpop.f32.mrf.mxu0 }
 0x364   : > { %2794 = vst [vmem:[%s5608_s15 + $0xc8] sm:$0xff] %v2762_v41  ;;  %v2715_v58 = vadd.f32 %v3212_v59, %v2554_v8  ;;  %v3103_v3 = vadd.f32 %v3102_v28, %v3101_v11 }
 0x365   : > { %v3214_v61 = vpop.f32.mrf.mxu1  ;;  %v3104_v51 = vpop.f32.mrf.mxu0 }
 0x366   : > { %v2763_v60 = vadd.f32 %v3676_v4, %v2715_v58  ;;  %v2557_v33 = vadd.f32 %v3103_v3, %v5567_v56  ;;  %v3215_v55 = vadd.f32 %v3214_v61, %v3213_v42 }
 0x367   : > { %v3216_v15 = vpop.f32.mrf.mxu1  ;;  %v3105_v23 = vpop.f32.mrf.mxu0 }
 0x368   : > { %2795 = vst [vmem:[%s5608_s15 + $0xd0] sm:$0xff] %v2763_v60  ;;  %v2718_v24 = vadd.f32 %v3215_v55, %v2557_v33  ;;  %v3106_v30 = vadd.f32 %v3105_v23, %v3104_v51 }
 0x369   : > { %v3217_v52 = vpop.f32.mrf.mxu1  ;;  %v3107_v34 = vpop.f32.mrf.mxu0 }
 0x36a   : > { %v2764_v5 = vadd.f32 %v3677_v45, %v2718_v24  ;;  %v2562_v19 = vadd.f32 %v3106_v30, %v5567_v56  ;;  %v3218_v38 = vadd.f32 %v3217_v52, %v3216_v15 }
 0x36b   : > { %v3219_v27 = vpop.f32.mrf.mxu1  ;;  %v3108_v18 = vpop.f32.mrf.mxu0 }
 0x36c   : > { %2796 = vst [vmem:[%s5608_s15 + $0xd8] sm:$0xff] %v2764_v5  ;;  %v2723_v22 = vadd.f32 %v3218_v38, %v2562_v19  ;;  %v3109_v0 = vadd.f32 %v3108_v18, %v3107_v34 }
 0x36d   : > { %v3220_v20 = vpop.f32.mrf.mxu1  ;;  %v3110_v1 = vpop.f32.mrf.mxu0 }
 0x36e   : > { %v2765_v48 = vadd.f32 %v3678_v54, %v2723_v22  ;;  %v2565_v25 = vadd.f32 %v3109_v0, %v5567_v56  ;;  %v3221_v46 = vadd.f32 %v3220_v20, %v3219_v27 }
 0x36f   : > { %v3222_v9 = vpop.f32.mrf.mxu1  ;;  %v3111_v47 = vpop.f32.mrf.mxu0 }
 0x370   : > { %2797 = vst [vmem:[%s5608_s15 + $0xe0] sm:$0xff] %v2765_v48  ;;  %v2726_v14 = vadd.f32 %v3221_v46, %v2565_v25  ;;  %v3112_v17 = vadd.f32 %v3111_v47, %v3110_v1 }
 0x371   : > { %v3223_v40 = vpop.f32.mrf.mxu1  ;;  %v3113_v29 = vpop.f32.mrf.mxu0 }
 0x372   : > { %v2766_v44 = vadd.f32 %v3679_v43, %v2726_v14  ;;  %v2570_v49 = vadd.f32 %v3112_v17, %v5567_v56  ;;  %v3224_v63 = vadd.f32 %v3223_v40, %v3222_v9 }
 0x373   : > { %v3225_v57 = vpop.f32.mrf.mxu1  ;;  %v3114_v39 = vpop.f32.mrf.mxu0 }
 0x374   : > { %2798 = vst [vmem:[%s5608_s15 + $0xe8] sm:$0xff] %v2766_v44  ;;  %v2731_v2 = vadd.f32 %v3224_v63, %v2570_v49  ;;  %v3115_v35 = vadd.f32 %v3114_v39, %v3113_v29 }
 0x375   : > { %v3226_v6 = vpop.f32.mrf.mxu1 }
 0x376   : > { %v2767_v26 = vadd.f32 %v3680_v12, %v2731_v2  ;;  %v2573_v31 = vadd.f32 %v3115_v35, %v5567_v56  ;;  %v3227_v36 = vadd.f32 %v3226_v6, %v3225_v57 }
 0x378   : > { %2799 = vst [vmem:[%s5608_s15 + $0xf0] sm:$0xff] %v2767_v26  ;;  %v2734_v16 = vadd.f32 %v3227_v36, %v2573_v31 }
 0x37a   : > { %v2768_v50 = vadd.f32 %v3681_v53, %v2734_v16 }
 0x37c   : > { %2800 = vst [vmem:[%s5608_s15 + $0xf8] sm:$0xff] %v2768_v50 }
 0x37d   : > { %3801 = shalt.err (!%p3798_p9)
}
 0x37e   : > { %s3802_s9 = scalar_lea.hbm %s5715_s13, 4096  ;;  %s3806_s24 = scalar_lea.hbm %s5767_s5, 8192 }
 0x37f   : > { %p3803_p1 = scmp.ne.s32.totalorder %s5715_s13, %s3802_s9  ;;  %p3807_p11 = scmp.lt.s32.totalorder %s5715_s13, %s5767_s5 }
 0x380   : > { %p3808_p13 = scmp.lt.s32.totalorder %s3806_s24, %s3802_s9 }
 0x381   : > { %p3804_p8 = pnand %p3803_p1, %p6080_p6 }
 0x382   : > { %p3809_p2 = por %p3808_p13, %p3807_p11 }
 0x383   : > { %p3805_p10 = pneg %p3804_p8 }
 0x385   : > { %p3810_p4 = pnand %p3809_p2, %p3805_p10 }
 0x387   : > { %3813 = shalt.err (!%p3810_p4)
}
 0x388   : > { %s3874_s17 = smov 128   ;;  %s3875_s27 = smov 8  }
 0x389   : > { %3242 = dma.vmem_to_hbm [thread:$0]  (%p6080_p6), %s5717_s23, 4096, %s5715_s13, %s2802_s14, %s3874_s17, %s3874_s17, %s3875_s27  }
 0x38a PF: > { %s2830_s29 = sand.u32 1, %s3848_s18   ;;  %p6081_p12 = scmp.ne.s32.totalorder %s5846_s25, 0 }
 0x38b   : > { %p6082_p0 = scmp.ge.s32.totalorder %s3860_s21, 2  ;;  %s2831_s16 = scalar_lea.sflag [#allocation4], %s2830_s29 }
 0x38d   : > { %p3259_p5 = pnand %p6082_p0, %p6081_p12 }
 0x38f   : > { %p3260_p3 = pneg %p3259_p5 }
 0x391   : > { %3843 = dma.done.wait (%p3260_p3), %s2831_s16, 4096  }
 0x392   : > { %3845 = vsyncadd (%p3260_p3), %s2831_s16, 4294963200  ;;  %p20_p7 = scmp.ge.s32.totalorder %s3986_s6, 4   ;;  %s6083_s18 = smov %s3852_s19 }
 0x393   : > { %s6084_s19 = smov %s3856_s20  ;;  %s6085_s20 = smov %s3996_s10 }
 0x394   : > { %s6086_s21 = smov %s3986_s6  ;;  %22 = sbr.rel (!%p20_p7) target bundleno = 7 (0x7), region = 97 }
 0x399   :  { %2836 = vsyncpa [#allocation3], 1 }
 0x39a   :  { %2838 = vsyncpa [#allocation3 + $0x1], 1 }
 0x39b   :  { %2839 = vsyncpa [#allocation6], 1 }
 0x39c   :  { %2840 = vsyncpa [#allocation9], 1 }
 0x39d   :  { %2841 = vsyncpa [#allocation4], 1 }
 0x39e   :  { %2843 = vsyncpa [#allocation4 + $0x1], 1 }

</bundles_post_ra>
